<compile_context>
chip_gen: v6e
topology: v6e:2x2x1
jax: 0.10.0
libtpu: 0.0.40
codegen_flags: <defaults>
</compile_context>

<pallas_src>
import functools

import jax
import jax.numpy as jnp
from jax.experimental import pallas as pl
from jax.experimental.pallas import tpu as pltpu


def generator_kernel(xproj_ref, whh0_ref, w1_ref, wfc_ref, bfc_ref,
                     out_ref, h1_sc, *, hidden, seq):
    H = hidden

    whh0 = whh0_ref[...]   # (H, 4H)  bf16  layer-0 recurrent weights
    w1 = w1_ref[...]       # (2H, 4H) bf16  layer-1 stacked [W_ih1; W_hh1]

    def gates_to_hc(gates, c):
        # PyTorch gate order: i, f, g, o ; bias=False.  H is a multiple of 128,
        # so the gate slices land on lane-tile boundaries (zero-cost views).
        # All gate math and state updates stay f32.
        i = jax.nn.sigmoid(gates[:, 0 * H:1 * H])
        f = jax.nn.sigmoid(gates[:, 1 * H:2 * H])
        g = jnp.tanh(gates[:, 2 * H:3 * H])
        o = jax.nn.sigmoid(gates[:, 3 * H:4 * H])
        c_new = f * c + i * g
        h_new = o * jnp.tanh(c_new)
        return h_new, c_new

    # ---- serial recurrence; h/c stay in vregs as loop carries ----
    def step(t, carry):
        h0, c0, h1, c1 = carry
        # layer 0: input projection was hoisted to the wrapper; only the recurrent
        # matmul (bf16 weight streaming, f32 accumulation) remains per step.
        g0 = xproj_ref[pl.ds(t, 1), :] + jnp.dot(
            h0.astype(jnp.bfloat16), whh0, preferred_element_type=jnp.float32)
        h0, c0 = gates_to_hc(g0, c0)
        # layer 1: single fused bf16 matmul over [h0_new, h1]
        hcat = jnp.concatenate([h0, h1], axis=1).astype(jnp.bfloat16)
        g1 = jnp.dot(hcat, w1, preferred_element_type=jnp.float32)
        h1, c1 = gates_to_hc(g1, c1)
        h1_sc[pl.ds(t, 1), :] = h1
        return (h0, c0, h1, c1)

    z = jnp.zeros((1, H), jnp.float32)
    # Full unroll is fine at this seq; at real sequence lengths use unroll=4..8.
    jax.lax.fori_loop(0, seq, step, (z, z, z, z), unroll=True)

    # ---- batched output head + single lane-dense store (OUT padded to 128k) ----
    y = jnp.maximum(h1_sc[...], 0.0).astype(jnp.bfloat16)               # relu
    out = jnp.tanh(jnp.dot(y, wfc_ref[...],
                           preferred_element_type=jnp.float32) + bfc_ref[...])
    out_ref[...] = out.astype(out_ref.dtype)


def prepare_params(params, out_pad):
    """One-time weight prep: concat layer-1 weights, bf16 casts, output padding."""
    wih0, whh0, wih1, whh1, wfc, bfc = params
    out_dim = wfc.shape[1]
    pad = out_pad - out_dim
    w1 = jnp.concatenate([wih1, whh1], axis=0)            # (2H, 4H)
    return {
        "wih0": wih0,                                      # f32, used only in wrapper GEMM
        "whh0": whh0.astype(jnp.bfloat16),                 # (H, 4H)
        "w1": w1.astype(jnp.bfloat16),                     # (2H, 4H)
        "wfc": jnp.pad(wfc, ((0, 0), (0, pad))).astype(jnp.bfloat16),  # (H, OUT_pad)
        "bfc": jnp.pad(bfc, ((0, 0), (0, pad))),           # (1, OUT_pad) f32
        "out_dim": out_dim,
    }


def generator_forward(x, prepped):
    """x: (seq, z_dim) float32 -> (seq, 1, out_dim) float32."""
    seq = x.shape[0]
    hidden = prepped["whh0"].shape[0]
    out_pad = prepped["wfc"].shape[1]
    out_dim = prepped["out_dim"]

    # Hoisted once-only layer-0 input projection: (seq, Z) @ (Z, 4H) in plain XLA.
    xproj = jnp.dot(x, prepped["wih0"], preferred_element_type=jnp.float32)

    kernel = functools.partial(generator_kernel, hidden=hidden, seq=seq)
    vmem = pl.BlockSpec(memory_space=pltpu.MemorySpace.VMEM)

    out2d = pl.pallas_call(
        kernel,
        out_shape=jax.ShapeDtypeStruct((seq, out_pad), jnp.float32),
        in_specs=[vmem, vmem, vmem, vmem, vmem],   # whole arrays resident in VMEM
        out_specs=vmem,
        scratch_shapes=[
            pltpu.VMEM((seq, hidden), jnp.float32),        # h1 for all timesteps
        ],
        compiler_params=pltpu.CompilerParams(
            # Toy config fits trivially; re-budget for real sizes (bf16 resident set).
            vmem_limit_bytes=32 * 1024 * 1024,
        ),
    )(xproj, prepped["whh0"], prepped["w1"], prepped["wfc"], prepped["bfc"])

    # match PyTorch output shape (seq, batch=1, out_dim); drop lane padding
    return out2d[:, None, :out_dim]


def init_params(key, z_dim, hidden, out_dim):
    """Deterministic parameter init; weights stored pre-transposed for x @ W."""
    ks = jax.random.split(key, 6)
    s = 1.0 / jnp.sqrt(hidden)
    u = lambda k, shape: jax.random.uniform(k, shape, jnp.float32, -s, s)
    wih0 = u(ks[0], (z_dim, 4 * hidden))   # layer0 W_ih^T
    whh0 = u(ks[1], (hidden, 4 * hidden))  # layer0 W_hh^T
    wih1 = u(ks[2], (hidden, 4 * hidden))  # layer1 W_ih^T
    whh1 = u(ks[3], (hidden, 4 * hidden))  # layer1 W_hh^T
    wfc = u(ks[4], (hidden, out_dim))      # fc_G weight^T
    bfc = u(ks[5], (1, out_dim))           # fc_G bias
    return wih0, whh0, wih1, whh1, wfc, bfc


def reference_forward(x, params):
    """Pure-JAX f32 reference of the same forward pass (for verification)."""
    wih0, whh0, wih1, whh1, wfc, bfc = params
    hidden = whh0.shape[0]

    def cell(x_in, h, c, wih, whh):
        g = x_in @ wih + h @ whh
        i = jax.nn.sigmoid(g[:, 0 * hidden:1 * hidden])
        f = jax.nn.sigmoid(g[:, 1 * hidden:2 * hidden])
        gg = jnp.tanh(g[:, 2 * hidden:3 * hidden])
        o = jax.nn.sigmoid(g[:, 3 * hidden:4 * hidden])
        c_new = f * c + i * gg
        return o * jnp.tanh(c_new), c_new

    def step(carry, x_t):
        h0, c0, h1, c1 = carry
        h0, c0 = cell(x_t[None, :], h0, c0, wih0, whh0)
        h1, c1 = cell(h0, h1, c1, wih1, whh1)
        y = jnp.tanh(jnp.maximum(h1, 0.0) @ wfc + bfc)
        return (h0, c0, h1, c1), y[0]

    z = jnp.zeros((1, hidden), jnp.float32)
    _, ys = jax.lax.scan(step, (z, z, z, z), x)
    return ys[:, None, :]


if __name__ == "__main__":
    # scaled-down but structurally identical config (real module: z_dim=1028, H=600, out=999)
    SEQ, Z_DIM, HIDDEN, OUT_DIM = 8, 64, 128, 96
    OUT_PAD = 128  # lane-dense padded output width (999 -> 1024 at real size)

    key = jax.random.PRNGKey(0)
    kx, kp = jax.random.split(key)
    x = jax.random.normal(kx, (SEQ, Z_DIM), jnp.float32)
    params = init_params(kp, Z_DIM, HIDDEN, OUT_DIM)
    prepped = prepare_params(params, OUT_PAD)

    out = generator_forward(x, prepped)
    out = jax.block_until_ready(out)

    ref = jax.block_until_ready(reference_forward(x, params))
    assert out.shape == (SEQ, 1, OUT_DIM), out.shape
    # bf16 weight/activation streaming vs. f32 reference -> loosened tolerance.
    max_err = float(jnp.max(jnp.abs(out - ref)))
    assert max_err < 4e-2, max_err

    print("KERNEL_OK")
</pallas_src>

<mosaic_0001>
module attributes {stable_mosaic.version = 11 : i64} {
  func.func @generator_kernel(%arg0: memref<8x512xf32, #tpu.memory_space<vmem>>, %arg1: memref<128x512xbf16, #tpu.memory_space<vmem>>, %arg2: memref<256x512xbf16, #tpu.memory_space<vmem>>, %arg3: memref<128x128xbf16, #tpu.memory_space<vmem>>, %arg4: memref<1x128xf32, #tpu.memory_space<vmem>>, %arg5: memref<8x128xf32, #tpu.memory_space<vmem>>, %arg6: memref<8x128xf32, #tpu.memory_space<vmem>>) attributes {dimension_semantics = [], scalar_prefetch = 0 : i64, scratch_operands = 1 : i64, tpu.core_type = #tpu.core_type<tc>} {
    %c0 = arith.constant 0 : index
    %c0_0 = arith.constant 0 : index
    %0 = vector.load %arg1[%c0, %c0_0] : memref<128x512xbf16, #tpu.memory_space<vmem>>, vector<128x512xbf16>
    %c0_1 = arith.constant 0 : index
    %c0_2 = arith.constant 0 : index
    %1 = vector.load %arg2[%c0_1, %c0_2] : memref<256x512xbf16, #tpu.memory_space<vmem>>, vector<256x512xbf16>
    %cst = arith.constant 0.000000e+00 : f32
    %2 = vector.broadcast %cst : f32 to vector<1x128xf32>
    %c0_i32 = arith.constant 0 : i32
    %3 = arith.index_cast %c0_i32 : i32 to index
    %c0_3 = arith.constant 0 : index
    %4 = vector.load %arg0[%3, %c0_3] : memref<8x512xf32, #tpu.memory_space<vmem>>, vector<1x512xf32>
    %5 = arith.truncf %2 : vector<1x128xf32> to vector<1x128xbf16>
    %cst_4 = arith.constant dense<0.000000e+00> : vector<1x512xf32>
    %6 = tpu.matmul %5, %0, %cst_4 {dimension_numbers = #tpu.dot_dimension_numbers<[1], [0], [0], [1], [0, 0, 1, 1], [], []>} : vector<1x128xbf16>, vector<128x512xbf16>, vector<1x512xf32> -> vector<1x512xf32>
    %7 = arith.addf %4, %6 : vector<1x512xf32>
    %8 = vector.extract_strided_slice %7 {offsets = [0, 0], sizes = [1, 128], strides = [1, 1]} : vector<1x512xf32> to vector<1x128xf32>
    %9 = arith.negf %8 : vector<1x128xf32>
    %10 = math.exp %9 : vector<1x128xf32>
    %cst_5 = arith.constant 1.000000e+00 : f32
    %11 = vector.broadcast %cst_5 : f32 to vector<1x128xf32>
    %12 = arith.addf %11, %10 : vector<1x128xf32>
    %13 = arith.divf %11, %12 : vector<1x128xf32>
    %14 = vector.extract_strided_slice %7 {offsets = [0, 128], sizes = [1, 128], strides = [1, 1]} : vector<1x512xf32> to vector<1x128xf32>
    %15 = arith.negf %14 : vector<1x128xf32>
    %16 = math.exp %15 : vector<1x128xf32>
    %cst_6 = arith.constant 1.000000e+00 : f32
    %17 = vector.broadcast %cst_6 : f32 to vector<1x128xf32>
    %18 = arith.addf %17, %16 : vector<1x128xf32>
    %19 = arith.divf %17, %18 : vector<1x128xf32>
    %20 = vector.extract_strided_slice %7 {offsets = [0, 256], sizes = [1, 128], strides = [1, 1]} : vector<1x512xf32> to vector<1x128xf32>
    %21 = math.tanh %20 : vector<1x128xf32>
    %22 = vector.extract_strided_slice %7 {offsets = [0, 384], sizes = [1, 128], strides = [1, 1]} : vector<1x512xf32> to vector<1x128xf32>
    %23 = arith.negf %22 : vector<1x128xf32>
    %24 = math.exp %23 : vector<1x128xf32>
    %cst_7 = arith.constant 1.000000e+00 : f32
    %25 = vector.broadcast %cst_7 : f32 to vector<1x128xf32>
    %26 = arith.addf %25, %24 : vector<1x128xf32>
    %27 = arith.divf %25, %26 : vector<1x128xf32>
    %28 = arith.mulf %19, %2 : vector<1x128xf32>
    %29 = arith.mulf %13, %21 : vector<1x128xf32>
    %30 = arith.addf %28, %29 : vector<1x128xf32>
    %31 = math.tanh %30 : vector<1x128xf32>
    %32 = arith.mulf %27, %31 : vector<1x128xf32>
    %33 = tpu.concatenate %32, %2 in 1 : vector<1x128xf32>, vector<1x128xf32> -> vector<1x256xf32>
    %34 = arith.truncf %33 : vector<1x256xf32> to vector<1x256xbf16>
    %cst_8 = arith.constant dense<0.000000e+00> : vector<1x512xf32>
    %35 = tpu.matmul %34, %1, %cst_8 {dimension_numbers = #tpu.dot_dimension_numbers<[1], [0], [0], [1], [0, 0, 1, 1], [], []>} : vector<1x256xbf16>, vector<256x512xbf16>, vector<1x512xf32> -> vector<1x512xf32>
    %36 = vector.extract_strided_slice %35 {offsets = [0, 0], sizes = [1, 128], strides = [1, 1]} : vector<1x512xf32> to vector<1x128xf32>
    %37 = arith.negf %36 : vector<1x128xf32>
    %38 = math.exp %37 : vector<1x128xf32>
    %cst_9 = arith.constant 1.000000e+00 : f32
    %39 = vector.broadcast %cst_9 : f32 to vector<1x128xf32>
    %40 = arith.addf %39, %38 : vector<1x128xf32>
    %41 = arith.divf %39, %40 : vector<1x128xf32>
    %42 = vector.extract_strided_slice %35 {offsets = [0, 128], sizes = [1, 128], strides = [1, 1]} : vector<1x512xf32> to vector<1x128xf32>
    %43 = arith.negf %42 : vector<1x128xf32>
    %44 = math.exp %43 : vector<1x128xf32>
    %cst_10 = arith.constant 1.000000e+00 : f32
    %45 = vector.broadcast %cst_10 : f32 to vector<1x128xf32>
    %46 = arith.addf %45, %44 : vector<1x128xf32>
    %47 = arith.divf %45, %46 : vector<1x128xf32>
    %48 = vector.extract_strided_slice %35 {offsets = [0, 256], sizes = [1, 128], strides = [1, 1]} : vector<1x512xf32> to vector<1x128xf32>
    %49 = math.tanh %48 : vector<1x128xf32>
    %50 = vector.extract_strided_slice %35 {offsets = [0, 384], sizes = [1, 128], strides = [1, 1]} : vector<1x512xf32> to vector<1x128xf32>
    %51 = arith.negf %50 : vector<1x128xf32>
    %52 = math.exp %51 : vector<1x128xf32>
    %cst_11 = arith.constant 1.000000e+00 : f32
    %53 = vector.broadcast %cst_11 : f32 to vector<1x128xf32>
    %54 = arith.addf %53, %52 : vector<1x128xf32>
    %55 = arith.divf %53, %54 : vector<1x128xf32>
    %56 = arith.mulf %47, %2 : vector<1x128xf32>
    %57 = arith.mulf %41, %49 : vector<1x128xf32>
    %58 = arith.addf %56, %57 : vector<1x128xf32>
    %59 = math.tanh %58 : vector<1x128xf32>
    %60 = arith.mulf %55, %59 : vector<1x128xf32>
    %61 = arith.index_cast %c0_i32 : i32 to index
    %c0_12 = arith.constant 0 : index
    %62 = vector.load %arg6[%61, %c0_12] : memref<8x128xf32, #tpu.memory_space<vmem>>, vector<1x128xf32>
    tpu.vector_store %arg6[%61, %c0_12], %60 {strides = array<i32>} : memref<8x128xf32, #tpu.memory_space<vmem>>, vector<1x128xf32>,
    %c1_i32 = arith.constant 1 : i32
    %63 = arith.index_cast %c1_i32 : i32 to index
    %c0_13 = arith.constant 0 : index
    %64 = vector.load %arg0[%63, %c0_13] : memref<8x512xf32, #tpu.memory_space<vmem>>, vector<1x512xf32>
    %65 = arith.truncf %32 : vector<1x128xf32> to vector<1x128xbf16>
    %cst_14 = arith.constant dense<0.000000e+00> : vector<1x512xf32>
    %66 = tpu.matmul %65, %0, %cst_14 {dimension_numbers = #tpu.dot_dimension_numbers<[1], [0], [0], [1], [0, 0, 1, 1], [], []>} : vector<1x128xbf16>, vector<128x512xbf16>, vector<1x512xf32> -> vector<1x512xf32>
    %67 = arith.addf %64, %66 : vector<1x512xf32>
    %68 = vector.extract_strided_slice %67 {offsets = [0, 0], sizes = [1, 128], strides = [1, 1]} : vector<1x512xf32> to vector<1x128xf32>
    %69 = arith.negf %68 : vector<1x128xf32>
    %70 = math.exp %69 : vector<1x128xf32>
    %cst_15 = arith.constant 1.000000e+00 : f32
    %71 = vector.broadcast %cst_15 : f32 to vector<1x128xf32>
    %72 = arith.addf %71, %70 : vector<1x128xf32>
    %73 = arith.divf %71, %72 : vector<1x128xf32>
    %74 = vector.extract_strided_slice %67 {offsets = [0, 128], sizes = [1, 128], strides = [1, 1]} : vector<1x512xf32> to vector<1x128xf32>
    %75 = arith.negf %74 : vector<1x128xf32>
    %76 = math.exp %75 : vector<1x128xf32>
    %cst_16 = arith.constant 1.000000e+00 : f32
    %77 = vector.broadcast %cst_16 : f32 to vector<1x128xf32>
    %78 = arith.addf %77, %76 : vector<1x128xf32>
    %79 = arith.divf %77, %78 : vector<1x128xf32>
    %80 = vector.extract_strided_slice %67 {offsets = [0, 256], sizes = [1, 128], strides = [1, 1]} : vector<1x512xf32> to vector<1x128xf32>
    %81 = math.tanh %80 : vector<1x128xf32>
    %82 = vector.extract_strided_slice %67 {offsets = [0, 384], sizes = [1, 128], strides = [1, 1]} : vector<1x512xf32> to vector<1x128xf32>
    %83 = arith.negf %82 : vector<1x128xf32>
    %84 = math.exp %83 : vector<1x128xf32>
    %cst_17 = arith.constant 1.000000e+00 : f32
    %85 = vector.broadcast %cst_17 : f32 to vector<1x128xf32>
    %86 = arith.addf %85, %84 : vector<1x128xf32>
    %87 = arith.divf %85, %86 : vector<1x128xf32>
    %88 = arith.mulf %79, %30 : vector<1x128xf32>
    %89 = arith.mulf %73, %81 : vector<1x128xf32>
    %90 = arith.addf %88, %89 : vector<1x128xf32>
    %91 = math.tanh %90 : vector<1x128xf32>
    %92 = arith.mulf %87, %91 : vector<1x128xf32>
    %93 = tpu.concatenate %92, %60 in 1 : vector<1x128xf32>, vector<1x128xf32> -> vector<1x256xf32>
    %94 = arith.truncf %93 : vector<1x256xf32> to vector<1x256xbf16>
    %cst_18 = arith.constant dense<0.000000e+00> : vector<1x512xf32>
    %95 = tpu.matmul %94, %1, %cst_18 {dimension_numbers = #tpu.dot_dimension_numbers<[1], [0], [0], [1], [0, 0, 1, 1], [], []>} : vector<1x256xbf16>, vector<256x512xbf16>, vector<1x512xf32> -> vector<1x512xf32>
    %96 = vector.extract_strided_slice %95 {offsets = [0, 0], sizes = [1, 128], strides = [1, 1]} : vector<1x512xf32> to vector<1x128xf32>
    %97 = arith.negf %96 : vector<1x128xf32>
    %98 = math.exp %97 : vector<1x128xf32>
    %cst_19 = arith.constant 1.000000e+00 : f32
    %99 = vector.broadcast %cst_19 : f32 to vector<1x128xf32>
    %100 = arith.addf %99, %98 : vector<1x128xf32>
    %101 = arith.divf %99, %100 : vector<1x128xf32>
    %102 = vector.extract_strided_slice %95 {offsets = [0, 128], sizes = [1, 128], strides = [1, 1]} : vector<1x512xf32> to vector<1x128xf32>
    %103 = arith.negf %102 : vector<1x128xf32>
    %104 = math.exp %103 : vector<1x128xf32>
    %cst_20 = arith.constant 1.000000e+00 : f32
    %105 = vector.broadcast %cst_20 : f32 to vector<1x128xf32>
    %106 = arith.addf %105, %104 : vector<1x128xf32>
    %107 = arith.divf %105, %106 : vector<1x128xf32>
    %108 = vector.extract_strided_slice %95 {offsets = [0, 256], sizes = [1, 128], strides = [1, 1]} : vector<1x512xf32> to vector<1x128xf32>
    %109 = math.tanh %108 : vector<1x128xf32>
    %110 = vector.extract_strided_slice %95 {offsets = [0, 384], sizes = [1, 128], strides = [1, 1]} : vector<1x512xf32> to vector<1x128xf32>
    %111 = arith.negf %110 : vector<1x128xf32>
    %112 = math.exp %111 : vector<1x128xf32>
    %cst_21 = arith.constant 1.000000e+00 : f32
    %113 = vector.broadcast %cst_21 : f32 to vector<1x128xf32>
    %114 = arith.addf %113, %112 : vector<1x128xf32>
    %115 = arith.divf %113, %114 : vector<1x128xf32>
    %116 = arith.mulf %107, %58 : vector<1x128xf32>
    %117 = arith.mulf %101, %109 : vector<1x128xf32>
    %118 = arith.addf %116, %117 : vector<1x128xf32>
    %119 = math.tanh %118 : vector<1x128xf32>
    %120 = arith.mulf %115, %119 : vector<1x128xf32>
    %121 = arith.index_cast %c1_i32 : i32 to index
    %c0_22 = arith.constant 0 : index
    %122 = vector.load %arg6[%121, %c0_22] : memref<8x128xf32, #tpu.memory_space<vmem>>, vector<1x128xf32>
    tpu.vector_store %arg6[%121, %c0_22], %120 {strides = array<i32>} : memref<8x128xf32, #tpu.memory_space<vmem>>, vector<1x128xf32>,
    %c2_i32 = arith.constant 2 : i32
    %123 = arith.index_cast %c2_i32 : i32 to index
    %c0_23 = arith.constant 0 : index
    %124 = vector.load %arg0[%123, %c0_23] : memref<8x512xf32, #tpu.memory_space<vmem>>, vector<1x512xf32>
    %125 = arith.truncf %92 : vector<1x128xf32> to vector<1x128xbf16>
    %cst_24 = arith.constant dense<0.000000e+00> : vector<1x512xf32>
    %126 = tpu.matmul %125, %0, %cst_24 {dimension_numbers = #tpu.dot_dimension_numbers<[1], [0], [0], [1], [0, 0, 1, 1], [], []>} : vector<1x128xbf16>, vector<128x512xbf16>, vector<1x512xf32> -> vector<1x512xf32>
    %127 = arith.addf %124, %126 : vector<1x512xf32>
    %128 = vector.extract_strided_slice %127 {offsets = [0, 0], sizes = [1, 128], strides = [1, 1]} : vector<1x512xf32> to vector<1x128xf32>
    %129 = arith.negf %128 : vector<1x128xf32>
    %130 = math.exp %129 : vector<1x128xf32>
    %cst_25 = arith.constant 1.000000e+00 : f32
    %131 = vector.broadcast %cst_25 : f32 to vector<1x128xf32>
    %132 = arith.addf %131, %130 : vector<1x128xf32>
    %133 = arith.divf %131, %132 : vector<1x128xf32>
    %134 = vector.extract_strided_slice %127 {offsets = [0, 128], sizes = [1, 128], strides = [1, 1]} : vector<1x512xf32> to vector<1x128xf32>
    %135 = arith.negf %134 : vector<1x128xf32>
    %136 = math.exp %135 : vector<1x128xf32>
    %cst_26 = arith.constant 1.000000e+00 : f32
    %137 = vector.broadcast %cst_26 : f32 to vector<1x128xf32>
    %138 = arith.addf %137, %136 : vector<1x128xf32>
    %139 = arith.divf %137, %138 : vector<1x128xf32>
    %140 = vector.extract_strided_slice %127 {offsets = [0, 256], sizes = [1, 128], strides = [1, 1]} : vector<1x512xf32> to vector<1x128xf32>
    %141 = math.tanh %140 : vector<1x128xf32>
    %142 = vector.extract_strided_slice %127 {offsets = [0, 384], sizes = [1, 128], strides = [1, 1]} : vector<1x512xf32> to vector<1x128xf32>
    %143 = arith.negf %142 : vector<1x128xf32>
    %144 = math.exp %143 : vector<1x128xf32>
    %cst_27 = arith.constant 1.000000e+00 : f32
    %145 = vector.broadcast %cst_27 : f32 to vector<1x128xf32>
    %146 = arith.addf %145, %144 : vector<1x128xf32>
    %147 = arith.divf %145, %146 : vector<1x128xf32>
    %148 = arith.mulf %139, %90 : vector<1x128xf32>
    %149 = arith.mulf %133, %141 : vector<1x128xf32>
    %150 = arith.addf %148, %149 : vector<1x128xf32>
    %151 = math.tanh %150 : vector<1x128xf32>
    %152 = arith.mulf %147, %151 : vector<1x128xf32>
    %153 = tpu.concatenate %152, %120 in 1 : vector<1x128xf32>, vector<1x128xf32> -> vector<1x256xf32>
    %154 = arith.truncf %153 : vector<1x256xf32> to vector<1x256xbf16>
    %cst_28 = arith.constant dense<0.000000e+00> : vector<1x512xf32>
    %155 = tpu.matmul %154, %1, %cst_28 {dimension_numbers = #tpu.dot_dimension_numbers<[1], [0], [0], [1], [0, 0, 1, 1], [], []>} : vector<1x256xbf16>, vector<256x512xbf16>, vector<1x512xf32> -> vector<1x512xf32>
    %156 = vector.extract_strided_slice %155 {offsets = [0, 0], sizes = [1, 128], strides = [1, 1]} : vector<1x512xf32> to vector<1x128xf32>
    %157 = arith.negf %156 : vector<1x128xf32>
    %158 = math.exp %157 : vector<1x128xf32>
    %cst_29 = arith.constant 1.000000e+00 : f32
    %159 = vector.broadcast %cst_29 : f32 to vector<1x128xf32>
    %160 = arith.addf %159, %158 : vector<1x128xf32>
    %161 = arith.divf %159, %160 : vector<1x128xf32>
    %162 = vector.extract_strided_slice %155 {offsets = [0, 128], sizes = [1, 128], strides = [1, 1]} : vector<1x512xf32> to vector<1x128xf32>
    %163 = arith.negf %162 : vector<1x128xf32>
    %164 = math.exp %163 : vector<1x128xf32>
    %cst_30 = arith.constant 1.000000e+00 : f32
    %165 = vector.broadcast %cst_30 : f32 to vector<1x128xf32>
    %166 = arith.addf %165, %164 : vector<1x128xf32>
    %167 = arith.divf %165, %166 : vector<1x128xf32>
    %168 = vector.extract_strided_slice %155 {offsets = [0, 256], sizes = [1, 128], strides = [1, 1]} : vector<1x512xf32> to vector<1x128xf32>
    %169 = math.tanh %168 : vector<1x128xf32>
    %170 = vector.extract_strided_slice %155 {offsets = [0, 384], sizes = [1, 128], strides = [1, 1]} : vector<1x512xf32> to vector<1x128xf32>
    %171 = arith.negf %170 : vector<1x128xf32>
    %172 = math.exp %171 : vector<1x128xf32>
    %cst_31 = arith.constant 1.000000e+00 : f32
    %173 = vector.broadcast %cst_31 : f32 to vector<1x128xf32>
    %174 = arith.addf %173, %172 : vector<1x128xf32>
    %175 = arith.divf %173, %174 : vector<1x128xf32>
    %176 = arith.mulf %167, %118 : vector<1x128xf32>
    %177 = arith.mulf %161, %169 : vector<1x128xf32>
    %178 = arith.addf %176, %177 : vector<1x128xf32>
    %179 = math.tanh %178 : vector<1x128xf32>
    %180 = arith.mulf %175, %179 : vector<1x128xf32>
    %181 = arith.index_cast %c2_i32 : i32 to index
    %c0_32 = arith.constant 0 : index
    %182 = vector.load %arg6[%181, %c0_32] : memref<8x128xf32, #tpu.memory_space<vmem>>, vector<1x128xf32>
    tpu.vector_store %arg6[%181, %c0_32], %180 {strides = array<i32>} : memref<8x128xf32, #tpu.memory_space<vmem>>, vector<1x128xf32>,
    %c3_i32 = arith.constant 3 : i32
    %183 = arith.index_cast %c3_i32 : i32 to index
    %c0_33 = arith.constant 0 : index
    %184 = vector.load %arg0[%183, %c0_33] : memref<8x512xf32, #tpu.memory_space<vmem>>, vector<1x512xf32>
    %185 = arith.truncf %152 : vector<1x128xf32> to vector<1x128xbf16>
    %cst_34 = arith.constant dense<0.000000e+00> : vector<1x512xf32>
    %186 = tpu.matmul %185, %0, %cst_34 {dimension_numbers = #tpu.dot_dimension_numbers<[1], [0], [0], [1], [0, 0, 1, 1], [], []>} : vector<1x128xbf16>, vector<128x512xbf16>, vector<1x512xf32> -> vector<1x512xf32>
    %187 = arith.addf %184, %186 : vector<1x512xf32>
    %188 = vector.extract_strided_slice %187 {offsets = [0, 0], sizes = [1, 128], strides = [1, 1]} : vector<1x512xf32> to vector<1x128xf32>
    %189 = arith.negf %188 : vector<1x128xf32>
    %190 = math.exp %189 : vector<1x128xf32>
    %cst_35 = arith.constant 1.000000e+00 : f32
    %191 = vector.broadcast %cst_35 : f32 to vector<1x128xf32>
    %192 = arith.addf %191, %190 : vector<1x128xf32>
    %193 = arith.divf %191, %192 : vector<1x128xf32>
    %194 = vector.extract_strided_slice %187 {offsets = [0, 128], sizes = [1, 128], strides = [1, 1]} : vector<1x512xf32> to vector<1x128xf32>
    %195 = arith.negf %194 : vector<1x128xf32>
    %196 = math.exp %195 : vector<1x128xf32>
    %cst_36 = arith.constant 1.000000e+00 : f32
    %197 = vector.broadcast %cst_36 : f32 to vector<1x128xf32>
    %198 = arith.addf %197, %196 : vector<1x128xf32>
    %199 = arith.divf %197, %198 : vector<1x128xf32>
    %200 = vector.extract_strided_slice %187 {offsets = [0, 256], sizes = [1, 128], strides = [1, 1]} : vector<1x512xf32> to vector<1x128xf32>
    %201 = math.tanh %200 : vector<1x128xf32>
    %202 = vector.extract_strided_slice %187 {offsets = [0, 384], sizes = [1, 128], strides = [1, 1]} : vector<1x512xf32> to vector<1x128xf32>
    %203 = arith.negf %202 : vector<1x128xf32>
    %204 = math.exp %203 : vector<1x128xf32>
    %cst_37 = arith.constant 1.000000e+00 : f32
    %205 = vector.broadcast %cst_37 : f32 to vector<1x128xf32>
    %206 = arith.addf %205, %204 : vector<1x128xf32>
    %207 = arith.divf %205, %206 : vector<1x128xf32>
    %208 = arith.mulf %199, %150 : vector<1x128xf32>
    %209 = arith.mulf %193, %201 : vector<1x128xf32>
    %210 = arith.addf %208, %209 : vector<1x128xf32>
    %211 = math.tanh %210 : vector<1x128xf32>
    %212 = arith.mulf %207, %211 : vector<1x128xf32>
    %213 = tpu.concatenate %212, %180 in 1 : vector<1x128xf32>, vector<1x128xf32> -> vector<1x256xf32>
    %214 = arith.truncf %213 : vector<1x256xf32> to vector<1x256xbf16>
    %cst_38 = arith.constant dense<0.000000e+00> : vector<1x512xf32>
    %215 = tpu.matmul %214, %1, %cst_38 {dimension_numbers = #tpu.dot_dimension_numbers<[1], [0], [0], [1], [0, 0, 1, 1], [], []>} : vector<1x256xbf16>, vector<256x512xbf16>, vector<1x512xf32> -> vector<1x512xf32>
    %216 = vector.extract_strided_slice %215 {offsets = [0, 0], sizes = [1, 128], strides = [1, 1]} : vector<1x512xf32> to vector<1x128xf32>
    %217 = arith.negf %216 : vector<1x128xf32>
    %218 = math.exp %217 : vector<1x128xf32>
    %cst_39 = arith.constant 1.000000e+00 : f32
    %219 = vector.broadcast %cst_39 : f32 to vector<1x128xf32>
    %220 = arith.addf %219, %218 : vector<1x128xf32>
    %221 = arith.divf %219, %220 : vector<1x128xf32>
    %222 = vector.extract_strided_slice %215 {offsets = [0, 128], sizes = [1, 128], strides = [1, 1]} : vector<1x512xf32> to vector<1x128xf32>
    %223 = arith.negf %222 : vector<1x128xf32>
    %224 = math.exp %223 : vector<1x128xf32>
    %cst_40 = arith.constant 1.000000e+00 : f32
    %225 = vector.broadcast %cst_40 : f32 to vector<1x128xf32>
    %226 = arith.addf %225, %224 : vector<1x128xf32>
    %227 = arith.divf %225, %226 : vector<1x128xf32>
    %228 = vector.extract_strided_slice %215 {offsets = [0, 256], sizes = [1, 128], strides = [1, 1]} : vector<1x512xf32> to vector<1x128xf32>
    %229 = math.tanh %228 : vector<1x128xf32>
    %230 = vector.extract_strided_slice %215 {offsets = [0, 384], sizes = [1, 128], strides = [1, 1]} : vector<1x512xf32> to vector<1x128xf32>
    %231 = arith.negf %230 : vector<1x128xf32>
    %232 = math.exp %231 : vector<1x128xf32>
    %cst_41 = arith.constant 1.000000e+00 : f32
    %233 = vector.broadcast %cst_41 : f32 to vector<1x128xf32>
    %234 = arith.addf %233, %232 : vector<1x128xf32>
    %235 = arith.divf %233, %234 : vector<1x128xf32>
    %236 = arith.mulf %227, %178 : vector<1x128xf32>
    %237 = arith.mulf %221, %229 : vector<1x128xf32>
    %238 = arith.addf %236, %237 : vector<1x128xf32>
    %239 = math.tanh %238 : vector<1x128xf32>
    %240 = arith.mulf %235, %239 : vector<1x128xf32>
    %241 = arith.index_cast %c3_i32 : i32 to index
    %c0_42 = arith.constant 0 : index
    %242 = vector.load %arg6[%241, %c0_42] : memref<8x128xf32, #tpu.memory_space<vmem>>, vector<1x128xf32>
    tpu.vector_store %arg6[%241, %c0_42], %240 {strides = array<i32>} : memref<8x128xf32, #tpu.memory_space<vmem>>, vector<1x128xf32>,
    %c4_i32 = arith.constant 4 : i32
    %243 = arith.index_cast %c4_i32 : i32 to index
    %c0_43 = arith.constant 0 : index
    %244 = vector.load %arg0[%243, %c0_43] : memref<8x512xf32, #tpu.memory_space<vmem>>, vector<1x512xf32>
    %245 = arith.truncf %212 : vector<1x128xf32> to vector<1x128xbf16>
    %cst_44 = arith.constant dense<0.000000e+00> : vector<1x512xf32>
    %246 = tpu.matmul %245, %0, %cst_44 {dimension_numbers = #tpu.dot_dimension_numbers<[1], [0], [0], [1], [0, 0, 1, 1], [], []>} : vector<1x128xbf16>, vector<128x512xbf16>, vector<1x512xf32> -> vector<1x512xf32>
    %247 = arith.addf %244, %246 : vector<1x512xf32>
    %248 = vector.extract_strided_slice %247 {offsets = [0, 0], sizes = [1, 128], strides = [1, 1]} : vector<1x512xf32> to vector<1x128xf32>
    %249 = arith.negf %248 : vector<1x128xf32>
    %250 = math.exp %249 : vector<1x128xf32>
    %cst_45 = arith.constant 1.000000e+00 : f32
    %251 = vector.broadcast %cst_45 : f32 to vector<1x128xf32>
    %252 = arith.addf %251, %250 : vector<1x128xf32>
    %253 = arith.divf %251, %252 : vector<1x128xf32>
    %254 = vector.extract_strided_slice %247 {offsets = [0, 128], sizes = [1, 128], strides = [1, 1]} : vector<1x512xf32> to vector<1x128xf32>
    %255 = arith.negf %254 : vector<1x128xf32>
    %256 = math.exp %255 : vector<1x128xf32>
    %cst_46 = arith.constant 1.000000e+00 : f32
    %257 = vector.broadcast %cst_46 : f32 to vector<1x128xf32>
    %258 = arith.addf %257, %256 : vector<1x128xf32>
    %259 = arith.divf %257, %258 : vector<1x128xf32>
    %260 = vector.extract_strided_slice %247 {offsets = [0, 256], sizes = [1, 128], strides = [1, 1]} : vector<1x512xf32> to vector<1x128xf32>
    %261 = math.tanh %260 : vector<1x128xf32>
    %262 = vector.extract_strided_slice %247 {offsets = [0, 384], sizes = [1, 128], strides = [1, 1]} : vector<1x512xf32> to vector<1x128xf32>
    %263 = arith.negf %262 : vector<1x128xf32>
    %264 = math.exp %263 : vector<1x128xf32>
    %cst_47 = arith.constant 1.000000e+00 : f32
    %265 = vector.broadcast %cst_47 : f32 to vector<1x128xf32>
    %266 = arith.addf %265, %264 : vector<1x128xf32>
    %267 = arith.divf %265, %266 : vector<1x128xf32>
    %268 = arith.mulf %259, %210 : vector<1x128xf32>
    %269 = arith.mulf %253, %261 : vector<1x128xf32>
    %270 = arith.addf %268, %269 : vector<1x128xf32>
    %271 = math.tanh %270 : vector<1x128xf32>
    %272 = arith.mulf %267, %271 : vector<1x128xf32>
    %273 = tpu.concatenate %272, %240 in 1 : vector<1x128xf32>, vector<1x128xf32> -> vector<1x256xf32>
    %274 = arith.truncf %273 : vector<1x256xf32> to vector<1x256xbf16>
    %cst_48 = arith.constant dense<0.000000e+00> : vector<1x512xf32>
    %275 = tpu.matmul %274, %1, %cst_48 {dimension_numbers = #tpu.dot_dimension_numbers<[1], [0], [0], [1], [0, 0, 1, 1], [], []>} : vector<1x256xbf16>, vector<256x512xbf16>, vector<1x512xf32> -> vector<1x512xf32>
    %276 = vector.extract_strided_slice %275 {offsets = [0, 0], sizes = [1, 128], strides = [1, 1]} : vector<1x512xf32> to vector<1x128xf32>
    %277 = arith.negf %276 : vector<1x128xf32>
    %278 = math.exp %277 : vector<1x128xf32>
    %cst_49 = arith.constant 1.000000e+00 : f32
    %279 = vector.broadcast %cst_49 : f32 to vector<1x128xf32>
    %280 = arith.addf %279, %278 : vector<1x128xf32>
    %281 = arith.divf %279, %280 : vector<1x128xf32>
    %282 = vector.extract_strided_slice %275 {offsets = [0, 128], sizes = [1, 128], strides = [1, 1]} : vector<1x512xf32> to vector<1x128xf32>
    %283 = arith.negf %282 : vector<1x128xf32>
    %284 = math.exp %283 : vector<1x128xf32>
    %cst_50 = arith.constant 1.000000e+00 : f32
    %285 = vector.broadcast %cst_50 : f32 to vector<1x128xf32>
    %286 = arith.addf %285, %284 : vector<1x128xf32>
    %287 = arith.divf %285, %286 : vector<1x128xf32>
    %288 = vector.extract_strided_slice %275 {offsets = [0, 256], sizes = [1, 128], strides = [1, 1]} : vector<1x512xf32> to vector<1x128xf32>
    %289 = math.tanh %288 : vector<1x128xf32>
    %290 = vector.extract_strided_slice %275 {offsets = [0, 384], sizes = [1, 128], strides = [1, 1]} : vector<1x512xf32> to vector<1x128xf32>
    %291 = arith.negf %290 : vector<1x128xf32>
    %292 = math.exp %291 : vector<1x128xf32>
    %cst_51 = arith.constant 1.000000e+00 : f32
    %293 = vector.broadcast %cst_51 : f32 to vector<1x128xf32>
    %294 = arith.addf %293, %292 : vector<1x128xf32>
    %295 = arith.divf %293, %294 : vector<1x128xf32>
    %296 = arith.mulf %287, %238 : vector<1x128xf32>
    %297 = arith.mulf %281, %289 : vector<1x128xf32>
    %298 = arith.addf %296, %297 : vector<1x128xf32>
    %299 = math.tanh %298 : vector<1x128xf32>
    %300 = arith.mulf %295, %299 : vector<1x128xf32>
    %301 = arith.index_cast %c4_i32 : i32 to index
    %c0_52 = arith.constant 0 : index
    %302 = vector.load %arg6[%301, %c0_52] : memref<8x128xf32, #tpu.memory_space<vmem>>, vector<1x128xf32>
    tpu.vector_store %arg6[%301, %c0_52], %300 {strides = array<i32>} : memref<8x128xf32, #tpu.memory_space<vmem>>, vector<1x128xf32>,
    %c5_i32 = arith.constant 5 : i32
    %303 = arith.index_cast %c5_i32 : i32 to index
    %c0_53 = arith.constant 0 : index
    %304 = vector.load %arg0[%303, %c0_53] : memref<8x512xf32, #tpu.memory_space<vmem>>, vector<1x512xf32>
    %305 = arith.truncf %272 : vector<1x128xf32> to vector<1x128xbf16>
    %cst_54 = arith.constant dense<0.000000e+00> : vector<1x512xf32>
    %306 = tpu.matmul %305, %0, %cst_54 {dimension_numbers = #tpu.dot_dimension_numbers<[1], [0], [0], [1], [0, 0, 1, 1], [], []>} : vector<1x128xbf16>, vector<128x512xbf16>, vector<1x512xf32> -> vector<1x512xf32>
    %307 = arith.addf %304, %306 : vector<1x512xf32>
    %308 = vector.extract_strided_slice %307 {offsets = [0, 0], sizes = [1, 128], strides = [1, 1]} : vector<1x512xf32> to vector<1x128xf32>
    %309 = arith.negf %308 : vector<1x128xf32>
    %310 = math.exp %309 : vector<1x128xf32>
    %cst_55 = arith.constant 1.000000e+00 : f32
    %311 = vector.broadcast %cst_55 : f32 to vector<1x128xf32>
    %312 = arith.addf %311, %310 : vector<1x128xf32>
    %313 = arith.divf %311, %312 : vector<1x128xf32>
    %314 = vector.extract_strided_slice %307 {offsets = [0, 128], sizes = [1, 128], strides = [1, 1]} : vector<1x512xf32> to vector<1x128xf32>
    %315 = arith.negf %314 : vector<1x128xf32>
    %316 = math.exp %315 : vector<1x128xf32>
    %cst_56 = arith.constant 1.000000e+00 : f32
    %317 = vector.broadcast %cst_56 : f32 to vector<1x128xf32>
    %318 = arith.addf %317, %316 : vector<1x128xf32>
    %319 = arith.divf %317, %318 : vector<1x128xf32>
    %320 = vector.extract_strided_slice %307 {offsets = [0, 256], sizes = [1, 128], strides = [1, 1]} : vector<1x512xf32> to vector<1x128xf32>
    %321 = math.tanh %320 : vector<1x128xf32>
    %322 = vector.extract_strided_slice %307 {offsets = [0, 384], sizes = [1, 128], strides = [1, 1]} : vector<1x512xf32> to vector<1x128xf32>
    %323 = arith.negf %322 : vector<1x128xf32>
    %324 = math.exp %323 : vector<1x128xf32>
    %cst_57 = arith.constant 1.000000e+00 : f32
    %325 = vector.broadcast %cst_57 : f32 to vector<1x128xf32>
    %326 = arith.addf %325, %324 : vector<1x128xf32>
    %327 = arith.divf %325, %326 : vector<1x128xf32>
    %328 = arith.mulf %319, %270 : vector<1x128xf32>
    %329 = arith.mulf %313, %321 : vector<1x128xf32>
    %330 = arith.addf %328, %329 : vector<1x128xf32>
    %331 = math.tanh %330 : vector<1x128xf32>
    %332 = arith.mulf %327, %331 : vector<1x128xf32>
    %333 = tpu.concatenate %332, %300 in 1 : vector<1x128xf32>, vector<1x128xf32> -> vector<1x256xf32>
    %334 = arith.truncf %333 : vector<1x256xf32> to vector<1x256xbf16>
    %cst_58 = arith.constant dense<0.000000e+00> : vector<1x512xf32>
    %335 = tpu.matmul %334, %1, %cst_58 {dimension_numbers = #tpu.dot_dimension_numbers<[1], [0], [0], [1], [0, 0, 1, 1], [], []>} : vector<1x256xbf16>, vector<256x512xbf16>, vector<1x512xf32> -> vector<1x512xf32>
    %336 = vector.extract_strided_slice %335 {offsets = [0, 0], sizes = [1, 128], strides = [1, 1]} : vector<1x512xf32> to vector<1x128xf32>
    %337 = arith.negf %336 : vector<1x128xf32>
    %338 = math.exp %337 : vector<1x128xf32>
    %cst_59 = arith.constant 1.000000e+00 : f32
    %339 = vector.broadcast %cst_59 : f32 to vector<1x128xf32>
    %340 = arith.addf %339, %338 : vector<1x128xf32>
    %341 = arith.divf %339, %340 : vector<1x128xf32>
    %342 = vector.extract_strided_slice %335 {offsets = [0, 128], sizes = [1, 128], strides = [1, 1]} : vector<1x512xf32> to vector<1x128xf32>
    %343 = arith.negf %342 : vector<1x128xf32>
    %344 = math.exp %343 : vector<1x128xf32>
    %cst_60 = arith.constant 1.000000e+00 : f32
    %345 = vector.broadcast %cst_60 : f32 to vector<1x128xf32>
    %346 = arith.addf %345, %344 : vector<1x128xf32>
    %347 = arith.divf %345, %346 : vector<1x128xf32>
    %348 = vector.extract_strided_slice %335 {offsets = [0, 256], sizes = [1, 128], strides = [1, 1]} : vector<1x512xf32> to vector<1x128xf32>
    %349 = math.tanh %348 : vector<1x128xf32>
    %350 = vector.extract_strided_slice %335 {offsets = [0, 384], sizes = [1, 128], strides = [1, 1]} : vector<1x512xf32> to vector<1x128xf32>
    %351 = arith.negf %350 : vector<1x128xf32>
    %352 = math.exp %351 : vector<1x128xf32>
    %cst_61 = arith.constant 1.000000e+00 : f32
    %353 = vector.broadcast %cst_61 : f32 to vector<1x128xf32>
    %354 = arith.addf %353, %352 : vector<1x128xf32>
    %355 = arith.divf %353, %354 : vector<1x128xf32>
    %356 = arith.mulf %347, %298 : vector<1x128xf32>
    %357 = arith.mulf %341, %349 : vector<1x128xf32>
    %358 = arith.addf %356, %357 : vector<1x128xf32>
    %359 = math.tanh %358 : vector<1x128xf32>
    %360 = arith.mulf %355, %359 : vector<1x128xf32>
    %361 = arith.index_cast %c5_i32 : i32 to index
    %c0_62 = arith.constant 0 : index
    %362 = vector.load %arg6[%361, %c0_62] : memref<8x128xf32, #tpu.memory_space<vmem>>, vector<1x128xf32>
    tpu.vector_store %arg6[%361, %c0_62], %360 {strides = array<i32>} : memref<8x128xf32, #tpu.memory_space<vmem>>, vector<1x128xf32>,
    %c6_i32 = arith.constant 6 : i32
    %363 = arith.index_cast %c6_i32 : i32 to index
    %c0_63 = arith.constant 0 : index
    %364 = vector.load %arg0[%363, %c0_63] : memref<8x512xf32, #tpu.memory_space<vmem>>, vector<1x512xf32>
    %365 = arith.truncf %332 : vector<1x128xf32> to vector<1x128xbf16>
    %cst_64 = arith.constant dense<0.000000e+00> : vector<1x512xf32>
    %366 = tpu.matmul %365, %0, %cst_64 {dimension_numbers = #tpu.dot_dimension_numbers<[1], [0], [0], [1], [0, 0, 1, 1], [], []>} : vector<1x128xbf16>, vector<128x512xbf16>, vector<1x512xf32> -> vector<1x512xf32>
    %367 = arith.addf %364, %366 : vector<1x512xf32>
    %368 = vector.extract_strided_slice %367 {offsets = [0, 0], sizes = [1, 128], strides = [1, 1]} : vector<1x512xf32> to vector<1x128xf32>
    %369 = arith.negf %368 : vector<1x128xf32>
    %370 = math.exp %369 : vector<1x128xf32>
    %cst_65 = arith.constant 1.000000e+00 : f32
    %371 = vector.broadcast %cst_65 : f32 to vector<1x128xf32>
    %372 = arith.addf %371, %370 : vector<1x128xf32>
    %373 = arith.divf %371, %372 : vector<1x128xf32>
    %374 = vector.extract_strided_slice %367 {offsets = [0, 128], sizes = [1, 128], strides = [1, 1]} : vector<1x512xf32> to vector<1x128xf32>
    %375 = arith.negf %374 : vector<1x128xf32>
    %376 = math.exp %375 : vector<1x128xf32>
    %cst_66 = arith.constant 1.000000e+00 : f32
    %377 = vector.broadcast %cst_66 : f32 to vector<1x128xf32>
    %378 = arith.addf %377, %376 : vector<1x128xf32>
    %379 = arith.divf %377, %378 : vector<1x128xf32>
    %380 = vector.extract_strided_slice %367 {offsets = [0, 256], sizes = [1, 128], strides = [1, 1]} : vector<1x512xf32> to vector<1x128xf32>
    %381 = math.tanh %380 : vector<1x128xf32>
    %382 = vector.extract_strided_slice %367 {offsets = [0, 384], sizes = [1, 128], strides = [1, 1]} : vector<1x512xf32> to vector<1x128xf32>
    %383 = arith.negf %382 : vector<1x128xf32>
    %384 = math.exp %383 : vector<1x128xf32>
    %cst_67 = arith.constant 1.000000e+00 : f32
    %385 = vector.broadcast %cst_67 : f32 to vector<1x128xf32>
    %386 = arith.addf %385, %384 : vector<1x128xf32>
    %387 = arith.divf %385, %386 : vector<1x128xf32>
    %388 = arith.mulf %379, %330 : vector<1x128xf32>
    %389 = arith.mulf %373, %381 : vector<1x128xf32>
    %390 = arith.addf %388, %389 : vector<1x128xf32>
    %391 = math.tanh %390 : vector<1x128xf32>
    %392 = arith.mulf %387, %391 : vector<1x128xf32>
    %393 = tpu.concatenate %392, %360 in 1 : vector<1x128xf32>, vector<1x128xf32> -> vector<1x256xf32>
    %394 = arith.truncf %393 : vector<1x256xf32> to vector<1x256xbf16>
    %cst_68 = arith.constant dense<0.000000e+00> : vector<1x512xf32>
    %395 = tpu.matmul %394, %1, %cst_68 {dimension_numbers = #tpu.dot_dimension_numbers<[1], [0], [0], [1], [0, 0, 1, 1], [], []>} : vector<1x256xbf16>, vector<256x512xbf16>, vector<1x512xf32> -> vector<1x512xf32>
    %396 = vector.extract_strided_slice %395 {offsets = [0, 0], sizes = [1, 128], strides = [1, 1]} : vector<1x512xf32> to vector<1x128xf32>
    %397 = arith.negf %396 : vector<1x128xf32>
    %398 = math.exp %397 : vector<1x128xf32>
    %cst_69 = arith.constant 1.000000e+00 : f32
    %399 = vector.broadcast %cst_69 : f32 to vector<1x128xf32>
    %400 = arith.addf %399, %398 : vector<1x128xf32>
    %401 = arith.divf %399, %400 : vector<1x128xf32>
    %402 = vector.extract_strided_slice %395 {offsets = [0, 128], sizes = [1, 128], strides = [1, 1]} : vector<1x512xf32> to vector<1x128xf32>
    %403 = arith.negf %402 : vector<1x128xf32>
    %404 = math.exp %403 : vector<1x128xf32>
    %cst_70 = arith.constant 1.000000e+00 : f32
    %405 = vector.broadcast %cst_70 : f32 to vector<1x128xf32>
    %406 = arith.addf %405, %404 : vector<1x128xf32>
    %407 = arith.divf %405, %406 : vector<1x128xf32>
    %408 = vector.extract_strided_slice %395 {offsets = [0, 256], sizes = [1, 128], strides = [1, 1]} : vector<1x512xf32> to vector<1x128xf32>
    %409 = math.tanh %408 : vector<1x128xf32>
    %410 = vector.extract_strided_slice %395 {offsets = [0, 384], sizes = [1, 128], strides = [1, 1]} : vector<1x512xf32> to vector<1x128xf32>
    %411 = arith.negf %410 : vector<1x128xf32>
    %412 = math.exp %411 : vector<1x128xf32>
    %cst_71 = arith.constant 1.000000e+00 : f32
    %413 = vector.broadcast %cst_71 : f32 to vector<1x128xf32>
    %414 = arith.addf %413, %412 : vector<1x128xf32>
    %415 = arith.divf %413, %414 : vector<1x128xf32>
    %416 = arith.mulf %407, %358 : vector<1x128xf32>
    %417 = arith.mulf %401, %409 : vector<1x128xf32>
    %418 = arith.addf %416, %417 : vector<1x128xf32>
    %419 = math.tanh %418 : vector<1x128xf32>
    %420 = arith.mulf %415, %419 : vector<1x128xf32>
    %421 = arith.index_cast %c6_i32 : i32 to index
    %c0_72 = arith.constant 0 : index
    %422 = vector.load %arg6[%421, %c0_72] : memref<8x128xf32, #tpu.memory_space<vmem>>, vector<1x128xf32>
    tpu.vector_store %arg6[%421, %c0_72], %420 {strides = array<i32>} : memref<8x128xf32, #tpu.memory_space<vmem>>, vector<1x128xf32>,
    %c7_i32 = arith.constant 7 : i32
    %423 = arith.index_cast %c7_i32 : i32 to index
    %c0_73 = arith.constant 0 : index
    %424 = vector.load %arg0[%423, %c0_73] : memref<8x512xf32, #tpu.memory_space<vmem>>, vector<1x512xf32>
    %425 = arith.truncf %392 : vector<1x128xf32> to vector<1x128xbf16>
    %cst_74 = arith.constant dense<0.000000e+00> : vector<1x512xf32>
    %426 = tpu.matmul %425, %0, %cst_74 {dimension_numbers = #tpu.dot_dimension_numbers<[1], [0], [0], [1], [0, 0, 1, 1], [], []>} : vector<1x128xbf16>, vector<128x512xbf16>, vector<1x512xf32> -> vector<1x512xf32>
    %427 = arith.addf %424, %426 : vector<1x512xf32>
    %428 = vector.extract_strided_slice %427 {offsets = [0, 0], sizes = [1, 128], strides = [1, 1]} : vector<1x512xf32> to vector<1x128xf32>
    %429 = arith.negf %428 : vector<1x128xf32>
    %430 = math.exp %429 : vector<1x128xf32>
    %cst_75 = arith.constant 1.000000e+00 : f32
    %431 = vector.broadcast %cst_75 : f32 to vector<1x128xf32>
    %432 = arith.addf %431, %430 : vector<1x128xf32>
    %433 = arith.divf %431, %432 : vector<1x128xf32>
    %434 = vector.extract_strided_slice %427 {offsets = [0, 128], sizes = [1, 128], strides = [1, 1]} : vector<1x512xf32> to vector<1x128xf32>
    %435 = arith.negf %434 : vector<1x128xf32>
    %436 = math.exp %435 : vector<1x128xf32>
    %cst_76 = arith.constant 1.000000e+00 : f32
    %437 = vector.broadcast %cst_76 : f32 to vector<1x128xf32>
    %438 = arith.addf %437, %436 : vector<1x128xf32>
    %439 = arith.divf %437, %438 : vector<1x128xf32>
    %440 = vector.extract_strided_slice %427 {offsets = [0, 256], sizes = [1, 128], strides = [1, 1]} : vector<1x512xf32> to vector<1x128xf32>
    %441 = math.tanh %440 : vector<1x128xf32>
    %442 = vector.extract_strided_slice %427 {offsets = [0, 384], sizes = [1, 128], strides = [1, 1]} : vector<1x512xf32> to vector<1x128xf32>
    %443 = arith.negf %442 : vector<1x128xf32>
    %444 = math.exp %443 : vector<1x128xf32>
    %cst_77 = arith.constant 1.000000e+00 : f32
    %445 = vector.broadcast %cst_77 : f32 to vector<1x128xf32>
    %446 = arith.addf %445, %444 : vector<1x128xf32>
    %447 = arith.divf %445, %446 : vector<1x128xf32>
    %448 = arith.mulf %439, %390 : vector<1x128xf32>
    %449 = arith.mulf %433, %441 : vector<1x128xf32>
    %450 = arith.addf %448, %449 : vector<1x128xf32>
    %451 = math.tanh %450 : vector<1x128xf32>
    %452 = arith.mulf %447, %451 : vector<1x128xf32>
    %453 = tpu.concatenate %452, %420 in 1 : vector<1x128xf32>, vector<1x128xf32> -> vector<1x256xf32>
    %454 = arith.truncf %453 : vector<1x256xf32> to vector<1x256xbf16>
    %cst_78 = arith.constant dense<0.000000e+00> : vector<1x512xf32>
    %455 = tpu.matmul %454, %1, %cst_78 {dimension_numbers = #tpu.dot_dimension_numbers<[1], [0], [0], [1], [0, 0, 1, 1], [], []>} : vector<1x256xbf16>, vector<256x512xbf16>, vector<1x512xf32> -> vector<1x512xf32>
    %456 = vector.extract_strided_slice %455 {offsets = [0, 0], sizes = [1, 128], strides = [1, 1]} : vector<1x512xf32> to vector<1x128xf32>
    %457 = arith.negf %456 : vector<1x128xf32>
    %458 = math.exp %457 : vector<1x128xf32>
    %cst_79 = arith.constant 1.000000e+00 : f32
    %459 = vector.broadcast %cst_79 : f32 to vector<1x128xf32>
    %460 = arith.addf %459, %458 : vector<1x128xf32>
    %461 = arith.divf %459, %460 : vector<1x128xf32>
    %462 = vector.extract_strided_slice %455 {offsets = [0, 128], sizes = [1, 128], strides = [1, 1]} : vector<1x512xf32> to vector<1x128xf32>
    %463 = arith.negf %462 : vector<1x128xf32>
    %464 = math.exp %463 : vector<1x128xf32>
    %cst_80 = arith.constant 1.000000e+00 : f32
    %465 = vector.broadcast %cst_80 : f32 to vector<1x128xf32>
    %466 = arith.addf %465, %464 : vector<1x128xf32>
    %467 = arith.divf %465, %466 : vector<1x128xf32>
    %468 = vector.extract_strided_slice %455 {offsets = [0, 256], sizes = [1, 128], strides = [1, 1]} : vector<1x512xf32> to vector<1x128xf32>
    %469 = math.tanh %468 : vector<1x128xf32>
    %470 = vector.extract_strided_slice %455 {offsets = [0, 384], sizes = [1, 128], strides = [1, 1]} : vector<1x512xf32> to vector<1x128xf32>
    %471 = arith.negf %470 : vector<1x128xf32>
    %472 = math.exp %471 : vector<1x128xf32>
    %cst_81 = arith.constant 1.000000e+00 : f32
    %473 = vector.broadcast %cst_81 : f32 to vector<1x128xf32>
    %474 = arith.addf %473, %472 : vector<1x128xf32>
    %475 = arith.divf %473, %474 : vector<1x128xf32>
    %476 = arith.mulf %467, %418 : vector<1x128xf32>
    %477 = arith.mulf %461, %469 : vector<1x128xf32>
    %478 = arith.addf %476, %477 : vector<1x128xf32>
    %479 = math.tanh %478 : vector<1x128xf32>
    %480 = arith.mulf %475, %479 : vector<1x128xf32>
    %481 = arith.index_cast %c7_i32 : i32 to index
    %c0_82 = arith.constant 0 : index
    %482 = vector.load %arg6[%481, %c0_82] : memref<8x128xf32, #tpu.memory_space<vmem>>, vector<1x128xf32>
    tpu.vector_store %arg6[%481, %c0_82], %480 {strides = array<i32>} : memref<8x128xf32, #tpu.memory_space<vmem>>, vector<1x128xf32>,
    %c8_i32 = arith.constant 8 : i32
    %c0_83 = arith.constant 0 : index
    %c0_84 = arith.constant 0 : index
    %483 = vector.load %arg6[%c0_83, %c0_84] : memref<8x128xf32, #tpu.memory_space<vmem>>, vector<8x128xf32>
    %cst_85 = arith.constant 0.000000e+00 : f32
    %484 = vector.broadcast %cst_85 : f32 to vector<8x128xf32>
    %485 = arith.maximumf %483, %484 : vector<8x128xf32>
    %486 = arith.truncf %485 : vector<8x128xf32> to vector<8x128xbf16>
    %c0_86 = arith.constant 0 : index
    %c0_87 = arith.constant 0 : index
    %487 = vector.load %arg3[%c0_86, %c0_87] : memref<128x128xbf16, #tpu.memory_space<vmem>>, vector<128x128xbf16>
    %cst_88 = arith.constant dense<0.000000e+00> : vector<8x128xf32>
    %488 = tpu.matmul %486, %487, %cst_88 {dimension_numbers = #tpu.dot_dimension_numbers<[1], [0], [0], [1], [0, 0, 1, 1], [], []>} : vector<8x128xbf16>, vector<128x128xbf16>, vector<8x128xf32> -> vector<8x128xf32>
    %c0_89 = arith.constant 0 : index
    %c0_90 = arith.constant 0 : index
    %489 = vector.load %arg4[%c0_89, %c0_90] : memref<1x128xf32, #tpu.memory_space<vmem>>, vector<1x128xf32>
    %490 = vector.broadcast %489 : vector<1x128xf32> to vector<8x128xf32>
    %491 = arith.addf %488, %490 : vector<8x128xf32>
    %492 = math.tanh %491 : vector<8x128xf32>
    %c0_91 = arith.constant 0 : index
    %c0_92 = arith.constant 0 : index
    %493 = vector.load %arg5[%c0_91, %c0_92] : memref<8x128xf32, #tpu.memory_space<vmem>>, vector<8x128xf32>
    tpu.vector_store %arg5[%c0_91, %c0_92], %492 {strides = array<i32>} : memref<8x128xf32, #tpu.memory_space<vmem>>, vector<8x128xf32>,
    return
  }
}

</mosaic_0001>

<bundles_post_ra>
// kernel: tpu_custom_call.1
= control target key start
LH: loop header
LB: loop body
LE: loop exit
PB: predicated region body
PF: predicated region fallthrough
CT: control target
= control target key end

     0   :  { %10 = vsyncpa [#allocation4], 0  ;;  %s5227_s0 = inlined_call_operand.hbm [shape: f32[8,512], index: 0, kind: input, shape index: {}]   ;;  %s5228_s1 = inlined_call_operand.hbm [shape: bf16[128,512], index: 1, kind: input, shape index: {}]   ;;  %s5229_s2 = inlined_call_operand.hbm [shape: bf16[256,512], index: 2, kind: input, shape index: {}]   ;;  %s5230_s3 = inlined_call_operand.hbm [shape: bf16[128,128], index: 3, kind: input, shape index: {}]   ;;  %s5231_s4 = inlined_call_operand.vmem [shape: f32[1,128], index: 4, kind: input, shape index: {}]   ;;  %s5232_s5 = inlined_call_operand.hbm [shape: f32[8,128], index: 5, kind: output, shape index: {}]  }
   0x1   :  { %11 = vsyncpa [#allocation7], 0 }
   0x2   :  { %12 = vsyncpa [#allocation10], 0 }
   0x3   :  { %13 = vsyncpa [#allocation5], 0  ;;  %s3721_s18 = smov [#allocation6]  }
   0x4   :  { %s29_s19 = sshll.u32 %s3721_s18, 4  ;;  %s30_s19 = int_to_ptr.vmem [resolvable:$true] %s29_s19 }
   0x5   :  { %s3621_s20 = scalar_lea.vmem %s30_s19, 4096  ;;  %p3626_p1 = scmp.lt.s32.totalorder %s30_s19, %s30_s19 }
   0x6   :  { %p3622_p0 = scmp.ne.s32.totalorder %s30_s19, %s3621_s20  ;;  %p3627_p2 = scmp.lt.s32.totalorder %s3621_s20, %s3621_s20 }
   0x8   :  { %p3628_p3 = por %p3627_p2, %p3626_p1 }
   0xa   :  { %p3629_p4 = pnand %p3628_p3, %p3622_p0 }
   0xc   :  { %3632 = shalt.err (!%p3629_p4)
}
   0xd   :  { %s3722_s21 = smov 256   ;;  %s3723_s22 = smov 16  }
   0xe   :  { %35 = dma.hbm_to_vmem [thread:$0]  %s5228_s1, 4096, %s30_s19, [#allocation7], %s3722_s21, %s3722_s21, %s3723_s22  }
   0xf   :  { %s3724_s25 = smov [#allocation3]   ;;  %s3725_s27 = smov [#allocation8]  }
  0x10   :  { %s20_s26 = sshll.u32 %s3724_s25, 4  ;;  %s41_s28 = sshll.u32 %s3725_s27, 4  ;;  %s21_s26 = int_to_ptr.vmem [resolvable:$true] %s20_s26  ;;  %s42_s28 = int_to_ptr.vmem [resolvable:$true] %s41_s28 }
  0x11   :  { %s3641_s29 = scalar_lea.vmem %s21_s26, 512  ;;  %p3646_p6 = scmp.lt.s32.totalorder %s21_s26, %s21_s26 }
  0x12   :  { %p3642_p5 = scmp.ne.s32.totalorder %s21_s26, %s3641_s29  ;;  %p3647_p7 = scmp.lt.s32.totalorder %s3641_s29, %s3641_s29 }
  0x14   :  { %p3648_p8 = por %p3647_p7, %p3646_p6 }
  0x16   :  { %p3649_p9 = pnand %p3648_p8, %p3642_p5 }
  0x18   :  { %3652 = shalt.err (!%p3649_p9)
}
  0x19   :  { %23 = dma.hbm_to_vmem [thread:$0]  %s5227_s0, 512, %s21_s26, [#allocation4]  }
  0x1a   :  { %s3661_s7 = scalar_lea.vmem %s42_s28, 8192  ;;  %p3666_p11 = scmp.lt.s32.totalorder %s42_s28, %s42_s28 }
  0x1b   :  { %p3662_p10 = scmp.ne.s32.totalorder %s42_s28, %s3661_s7  ;;  %p3667_p12 = scmp.lt.s32.totalorder %s3661_s7, %s3661_s7 }
  0x1d   :  { %p3668_p13 = por %p3667_p12, %p3666_p11 }
  0x1f   :  { %p3669_p0 = pnand %p3668_p13, %p3662_p10 }
  0x21   :  { %3672 = shalt.err (!%p3669_p0)
}
  0x22   :  { %47 = dma.hbm_to_vmem [thread:$0]  %s5229_s2, 8192, %s42_s28, [#allocation7], %s3722_s21, %s3722_s21, %s3723_s22  }
  0x23   :  { %s3726_s9 = smov [#allocation9]  }
  0x24   :  { %s53_s10 = sshll.u32 %s3726_s9, 4  ;;  %s54_s10 = int_to_ptr.vmem [resolvable:$true] %s53_s10 }
  0x25   :  { %s3681_s11 = scalar_lea.vmem %s54_s10, 1024  ;;  %p3686_p2 = scmp.lt.s32.totalorder %s54_s10, %s54_s10 }
  0x26   :  { %p3682_p1 = scmp.ne.s32.totalorder %s54_s10, %s3681_s11  ;;  %p3687_p3 = scmp.lt.s32.totalorder %s3681_s11, %s3681_s11 }
  0x28   :  { %p3688_p4 = por %p3687_p3, %p3686_p2 }
  0x2a   :  { %p3689_p5 = pnand %p3688_p4, %p3682_p1 }
  0x2c   :  { %3692 = shalt.err (!%p3689_p5)
}
  0x2d   :  { %s3727_s0 = smov 64   ;;  %s3728_s12 = smov 4  }
  0x2e   :  { %59 = dma.hbm_to_vmem [thread:$0]  %s5230_s3, 1024, %s54_s10, [#allocation10], %s3727_s0, %s3727_s0, %s3728_s12  }
  0x2f   :  { %3713 = dma.done.wait [#allocation4], 512  }
  0x30   :  { %3714 = vsyncadd [#allocation4], 4294966784 }
  0x31   :  { %3715 = dma.done.wait [#allocation7], 12288  }
  0x32   :  { %3716 = vsyncadd [#allocation7], 4294955008 }
  0x33   :  { %3717 = dma.done.wait [#allocation10], 1024  }
  0x34   :  { %3718 = vsyncadd [#allocation10], 4294966272  ;;  %v5233_v0 = vmov 0   ;;  %v3779_v1 = vld [vmem:[#allocation6 + $0xe4] ss:$16 sps:$4 sm:$0xff]   ;;  %vm3733_vm0 = vmmov 0  }
  0x35   :  { %364 = vmatprep.mubr.bf16.mxu0 %v5233_v0  ;;  %405 = vmatprep.mubr.bf16.mxu1 %v5233_v0  ;;  %5504 = vst [vmem:[#allocation16_spill] sm:$0xff] %v3779_v1  ;;  %v3781_v2 = vld [vmem:[#allocation6 + $0xec] ss:$16 sps:$4 sm:$0xff]   ;;  %v3784_v3 = vld [vmem:[#allocation6 + $0xe0] ss:$16 sps:$4 sm:$0xff]   ;;  %s3734_s15 = smov [#allocation11]  }
  0x36   :  { %5505 = vst [vmem:[#allocation17_spill] sm:$0xff] %v3781_v2  ;;  %332 = vmatprep.subr.bf16.mxu0 %v3779_v1  ;;  %v3786_v4 = vld [vmem:[#allocation6 + $0xe8] ss:$16 sps:$4 sm:$0xff]   ;;  %373 = vmatprep.subr.bf16.mxu1 %v3781_v2  ;;  %v3789_v5 = vld [vmem:[#allocation6 + $0xc4] ss:$16 sps:$4 sm:$0xff]   ;;  %s2804_s16 = sshll.u32 %s3734_s15, 4  ;;  %s2805_s16 = int_to_ptr.vmem [resolvable:$true] %s2804_s16 }
  0x37   :  { %333 = vmatpush1.bf16.msra.mxu0 %v3784_v3  ;;  %374 = vmatpush1.bf16.msra.mxu1 %v3786_v4  ;;  %v3793_v6 = vld [vmem:[#allocation6 + $0xcc] ss:$16 sps:$4 sm:$0xff]   ;;  %v3795_v7 = vld [vmem:[#allocation6 + $0xc0] ss:$16 sps:$4 sm:$0xff]   ;;  %v3798_v8 = vld [vmem:[#allocation6 + $0xc8] ss:$16 sps:$4 sm:$0xff]   ;;  %p3698_p7 = scmp.lt.s32.totalorder %s2805_s16, %s2805_s16 }
  0x38   :  { %334 = vmatprep.subr.bf16.mxu0 %v3789_v5  ;;  %375 = vmatprep.subr.bf16.mxu1 %v3793_v6  ;;  %v3801_v9 = vld [vmem:[#allocation6 + $0xa4] ss:$16 sps:$4 sm:$0xff]   ;;  %v3803_v10 = vld [vmem:[#allocation6 + $0xac] ss:$16 sps:$4 sm:$0xff]   ;;  %v3805_v11 = vld [vmem:[#allocation6 + $0xa0] ss:$16 sps:$4 sm:$0xff]  }
  0x39   :  { %v3807_v12 = vld [vmem:[#allocation6 + $0xa8] ss:$16 sps:$4 sm:$0xff]   ;;  %v3811_v13 = vld [vmem:[#allocation6 + $0x84] ss:$16 sps:$4 sm:$0xff]   ;;  %v3815_v14 = vld [vmem:[#allocation6 + $0x8c] ss:$16 sps:$4 sm:$0xff]  }
  0x3a   :  { %v3817_v15 = vld [vmem:[#allocation6 + $0x80] ss:$16 sps:$4 sm:$0xff]   ;;  %v3821_v16 = vld [vmem:[#allocation6 + $0x88] ss:$16 sps:$4 sm:$0xff]   ;;  %v3823_v17 = vld [vmem:[#allocation6 + $0x64] ss:$16 sps:$4 sm:$0xff]  }
  0x3b   :  { %335 = vmatpush1.bf16.msra.mxu0 %v3795_v7  ;;  %376 = vmatpush1.bf16.msra.mxu1 %v3798_v8  ;;  %v3827_v18 = vld [vmem:[#allocation6 + $0x6c] ss:$16 sps:$4 sm:$0xff]   ;;  %v3829_v19 = vld [vmem:[#allocation6 + $0x60] ss:$16 sps:$4 sm:$0xff]   ;;  %v3831_v20 = vld [vmem:[#allocation6 + $0x68] ss:$16 sps:$4 sm:$0xff]  }
  0x3c   :  { %336 = vmatprep.subr.bf16.mxu0 %v3801_v9  ;;  %377 = vmatprep.subr.bf16.mxu1 %v3803_v10  ;;  %v3835_v21 = vld [vmem:[#allocation6 + $0x44] ss:$16 sps:$4 sm:$0xff]   ;;  %v3839_v22 = vld [vmem:[#allocation6 + $0x4c] ss:$16 sps:$4 sm:$0xff]   ;;  %v3841_v23 = vld [vmem:[#allocation6 + $0x40] ss:$16 sps:$4 sm:$0xff]  }
  0x3d   :  { %v3845_v24 = vld [vmem:[#allocation6 + $0x48] ss:$16 sps:$4 sm:$0xff]   ;;  %v3847_v25 = vld [vmem:[#allocation6 + $0x24] ss:$16 sps:$4 sm:$0xff]   ;;  %v3851_v26 = vld [vmem:[#allocation6 + $0x2c] ss:$16 sps:$4 sm:$0xff]  }
  0x3e   :  { %v3853_v27 = vld [vmem:[#allocation6 + $0x20] ss:$16 sps:$4 sm:$0xff]   ;;  %v3855_v28 = vld [vmem:[#allocation6 + $0x28] ss:$16 sps:$4 sm:$0xff]   ;;  %v3857_v29 = vld [vmem:[#allocation6 + $0x4] ss:$16 sps:$4 sm:$0xff]  }
  0x3f   :  { %337 = vmatpush1.bf16.msra.mxu0 %v3805_v11  ;;  %378 = vmatpush1.bf16.msra.mxu1 %v3807_v12  ;;  %v3859_v30 = vld [vmem:[#allocation6 + $0xc] ss:$16 sps:$4 sm:$0xff]   ;;  %v3865_v31 = vld [vmem:[#allocation6] ss:$16 sps:$4 sm:$0xff]   ;;  %v3867_v32 = vld [vmem:[#allocation6 + $0x8] ss:$16 sps:$4 sm:$0xff]  }
  0x40   :  { %338 = vmatprep.subr.bf16.mxu0 %v3811_v13  ;;  %379 = vmatprep.subr.bf16.mxu1 %v3815_v14  ;;  %v3877_v33 = vld [vmem:[#allocation8 + $0xe4] ss:$16 sps:$4 sm:$0xff]   ;;  %v3879_v34 = vld [vmem:[#allocation8 + $0xec] ss:$16 sps:$4 sm:$0xff]   ;;  %v3881_v35 = vld [vmem:[#allocation8 + $0xe0] ss:$16 sps:$4 sm:$0xff]  }
  0x41   :  { %v3883_v36 = vld [vmem:[#allocation8 + $0xe8] ss:$16 sps:$4 sm:$0xff]   ;;  %v3889_v37 = vld [vmem:[#allocation8 + $0xc4] ss:$16 sps:$4 sm:$0xff]   ;;  %v3891_v38 = vld [vmem:[#allocation8 + $0xcc] ss:$16 sps:$4 sm:$0xff]  }
  0x42   :  { %v3893_v39 = vld [vmem:[#allocation8 + $0xc0] ss:$16 sps:$4 sm:$0xff]   ;;  %v3895_v40 = vld [vmem:[#allocation8 + $0xc8] ss:$16 sps:$4 sm:$0xff]   ;;  %v3901_v41 = vld [vmem:[#allocation8 + $0xa4] ss:$16 sps:$4 sm:$0xff]  }
  0x43   :  { %339 = vmatpush1.bf16.msra.mxu0 %v3817_v15  ;;  %380 = vmatpush1.bf16.msra.mxu1 %v3821_v16  ;;  %v3903_v42 = vld [vmem:[#allocation8 + $0xac] ss:$16 sps:$4 sm:$0xff]   ;;  %v3905_v43 = vld [vmem:[#allocation8 + $0xa0] ss:$16 sps:$4 sm:$0xff]   ;;  %v3907_v44 = vld [vmem:[#allocation8 + $0xa8] ss:$16 sps:$4 sm:$0xff]  }
  0x44   :  { %340 = vmatprep.subr.bf16.mxu0 %v3823_v17  ;;  %381 = vmatprep.subr.bf16.mxu1 %v3827_v18  ;;  %v3913_v45 = vld [vmem:[#allocation8 + $0x84] ss:$16 sps:$4 sm:$0xff]   ;;  %v3915_v46 = vld [vmem:[#allocation8 + $0x8c] ss:$16 sps:$4 sm:$0xff]   ;;  %v3917_v47 = vld [vmem:[#allocation8 + $0x80] ss:$16 sps:$4 sm:$0xff]  }
  0x45   :  { %5506 = vst [vmem:[#allocation18_spill] sm:$0xff] %v3917_v47  ;;  %v3919_v48 = vld [vmem:[#allocation8 + $0x88] ss:$16 sps:$4 sm:$0xff]   ;;  %v3925_v49 = vld [vmem:[#allocation8 + $0x64] ss:$16 sps:$4 sm:$0xff]   ;;  %s3693_s17 = scalar_lea.vmem %s2805_s16, 128 }
  0x46   :  { %5507 = vst [vmem:[#allocation19_spill] sm:$0xff] %v3919_v48  ;;  %5508 = vst [vmem:[#allocation20_spill] sm:$0xff] %v3925_v49  ;;  %v3927_v50 = vld [vmem:[#allocation8 + $0x6c] ss:$16 sps:$4 sm:$0xff]   ;;  %v3929_v51 = vld [vmem:[#allocation8 + $0x60] ss:$16 sps:$4 sm:$0xff]   ;;  %p3694_p6 = scmp.ne.s32.totalorder %s2805_s16, %s3693_s17  ;;  %p3699_p8 = scmp.lt.s32.totalorder %s3693_s17, %s3693_s17 }
  0x47   :  { %341 = vmatpush1.bf16.msra.mxu0 %v3829_v19  ;;  %382 = vmatpush1.bf16.msra.mxu1 %v3831_v20  ;;  %5509 = vst [vmem:[#allocation21_spill] sm:$0xff] %v3927_v50  ;;  %5510 = vst [vmem:[#allocation22_spill] sm:$0xff] %v3929_v51  ;;  %v3931_v52 = vld [vmem:[#allocation8 + $0x68] ss:$16 sps:$4 sm:$0xff]   ;;  %v3937_v53 = vld [vmem:[#allocation8 + $0x44] ss:$16 sps:$4 sm:$0xff]  }
  0x48   :  { %342 = vmatprep.subr.bf16.mxu0 %v3835_v21  ;;  %383 = vmatprep.subr.bf16.mxu1 %v3839_v22  ;;  %5511 = vst [vmem:[#allocation23_spill] sm:$0xff] %v3931_v52  ;;  %5512 = vst [vmem:[#allocation24_spill] sm:$0xff] %v3937_v53  ;;  %v3939_v54 = vld [vmem:[#allocation8 + $0x4c] ss:$16 sps:$4 sm:$0xff]   ;;  %v3941_v55 = vld [vmem:[#allocation8 + $0x40] ss:$16 sps:$4 sm:$0xff]   ;;  %p3700_p9 = por %p3699_p8, %p3698_p7 }
  0x49   :  { %5513 = vst [vmem:[#allocation25_spill] sm:$0xff] %v3939_v54  ;;  %5514 = vst [vmem:[#allocation26_spill] sm:$0xff] %v3941_v55  ;;  %v3943_v56 = vld [vmem:[#allocation8 + $0x48] ss:$16 sps:$4 sm:$0xff]   ;;  %v3949_v57 = vld [vmem:[#allocation8 + $0x24] ss:$16 sps:$4 sm:$0xff]  }
  0x4a   :  { %5515 = vst [vmem:[#allocation27_spill] sm:$0xff] %v3943_v56  ;;  %5516 = vst [vmem:[#allocation28_spill] sm:$0xff] %v3949_v57  ;;  %v3951_v58 = vld [vmem:[#allocation8 + $0x2c] ss:$16 sps:$4 sm:$0xff]   ;;  %v3953_v59 = vld [vmem:[#allocation8 + $0x20] ss:$16 sps:$4 sm:$0xff]   ;;  %p3701_p10 = pnand %p3700_p9, %p3694_p6 }
  0x4b   :  { %343 = vmatpush1.bf16.msra.mxu0 %v3841_v23  ;;  %384 = vmatpush1.bf16.msra.mxu1 %v3845_v24  ;;  %5517 = vst [vmem:[#allocation29_spill] sm:$0xff] %v3951_v58  ;;  %5518 = vst [vmem:[#allocation30_spill] sm:$0xff] %v3953_v59  ;;  %v3955_v60 = vld [vmem:[#allocation8 + $0x28] ss:$16 sps:$4 sm:$0xff]   ;;  %v3961_v61 = vld [vmem:[#allocation8 + $0x4] ss:$16 sps:$4 sm:$0xff]  }
  0x4c   :  { %344 = vmatprep.subr.bf16.mxu0 %v3847_v25  ;;  %385 = vmatprep.subr.bf16.mxu1 %v3851_v26  ;;  %5519 = vst [vmem:[#allocation31_spill] sm:$0xff] %v3955_v60  ;;  %5520 = vst [vmem:[#allocation32_spill] sm:$0xff] %v3961_v61  ;;  %v3963_v62 = vld [vmem:[#allocation8 + $0xc] ss:$16 sps:$4 sm:$0xff]   ;;  %v3965_v63 = vld [vmem:[#allocation8] ss:$16 sps:$4 sm:$0xff]  }
  0x4d   :  { %5521 = vst [vmem:[#allocation33_spill] sm:$0xff] %v3963_v62  ;;  %5522 = vst [vmem:[#allocation34_spill] sm:$0xff] %v3965_v63 }
  0x4f   :  { %345 = vmatpush1.bf16.msra.mxu0 %v3853_v27  ;;  %386 = vmatpush1.bf16.msra.mxu1 %v3855_v28 }
  0x50   :  { %346 = vmatprep.subr.bf16.mxu0 %v3857_v29  ;;  %387 = vmatprep.subr.bf16.mxu1 %v3859_v30 }
  0x53   :  { %347 = vmatpush1.bf16.msra.mxu0 %v3865_v31  ;;  %388 = vmatpush1.bf16.msra.mxu1 %v3867_v32 }
  0x54   :  { %797 = vmatprep.subr.bf16.mxu0 %v3877_v33  ;;  %838 = vmatprep.subr.bf16.mxu1 %v3879_v34 }
  0x56   :  { %365 = vmatmul.mubr.bf16.vlgmr.msra.gmra.mxu0 %v5233_v0  ;;  %406 = vmatmul.mubr.bf16.vlgmr.msra.gmra.mxu1 %v5233_v0  ;;  %v3967_v0 = vld [vmem:[#allocation8 + $0x8] ss:$16 sps:$4 sm:$0xff]  }
  0x57   :  { %798 = vmatpush1.bf16.msra.mxu0 %v3881_v35  ;;  %839 = vmatpush1.bf16.msra.mxu1 %v3883_v36  ;;  %5523 = vst [vmem:[#allocation35_spill] sm:$0xff] %v3967_v0 }
  0x58   :  { %799 = vmatprep.subr.bf16.mxu0 %v3889_v37  ;;  %840 = vmatprep.subr.bf16.mxu1 %v3891_v38 }
  0x5b   :  { %800 = vmatpush1.bf16.msra.mxu0 %v3893_v39  ;;  %841 = vmatpush1.bf16.msra.mxu1 %v3895_v40 }
  0x5c   :  { %801 = vmatprep.subr.bf16.mxu0 %v3901_v41  ;;  %842 = vmatprep.subr.bf16.mxu1 %v3903_v42 }
  0x5f   :  { %802 = vmatpush1.bf16.msra.mxu0 %v3905_v43  ;;  %843 = vmatpush1.bf16.msra.mxu1 %v3907_v44 }
  0x60   :  { %803 = vmatprep.subr.bf16.mxu0 %v3913_v45  ;;  %844 = vmatprep.subr.bf16.mxu1 %v3915_v46 }
  0x63   :  { %804 = vmatpush1.bf16.msra.mxu0 %v3917_v47  ;;  %845 = vmatpush1.bf16.msra.mxu1 %v3919_v48  ;;  %v171_v48 = vld [vmem:[#allocation3] ss:$8 sm:$0xf] }
  0x64   :  { %805 = vmatprep.subr.bf16.mxu0 %v3925_v49  ;;  %846 = vmatprep.subr.bf16.mxu1 %v3927_v50 }
  0x67   :  { %806 = vmatpush1.bf16.msra.mxu0 %v3929_v51  ;;  %847 = vmatpush1.bf16.msra.mxu1 %v3931_v52 }
  0x68   :  { %807 = vmatprep.subr.bf16.mxu0 %v3937_v53  ;;  %848 = vmatprep.subr.bf16.mxu1 %v3939_v54 }
  0x6b   :  { %808 = vmatpush1.bf16.msra.mxu0 %v3941_v55  ;;  %849 = vmatpush1.bf16.msra.mxu1 %v3943_v56  ;;  %v4017_v56 = vld [vmem:[#allocation8 + $0x164] ss:$16 sps:$4 sm:$0xff]   ;;  %v4019_v55 = vld [vmem:[#allocation8 + $0x16c] ss:$16 sps:$4 sm:$0xff]  }
  0x6c   :  { %809 = vmatprep.subr.bf16.mxu0 %v3949_v57  ;;  %850 = vmatprep.subr.bf16.mxu1 %v3951_v58  ;;  %v3973_v58 = vld [vmem:[#allocation8 + $0x1e4] ss:$16 sps:$4 sm:$0xff]   ;;  %v3979_v57 = vld [vmem:[#allocation8 + $0x1e8] ss:$16 sps:$4 sm:$0xff]   ;;  %5540 = vst [vmem:[#allocation52_spill] sm:$0xff] %v4017_v56  ;;  %5541 = vst [vmem:[#allocation53_spill] sm:$0xff] %v4019_v55 }
  0x6d   :  { %5524 = vst [vmem:[#allocation36_spill] sm:$0xff] %v3973_v58  ;;  %5527 = vst [vmem:[#allocation39_spill] sm:$0xff] %v3979_v57 }
  0x6f   :  { %810 = vmatpush1.bf16.msra.mxu0 %v3953_v59  ;;  %851 = vmatpush1.bf16.msra.mxu1 %v3955_v60  ;;  %v3975_v59 = vld [vmem:[#allocation8 + $0x1ec] ss:$16 sps:$4 sm:$0xff]   ;;  %v3977_v60 = vld [vmem:[#allocation8 + $0x1e0] ss:$16 sps:$4 sm:$0xff]  }
  0x70   :  { %811 = vmatprep.subr.bf16.mxu0 %v3961_v61  ;;  %852 = vmatprep.subr.bf16.mxu1 %v3963_v62  ;;  %5525 = vst [vmem:[#allocation37_spill] sm:$0xff] %v3975_v59  ;;  %5526 = vst [vmem:[#allocation38_spill] sm:$0xff] %v3977_v60  ;;  %v3985_v62 = vld [vmem:[#allocation8 + $0x1c4] ss:$16 sps:$4 sm:$0xff]   ;;  %v3991_v61 = vld [vmem:[#allocation8 + $0x1c8] ss:$16 sps:$4 sm:$0xff]  }
  0x71   :  { %5528 = vst [vmem:[#allocation40_spill] sm:$0xff] %v3985_v62  ;;  %5531 = vst [vmem:[#allocation43_spill] sm:$0xff] %v3991_v61 }
  0x73   :  { %812 = vmatpush1.bf16.msra.mxu0 %v3965_v63  ;;  %853 = vmatpush1.bf16.msra.mxu1 %v3967_v0  ;;  %v3987_v63 = vld [vmem:[#allocation8 + $0x1cc] ss:$16 sps:$4 sm:$0xff]   ;;  %v3989_v0 = vld [vmem:[#allocation8 + $0x1c0] ss:$16 sps:$4 sm:$0xff]  }
  0x74   :  { %813 = vmatprep.subr.bf16.mxu0 %v3973_v58  ;;  %854 = vmatprep.subr.bf16.mxu1 %v3975_v59  ;;  %5529 = vst [vmem:[#allocation41_spill] sm:$0xff] %v3987_v63  ;;  %5530 = vst [vmem:[#allocation42_spill] sm:$0xff] %v3989_v0  ;;  %v3997_v59 = vld [vmem:[#allocation8 + $0x1a4] ss:$16 sps:$4 sm:$0xff]   ;;  %v4003_v58 = vld [vmem:[#allocation8 + $0x1a8] ss:$16 sps:$4 sm:$0xff]  }
  0x75   :  { %5532 = vst [vmem:[#allocation44_spill] sm:$0xff] %v3997_v59  ;;  %5535 = vst [vmem:[#allocation47_spill] sm:$0xff] %v4003_v58 }
  0x77   :  { %814 = vmatpush2.bf16.msra.mxu0 %v3977_v60  ;;  %855 = vmatpush2.bf16.msra.mxu1 %v3979_v57  ;;  %v3999_v60 = vld [vmem:[#allocation8 + $0x1ac] ss:$16 sps:$4 sm:$0xff]   ;;  %v4001_v57 = vld [vmem:[#allocation8 + $0x1a0] ss:$16 sps:$4 sm:$0xff]  }
  0x78   :  { %815 = vmatprep.subr.bf16.mxu0 %v3985_v62  ;;  %856 = vmatprep.subr.bf16.mxu1 %v3987_v63  ;;  %5533 = vst [vmem:[#allocation45_spill] sm:$0xff] %v3999_v60  ;;  %5534 = vst [vmem:[#allocation46_spill] sm:$0xff] %v4001_v57  ;;  %v4009_v63 = vld [vmem:[#allocation8 + $0x184] ss:$16 sps:$4 sm:$0xff]   ;;  %v4015_v62 = vld [vmem:[#allocation8 + $0x188] ss:$16 sps:$4 sm:$0xff]  }
  0x79   :  { %5536 = vst [vmem:[#allocation48_spill] sm:$0xff] %v4009_v63  ;;  %5539 = vst [vmem:[#allocation51_spill] sm:$0xff] %v4015_v62 }
  0x7b   :  { %816 = vmatpush2.bf16.msra.mxu0 %v3989_v0  ;;  %857 = vmatpush2.bf16.msra.mxu1 %v3991_v61  ;;  %v4011_v0 = vld [vmem:[#allocation8 + $0x18c] ss:$16 sps:$4 sm:$0xff]   ;;  %v4013_v61 = vld [vmem:[#allocation8 + $0x180] ss:$16 sps:$4 sm:$0xff]  }
  0x7c   :  { %817 = vmatprep.subr.bf16.mxu0 %v3997_v59  ;;  %858 = vmatprep.subr.bf16.mxu1 %v3999_v60  ;;  %5537 = vst [vmem:[#allocation49_spill] sm:$0xff] %v4011_v0  ;;  %5538 = vst [vmem:[#allocation50_spill] sm:$0xff] %v4013_v61  ;;  %v4031_v60 = vld [vmem:[#allocation8 + $0x144] ss:$16 sps:$4 sm:$0xff]   ;;  %v4033_v59 = vld [vmem:[#allocation8 + $0x14c] ss:$16 sps:$4 sm:$0xff]  }
  0x7d   :  { %5544 = vst [vmem:[#allocation56_spill] sm:$0xff] %v4031_v60  ;;  %5545 = vst [vmem:[#allocation57_spill] sm:$0xff] %v4033_v59 }
  0x7f   :  { %818 = vmatpush2.bf16.msra.mxu0 %v4001_v57  ;;  %859 = vmatpush2.bf16.msra.mxu1 %v4003_v58  ;;  %v4025_v58 = vld [vmem:[#allocation8 + $0x160] ss:$16 sps:$4 sm:$0xff]   ;;  %v4027_v57 = vld [vmem:[#allocation8 + $0x168] ss:$16 sps:$4 sm:$0xff]  }
  0x80   :  { %819 = vmatprep.subr.bf16.mxu0 %v4009_v63  ;;  %860 = vmatprep.subr.bf16.mxu1 %v4011_v0  ;;  %5542 = vst [vmem:[#allocation54_spill] sm:$0xff] %v4025_v58  ;;  %5543 = vst [vmem:[#allocation55_spill] sm:$0xff] %v4027_v57  ;;  %v4037_v0 = vld [vmem:[#allocation8 + $0x140] ss:$16 sps:$4 sm:$0xff]  }
  0x81   :  { %5546 = vst [vmem:[#allocation58_spill] sm:$0xff] %v4037_v0 }
  0x83   :  { %820 = vmatpush2.bf16.msra.mxu0 %v4013_v61  ;;  %861 = vmatpush2.bf16.msra.mxu1 %v4015_v62  ;;  %v4039_v61 = vld [vmem:[#allocation8 + $0x148] ss:$16 sps:$4 sm:$0xff]   ;;  %v4043_v62 = vld [vmem:[#allocation8 + $0x124] ss:$16 sps:$4 sm:$0xff]  }
  0x84   :  { %821 = vmatprep.subr.bf16.mxu0 %v4017_v56  ;;  %862 = vmatprep.subr.bf16.mxu1 %v4019_v55  ;;  %5547 = vst [vmem:[#allocation59_spill] sm:$0xff] %v4039_v61  ;;  %5548 = vst [vmem:[#allocation60_spill] sm:$0xff] %v4043_v62  ;;  %v4045_v56 = vld [vmem:[#allocation8 + $0x12c] ss:$16 sps:$4 sm:$0xff]   ;;  %v3730_v55 = vmov 0.0|0.0  }
  0x85   :  { %5549 = vst [vmem:[#allocation61_spill] sm:$0xff] %v4045_v56  ;;  %829 = vmatprep.mubr.bf16.mxu0 %v3730_v55  ;;  %870 = vmatprep.mubr.bf16.mxu1 %v3730_v55  ;;  %v4061_v55 = vld [vmem:[#allocation8 + $0x100] ss:$16 sps:$4 sm:$0xff]  }
  0x86   :  { %5554 = vst [vmem:[#allocation66_spill] sm:$0xff] %v4061_v55 }
  0x87   :  { %822 = vmatpush2.bf16.msra.mxu0 %v4025_v58  ;;  %863 = vmatpush2.bf16.msra.mxu1 %v4027_v57  ;;  %v4049_v57 = vld [vmem:[#allocation8 + $0x120] ss:$16 sps:$4 sm:$0xff]   ;;  %v4051_v58 = vld [vmem:[#allocation8 + $0x128] ss:$16 sps:$4 sm:$0xff]  }
  0x88   :  { %823 = vmatprep.subr.bf16.mxu0 %v4031_v60  ;;  %864 = vmatprep.subr.bf16.mxu1 %v4033_v59  ;;  %5550 = vst [vmem:[#allocation62_spill] sm:$0xff] %v4049_v57  ;;  %5551 = vst [vmem:[#allocation63_spill] sm:$0xff] %v4051_v58  ;;  %v4055_v59 = vld [vmem:[#allocation8 + $0x104] ss:$16 sps:$4 sm:$0xff]   ;;  %v4057_v60 = vld [vmem:[#allocation8 + $0x10c] ss:$16 sps:$4 sm:$0xff]  }
  0x89   :  { %5552 = vst [vmem:[#allocation64_spill] sm:$0xff] %v4055_v59  ;;  %5553 = vst [vmem:[#allocation65_spill] sm:$0xff] %v4057_v60 }
  0x8b   :  { %824 = vmatpush2.bf16.msra.mxu0 %v4037_v0  ;;  %865 = vmatpush2.bf16.msra.mxu1 %v4039_v61  ;;  %v4063_v0 = vld [vmem:[#allocation8 + $0x108] ss:$16 sps:$4 sm:$0xff]  }
  0x8c   :  { %825 = vmatprep.subr.bf16.mxu0 %v4043_v62  ;;  %866 = vmatprep.subr.bf16.mxu1 %v4045_v56  ;;  %5555 = vst [vmem:[#allocation67_spill] sm:$0xff] %v4063_v0  ;;  %v3731_v56 = vmov 1966171168   ;;  %v423_v62 = vlaneseq }
  0x8e   :  { %v424_v61 = vshrl.u32 %v423_v62, 7 }
  0x8f   :  { %826 = vmatpush2.bf16.msra.mxu0 %v4049_v57  ;;  %867 = vmatpush2.bf16.msra.mxu1 %v4051_v58  ;;  %v421_v57 = vunpack.c.l.s4 %v3731_v56 }
  0x90   :  { %827 = vmatprep.subr.bf16.mxu0 %v4055_v59  ;;  %868 = vmatprep.subr.bf16.mxu1 %v4057_v60 }
  0x91   :  { %v422_v58 = vunpack.c.0.s8 %v421_v57 }
  0x93   :  { %828 = vmatpush2.bf16.msra.mxu0 %v4061_v55  ;;  %869 = vmatpush2.bf16.msra.mxu1 %v4063_v0  ;;  %v4071_v53 = vsub.s32 %v422_v58, %v424_v61 }
  0x94   :  { %906 = vmatprep.subr.bf16.mxu0 %v3779_v1  ;;  %947 = vmatprep.subr.bf16.mxu1 %v3781_v2 }
 0x116   :  { %v366_v63 = vpop.f32.mrf.mxu0  ;;  %v407_v54 = vpop.f32.mrf.mxu1 }
 0x118   :  { %v368_v59 = vpop.f32.mrf.mxu0  ;;  %v409_v52 = vpop.f32.mrf.mxu1 }
 0x119   :  { %v418_v60 = vcombine.low %v366_v63, %v368_v59  ;;  %v419_v51 = vcombine.low %v407_v54, %v409_v52 }
 0x11a   :  { %v370_v55 = vpop.f32.mrf.mxu0  ;;  %v411_v50 = vpop.f32.mrf.mxu1 }
 0x11b   :  { %v426_v0 = vrot.slane %v418_v60, %v4071_v53  ;;  %v433_v1 = vrot.slane %v419_v51, %v4071_v53 }
 0x11c   :  { %v371_v2 = vpop.f32.mrf.mxu0  ;;  %v412_v49 = vpop.f32.mrf.mxu1 }
 0x11d   :  { %v434_v56 = vcombine.low %v426_v0, %v433_v1 }
 0x11f   :  { %v441_v57 = vrot.slane %v434_v56, %v4071_v53 }
 0x121   :  { %v443_v62 = vadd.f32 %v441_v57, %v171_v48 }
 0x123   :  { %v2847_v47 = vmul.f32 -1.442695, %v443_v62  ;;  %v451_v58 = vrot.slane %v443_v62, 1  ;;  %v462_v59 = vrot.slane %v443_v62, 3  ;;  %v459_v50 = vrot.slane %v443_v62, 2 }
 0x125   :  { %3163 = vpow2.f32 %v2847_v47  ;;  %v2848_v61 = vmul.f32 -1.442695, %v451_v58  ;;  %v2849_v52 = vmul.f32 -1.442695, %v462_v59  ;;  %v5556_v59 = vmov 0  }
 0x127   :  { %3165 = vpow2.f32 %v2848_v61 }
 0x128   :  { %3167 = vpow2.f32 %v2849_v52  ;;  %v5575_v52 = vld [vmem:[#allocation36_spill] sm:$0xff] }
 0x132   :  { %v3164_v54 = vpop.eup %3163 }
 0x133   :  { %v447_v63 = vadd.f32 1.0, %v3164_v54  ;;  %v5576_v54 = vld [vmem:[#allocation37_spill] sm:$0xff] }
 0x134   :  { %v3166_v60 = vpop.eup %3165 }
 0x135   :  { %3169 = vrcp.f32 %v447_v63  ;;  %v456_v2 = vadd.f32 1.0, %v3166_v60  ;;  %v3168_v0 = vpop.eup %3167  ;;  %v5578_v63 = vld [vmem:[#allocation39_spill] sm:$0xff]  ;;  %v5579_v60 = vld [vmem:[#allocation40_spill] sm:$0xff] }
 0x136   :  { %3171 = vtanh.f32 %v459_v50  ;;  %v467_v51 = vadd.f32 1.0, %v3168_v0  ;;  %v5577_v50 = vld [vmem:[#allocation38_spill] sm:$0xff] }
 0x137   :  { %3173 = vrcp.f32 %v456_v2  ;;  %v5580_v2 = vld [vmem:[#allocation41_spill] sm:$0xff]  ;;  %v5581_v0 = vld [vmem:[#allocation42_spill] sm:$0xff] }
 0x138   :  { %3175 = vrcp.f32 %v467_v51  ;;  %v5585_v51 = vld [vmem:[#allocation46_spill] sm:$0xff] }
 0x142   :  { %v3170_v1 = vpop.eup %3169 }
 0x143   :  { %v3172_v49 = vpop.eup %3171 }
 0x144   :  { %v3174_v48 = vpop.eup %3173  ;;  %v471_v47 = vmul.f32 %v3172_v49, %v3170_v1  ;;  %v5582_v1 = vld [vmem:[#allocation43_spill] sm:$0xff]  ;;  %v5583_v49 = vld [vmem:[#allocation44_spill] sm:$0xff] }
 0x145   :  { %v470_v55 = vmul.f32 0.0, %v3174_v48  ;;  %v3176_v57 = vpop.eup %3175  ;;  %v5584_v48 = vld [vmem:[#allocation45_spill] sm:$0xff] }
 0x147   :  { %v4076_v56 = vadd.f32 %v471_v47, %v470_v55  ;;  %v5586_v55 = vld [vmem:[#allocation47_spill] sm:$0xff]  ;;  %v5587_v47 = vld [vmem:[#allocation48_spill] sm:$0xff] }
 0x149   :  { %3177 = vtanh.f32 %v4076_v56 }
 0x156   :  { %v3178_v62 = vpop.eup %3177 }
 0x157   :  { %v474_v58 = vmul.f32 %v3178_v62, %v3176_v57  ;;  %v5588_v57 = vld [vmem:[#allocation49_spill] sm:$0xff]  ;;  %v5589_v62 = vld [vmem:[#allocation50_spill] sm:$0xff] }
 0x159   :  { %v475_v61 = vpack.c.bf16 %v474_v58, %v474_v58  ;;  %v5590_v58 = vld [vmem:[#allocation51_spill] sm:$0xff] }
 0x15b   :  { %830 = vmatmul.mubr.bf16.vlgmr.msra.gmra.mxu0 %v475_v61  ;;  %871 = vmatmul.mubr.bf16.vlgmr.msra.gmra.mxu1 %v475_v61 }
 0x15c   :  { %907 = vmatpush1.bf16.msra.mxu0 %v3784_v3  ;;  %948 = vmatpush1.bf16.msra.mxu1 %v3786_v4  ;;  %v5557_v3 = vld [vmem:[#allocation18_spill] sm:$0xff]  ;;  %v5558_v4 = vld [vmem:[#allocation19_spill] sm:$0xff] }
 0x15d   :  { %908 = vmatprep.subr.bf16.mxu0 %v3789_v5  ;;  %949 = vmatprep.subr.bf16.mxu1 %v3793_v6  ;;  %v5559_v5 = vld [vmem:[#allocation20_spill] sm:$0xff]  ;;  %v5560_v6 = vld [vmem:[#allocation21_spill] sm:$0xff] }
 0x15e   :  { %938 = vmatprep.mubr.bf16.mxu0 %v5556_v59  ;;  %979 = vmatprep.mubr.bf16.mxu1 %v5556_v59 }
 0x160   :  { %909 = vmatpush1.bf16.msra.mxu0 %v3795_v7  ;;  %950 = vmatpush1.bf16.msra.mxu1 %v3798_v8  ;;  %v5561_v7 = vld [vmem:[#allocation22_spill] sm:$0xff]  ;;  %v5562_v8 = vld [vmem:[#allocation23_spill] sm:$0xff] }
 0x161   :  { %910 = vmatprep.subr.bf16.mxu0 %v3801_v9  ;;  %951 = vmatprep.subr.bf16.mxu1 %v3803_v10  ;;  %v5563_v9 = vld [vmem:[#allocation24_spill] sm:$0xff]  ;;  %v5564_v10 = vld [vmem:[#allocation25_spill] sm:$0xff] }
 0x164   :  { %911 = vmatpush1.bf16.msra.mxu0 %v3805_v11  ;;  %952 = vmatpush1.bf16.msra.mxu1 %v3807_v12  ;;  %v5565_v11 = vld [vmem:[#allocation26_spill] sm:$0xff]  ;;  %v5566_v12 = vld [vmem:[#allocation27_spill] sm:$0xff] }
 0x165   :  { %912 = vmatprep.subr.bf16.mxu0 %v3811_v13  ;;  %953 = vmatprep.subr.bf16.mxu1 %v3815_v14  ;;  %v5567_v13 = vld [vmem:[#allocation28_spill] sm:$0xff]  ;;  %v5568_v14 = vld [vmem:[#allocation29_spill] sm:$0xff] }
 0x168   :  { %913 = vmatpush1.bf16.msra.mxu0 %v3817_v15  ;;  %954 = vmatpush1.bf16.msra.mxu1 %v3821_v16  ;;  %v5569_v15 = vld [vmem:[#allocation30_spill] sm:$0xff]  ;;  %v5570_v16 = vld [vmem:[#allocation31_spill] sm:$0xff] }
 0x169   :  { %914 = vmatprep.subr.bf16.mxu0 %v3823_v17  ;;  %955 = vmatprep.subr.bf16.mxu1 %v3827_v18  ;;  %v5571_v17 = vld [vmem:[#allocation32_spill] sm:$0xff]  ;;  %v5572_v18 = vld [vmem:[#allocation33_spill] sm:$0xff] }
 0x16c   :  { %915 = vmatpush1.bf16.msra.mxu0 %v3829_v19  ;;  %956 = vmatpush1.bf16.msra.mxu1 %v3831_v20  ;;  %v5573_v19 = vld [vmem:[#allocation34_spill] sm:$0xff]  ;;  %v5574_v20 = vld [vmem:[#allocation35_spill] sm:$0xff] }
 0x16d   :  { %916 = vmatprep.subr.bf16.mxu0 %v3835_v21  ;;  %957 = vmatprep.subr.bf16.mxu1 %v3839_v22 }
 0x170   :  { %917 = vmatpush1.bf16.msra.mxu0 %v3841_v23  ;;  %958 = vmatpush1.bf16.msra.mxu1 %v3845_v24 }
 0x171   :  { %918 = vmatprep.subr.bf16.mxu0 %v3847_v25  ;;  %959 = vmatprep.subr.bf16.mxu1 %v3851_v26 }
 0x174   :  { %919 = vmatpush1.bf16.msra.mxu0 %v3853_v27  ;;  %960 = vmatpush1.bf16.msra.mxu1 %v3855_v28 }
 0x175   :  { %920 = vmatprep.subr.bf16.mxu0 %v3857_v29  ;;  %961 = vmatprep.subr.bf16.mxu1 %v3859_v30 }
 0x178   :  { %921 = vmatpush1.bf16.msra.mxu0 %v3865_v31  ;;  %962 = vmatpush1.bf16.msra.mxu1 %v3867_v32 }
 0x179   :  { %1051 = vmatprep.subr.bf16.mxu0 %v3877_v33  ;;  %1092 = vmatprep.subr.bf16.mxu1 %v3879_v34 }
 0x17b   :  { %939 = vmatmul.mubr.bf16.vlgmr.msra.gmra.mxu0 %v475_v61  ;;  %980 = vmatmul.mubr.bf16.vlgmr.msra.gmra.mxu1 %v475_v61  ;;  %v5591_v61 = vld [vmem:[#allocation52_spill] sm:$0xff] }
 0x17c   :  { %1052 = vmatpush1.bf16.msra.mxu0 %v3881_v35  ;;  %1093 = vmatpush1.bf16.msra.mxu1 %v3883_v36 }
 0x17d   :  { %1053 = vmatprep.subr.bf16.mxu0 %v3889_v37  ;;  %1094 = vmatprep.subr.bf16.mxu1 %v3891_v38 }
 0x180   :  { %1054 = vmatpush1.bf16.msra.mxu0 %v3893_v39  ;;  %1095 = vmatpush1.bf16.msra.mxu1 %v3895_v40 }
 0x181   :  { %1055 = vmatprep.subr.bf16.mxu0 %v3901_v41  ;;  %1096 = vmatprep.subr.bf16.mxu1 %v3903_v42 }
 0x184   :  { %1056 = vmatpush1.bf16.msra.mxu0 %v3905_v43  ;;  %1097 = vmatpush1.bf16.msra.mxu1 %v3907_v44 }
 0x185   :  { %1057 = vmatprep.subr.bf16.mxu0 %v3913_v45  ;;  %1098 = vmatprep.subr.bf16.mxu1 %v3915_v46 }
 0x188   :  { %1058 = vmatpush1.bf16.msra.mxu0 %v5557_v3  ;;  %1099 = vmatpush1.bf16.msra.mxu1 %v5558_v4 }
 0x189   :  { %1059 = vmatprep.subr.bf16.mxu0 %v5559_v5  ;;  %1100 = vmatprep.subr.bf16.mxu1 %v5560_v6 }
 0x18c   :  { %1060 = vmatpush1.bf16.msra.mxu0 %v5561_v7  ;;  %1101 = vmatpush1.bf16.msra.mxu1 %v5562_v8 }
 0x18d   :  { %1061 = vmatprep.subr.bf16.mxu0 %v5563_v9  ;;  %1102 = vmatprep.subr.bf16.mxu1 %v5564_v10 }
 0x190   :  { %1062 = vmatpush1.bf16.msra.mxu0 %v5565_v11  ;;  %1103 = vmatpush1.bf16.msra.mxu1 %v5566_v12 }
 0x191   :  { %1063 = vmatprep.subr.bf16.mxu0 %v5567_v13  ;;  %1104 = vmatprep.subr.bf16.mxu1 %v5568_v14 }
 0x194   :  { %1064 = vmatpush1.bf16.msra.mxu0 %v5569_v15  ;;  %1105 = vmatpush1.bf16.msra.mxu1 %v5570_v16 }
 0x195   :  { %1065 = vmatprep.subr.bf16.mxu0 %v5571_v17  ;;  %1106 = vmatprep.subr.bf16.mxu1 %v5572_v18  ;;  %v905_v17 = vld [vmem:[#allocation3 + $0x1] ss:$8 sm:$0xf] }
 0x198   :  { %1066 = vmatpush1.bf16.msra.mxu0 %v5573_v19  ;;  %1107 = vmatpush1.bf16.msra.mxu1 %v5574_v20 }
 0x199   :  { %1067 = vmatprep.subr.bf16.mxu0 %v5575_v52  ;;  %1108 = vmatprep.subr.bf16.mxu1 %v5576_v54 }
 0x19c   :  { %1068 = vmatpush2.bf16.msra.mxu0 %v5577_v50  ;;  %1109 = vmatpush2.bf16.msra.mxu1 %v5578_v63 }
 0x19d   :  { %1069 = vmatprep.subr.bf16.mxu0 %v5579_v60  ;;  %1110 = vmatprep.subr.bf16.mxu1 %v5580_v2 }
 0x1a0   :  { %1070 = vmatpush2.bf16.msra.mxu0 %v5581_v0  ;;  %1111 = vmatpush2.bf16.msra.mxu1 %v5582_v1  ;;  %v5592_v0 = vld [vmem:[#allocation53_spill] sm:$0xff]  ;;  %v5593_v1 = vld [vmem:[#allocation54_spill] sm:$0xff] }
 0x1a1   :  { %1071 = vmatprep.subr.bf16.mxu0 %v5583_v49  ;;  %1112 = vmatprep.subr.bf16.mxu1 %v5584_v48  ;;  %v5594_v49 = vld [vmem:[#allocation55_spill] sm:$0xff]  ;;  %v5595_v48 = vld [vmem:[#allocation56_spill] sm:$0xff] }
 0x1a4   :  { %1072 = vmatpush2.bf16.msra.mxu0 %v5585_v51  ;;  %1113 = vmatpush2.bf16.msra.mxu1 %v5586_v55  ;;  %v5596_v51 = vld [vmem:[#allocation57_spill] sm:$0xff]  ;;  %v5597_v55 = vld [vmem:[#allocation58_spill] sm:$0xff] }
 0x1a5   :  { %1073 = vmatprep.subr.bf16.mxu0 %v5587_v47  ;;  %1114 = vmatprep.subr.bf16.mxu1 %v5588_v57  ;;  %v5598_v47 = vld [vmem:[#allocation59_spill] sm:$0xff]  ;;  %v5599_v57 = vld [vmem:[#allocation60_spill] sm:$0xff] }
 0x1a8   :  { %1074 = vmatpush2.bf16.msra.mxu0 %v5589_v62  ;;  %1115 = vmatpush2.bf16.msra.mxu1 %v5590_v58  ;;  %v5600_v62 = vld [vmem:[#allocation61_spill] sm:$0xff]  ;;  %v5601_v58 = vld [vmem:[#allocation62_spill] sm:$0xff] }
 0x1a9   :  { %1075 = vmatprep.subr.bf16.mxu0 %v5591_v61  ;;  %1116 = vmatprep.subr.bf16.mxu1 %v5592_v0  ;;  %v5602_v61 = vld [vmem:[#allocation63_spill] sm:$0xff]  ;;  %v5603_v0 = vld [vmem:[#allocation64_spill] sm:$0xff] }
 0x1ac   :  { %1076 = vmatpush2.bf16.msra.mxu0 %v5593_v1  ;;  %1117 = vmatpush2.bf16.msra.mxu1 %v5594_v49  ;;  %v5604_v1 = vld [vmem:[#allocation65_spill] sm:$0xff]  ;;  %v5605_v49 = vld [vmem:[#allocation66_spill] sm:$0xff] }
 0x1ad   :  { %1077 = vmatprep.subr.bf16.mxu0 %v5595_v48  ;;  %1118 = vmatprep.subr.bf16.mxu1 %v5596_v51  ;;  %v5606_v48 = vld [vmem:[#allocation67_spill] sm:$0xff]  ;;  %v5607_v51 = vld [vmem:[#allocation16_spill] sm:$0xff] }
 0x1b0   :  { %1078 = vmatpush2.bf16.msra.mxu0 %v5597_v55  ;;  %1119 = vmatpush2.bf16.msra.mxu1 %v5598_v47  ;;  %v5608_v55 = vld [vmem:[#allocation17_spill] sm:$0xff] }
 0x1b1   :  { %1079 = vmatprep.subr.bf16.mxu0 %v5599_v57  ;;  %1120 = vmatprep.subr.bf16.mxu1 %v5600_v62 }
 0x1b4   :  { %1080 = vmatpush2.bf16.msra.mxu0 %v5601_v58  ;;  %1121 = vmatpush2.bf16.msra.mxu1 %v5602_v61 }
 0x1b5   :  { %1081 = vmatprep.subr.bf16.mxu0 %v5603_v0  ;;  %1122 = vmatprep.subr.bf16.mxu1 %v5604_v1 }
 0x1b8   :  { %1082 = vmatpush2.bf16.msra.mxu0 %v5605_v49  ;;  %1123 = vmatpush2.bf16.msra.mxu1 %v5606_v48 }
 0x1b9   :  { %1160 = vmatprep.subr.bf16.mxu0 %v5607_v51  ;;  %1201 = vmatprep.subr.bf16.mxu1 %v5608_v55 }
 0x21b   :  { %v831_v47 = vpop.f32.mrf.mxu0  ;;  %v872_v57 = vpop.f32.mrf.mxu1 }
 0x21c   :  { %v2914_v2 = vmul.f32 -1.442695, %v831_v47 }
 0x21d   :  { %v833_v62 = vpop.f32.mrf.mxu0  ;;  %v874_v60 = vpop.f32.mrf.mxu1 }
 0x21e   :  { %3179 = vpow2.f32 %v2914_v2  ;;  %v2915_v58 = vmul.f32 -1.442695, %v833_v62  ;;  %v2916_v50 = vmul.f32 -1.442695, %v874_v60 }
 0x21f   :  { %v835_v61 = vpop.f32.mrf.mxu0  ;;  %v876_v63 = vpop.f32.mrf.mxu1 }
 0x220   :  { %3181 = vpow2.f32 %v2915_v58 }
 0x221   :  { %v836_v0 = vpop.f32.mrf.mxu0  ;;  %v877_v1 = vpop.f32.mrf.mxu1  ;;  %3183 = vpow2.f32 %v2916_v50 }
 0x22b   :  { %v3180_v49 = vpop.eup %3179 }
 0x22c   :  { %v882_v54 = vadd.f32 1.0, %v3180_v49 }
 0x22d   :  { %v3182_v48 = vpop.eup %3181 }
 0x22e   :  { %3185 = vrcp.f32 %v882_v54  ;;  %v888_v51 = vadd.f32 1.0, %v3182_v48  ;;  %v3184_v55 = vpop.eup %3183 }
 0x22f   :  { %3187 = vtanh.f32 %v872_v57  ;;  %v895_v61 = vadd.f32 1.0, %v3184_v55 }
 0x230   :  { %3189 = vrcp.f32 %v888_v51 }
 0x231   :  { %3191 = vrcp.f32 %v895_v61 }
 0x23b   :  { %v3186_v47 = vpop.eup %3185  ;;  %v940_v52 = vpop.f32.mrf.mxu0 }
 0x23c   :  { %v981_v20 = vpop.f32.mrf.mxu1  ;;  %v3188_v2 = vpop.eup %3187 }
 0x23d   :  { %v3190_v62 = vpop.eup %3189  ;;  %v942_v63 = vpop.f32.mrf.mxu0  ;;  %v899_v1 = vmul.f32 %v3188_v2, %v3186_v47 }
 0x23e   :  { %v983_v58 = vpop.f32.mrf.mxu1  ;;  %v898_v0 = vmul.f32 0.0, %v3190_v62  ;;  %v992_v60 = vcombine.low %v940_v52, %v942_v63  ;;  %v3192_v2 = vpop.eup %3191 }
 0x23f   :  { %v993_v19 = vcombine.low %v981_v20, %v983_v58  ;;  %v944_v49 = vpop.f32.mrf.mxu0 }
 0x240   :  { %v985_v18 = vpop.f32.mrf.mxu1  ;;  %v4177_v50 = vadd.f32 %v899_v1, %v898_v0  ;;  %v1000_v54 = vrot.slane %v992_v60, %v4071_v53 }
 0x241   :  { %v1007_v48 = vrot.slane %v993_v19, %v4071_v53  ;;  %v945_v57 = vpop.f32.mrf.mxu0 }
 0x242   :  { %v986_v51 = vpop.f32.mrf.mxu1  ;;  %3193 = vtanh.f32 %v4177_v50 }
 0x243   :  { %v1008_v55 = vcombine.low %v1000_v54, %v1007_v48 }
 0x245   :  { %v1015_v62 = vrot.slane %v1008_v55, %v4071_v53 }
 0x247   :  { %v1017_v47 = vadd.f32 %v1015_v62, %v905_v17 }
 0x249   :  { %v2917_v52 = vmul.f32 -1.442695, %v1017_v47  ;;  %v1025_v20 = vrot.slane %v1017_v47, 1  ;;  %v1036_v0 = vrot.slane %v1017_v47, 3  ;;  %v1033_v60 = vrot.slane %v1017_v47, 2 }
 0x24b   :  { %3195 = vpow2.f32 %v2917_v52  ;;  %v2918_v18 = vmul.f32 -1.442695, %v1025_v20  ;;  %v2919_v61 = vmul.f32 -1.442695, %v1036_v0  ;;  %v4187_v0 = vld [vmem:[#allocation6 + $0xe0] ss:$16 sps:$4 sm:$0xff]  }
 0x24d   :  { %3197 = vpow2.f32 %v2918_v18 }
 0x24e   :  { %3199 = vpow2.f32 %v2919_v61  ;;  %v4196_v61 = vld [vmem:[#allocation6 + $0xcc] ss:$16 sps:$4 sm:$0xff]  }
 0x24f   :  { %v3194_v63 = vpop.eup %3193 }
 0x250   :  { %v902_v58 = vmul.f32 %v3194_v63, %v3192_v2 }
 0x252   :  { %903 = vst [vmem:[#allocation2] sm:$0x1] %v902_v58  ;;  %v1050_v19 = vpack.c.bf16 %v902_v58, %v902_v58 }
 0x254   :  { %1083 = vmatprep.mubr.bf16.mxu0 %v1050_v19  ;;  %1124 = vmatprep.mubr.bf16.mxu1 %v1050_v19  ;;  %v4190_v19 = vld [vmem:[#allocation6 + $0xe8] ss:$16 sps:$4 sm:$0xff]  }
 0x258   :  { %v3196_v1 = vpop.eup %3195 }
 0x259   :  { %v1021_v49 = vadd.f32 1.0, %v3196_v1  ;;  %v4201_v1 = vld [vmem:[#allocation6 + $0xc0] ss:$16 sps:$4 sm:$0xff]  }
 0x25a   :  { %v3198_v54 = vpop.eup %3197 }
 0x25b   :  { %3201 = vrcp.f32 %v1021_v49  ;;  %v1030_v17 = vadd.f32 1.0, %v3198_v54  ;;  %v3200_v48 = vpop.eup %3199  ;;  %v4207_v49 = vld [vmem:[#allocation6 + $0xa4] ss:$16 sps:$4 sm:$0xff]   ;;  %v4210_v54 = vld [vmem:[#allocation6 + $0xac] ss:$16 sps:$4 sm:$0xff]  }
 0x25c   :  { %3203 = vtanh.f32 %v1033_v60  ;;  %v1041_v62 = vadd.f32 1.0, %v3200_v48  ;;  %v4204_v60 = vld [vmem:[#allocation6 + $0xc8] ss:$16 sps:$4 sm:$0xff]  }
 0x25d   :  { %3205 = vrcp.f32 %v1030_v17  ;;  %v4213_v17 = vld [vmem:[#allocation6 + $0xa0] ss:$16 sps:$4 sm:$0xff]   ;;  %v4216_v48 = vld [vmem:[#allocation6 + $0xa8] ss:$16 sps:$4 sm:$0xff]  }
 0x25e   :  { %3207 = vrcp.f32 %v1041_v62  ;;  %v4228_v62 = vld [vmem:[#allocation6 + $0x88] ss:$16 sps:$4 sm:$0xff]  }
 0x268   :  { %v3202_v57 = vpop.eup %3201 }
 0x269   :  { %v3204_v51 = vpop.eup %3203 }
 0x26a   :  { %v3206_v55 = vpop.eup %3205  ;;  %v1045_v20 = vmul.f32 %v3204_v51, %v3202_v57  ;;  %v4219_v57 = vld [vmem:[#allocation6 + $0x84] ss:$16 sps:$4 sm:$0xff]   ;;  %v4222_v51 = vld [vmem:[#allocation6 + $0x8c] ss:$16 sps:$4 sm:$0xff]  }
 0x26b   :  { %v1044_v52 = vmul.f32 %v3206_v55, %v4076_v56  ;;  %v3208_v47 = vpop.eup %3207  ;;  %v4193_v56 = vld [vmem:[#allocation6 + $0xc4] ss:$16 sps:$4 sm:$0xff]   ;;  %v4225_v55 = vld [vmem:[#allocation6 + $0x80] ss:$16 sps:$4 sm:$0xff]  }
 0x26d   :  { %v4184_v18 = vadd.f32 %v1045_v20, %v1044_v52  ;;  %v4231_v52 = vld [vmem:[#allocation6 + $0x64] ss:$16 sps:$4 sm:$0xff]   ;;  %v4234_v20 = vld [vmem:[#allocation6 + $0x6c] ss:$16 sps:$4 sm:$0xff]  }
 0x26f   :  { %3209 = vtanh.f32 %v4184_v18 }
 0x27c   :  { %v3210_v2 = vpop.eup %3209 }
 0x27d   :  { %v1048_v63 = vmul.f32 %v3210_v2, %v3208_v47  ;;  %v4237_v47 = vld [vmem:[#allocation6 + $0x60] ss:$16 sps:$4 sm:$0xff]   ;;  %v4240_v2 = vld [vmem:[#allocation6 + $0x68] ss:$16 sps:$4 sm:$0xff]  }
 0x27f   :  { %v1049_v58 = vpack.c.bf16 %v1048_v63, %v1048_v63 }
 0x281   :  { %1084 = vmatmul.mubr.bf16.vlgmr.msra.gmra.mxu0 %v1049_v58  ;;  %1125 = vmatmul.mubr.bf16.vlgmr.msra.gmra.mxu1 %v1049_v58 }
 0x282   :  { %1161 = vmatpush1.bf16.msra.mxu0 %v4187_v0  ;;  %1202 = vmatpush1.bf16.msra.mxu1 %v4190_v19 }
 0x283   :  { %1162 = vmatprep.subr.bf16.mxu0 %v4193_v56  ;;  %1203 = vmatprep.subr.bf16.mxu1 %v4196_v61 }
 0x284   :  { %1192 = vmatprep.mubr.bf16.mxu0 %v5556_v59  ;;  %1233 = vmatprep.mubr.bf16.mxu1 %v5556_v59 }
 0x286   :  { %1163 = vmatpush1.bf16.msra.mxu0 %v4201_v1  ;;  %1204 = vmatpush1.bf16.msra.mxu1 %v4204_v60 }
 0x287   :  { %1164 = vmatprep.subr.bf16.mxu0 %v4207_v49  ;;  %1205 = vmatprep.subr.bf16.mxu1 %v4210_v54 }
 0x28a   :  { %1165 = vmatpush1.bf16.msra.mxu0 %v4213_v17  ;;  %1206 = vmatpush1.bf16.msra.mxu1 %v4216_v48 }
 0x28b   :  { %1166 = vmatprep.subr.bf16.mxu0 %v4219_v57  ;;  %1207 = vmatprep.subr.bf16.mxu1 %v4222_v51 }
 0x28e   :  { %1167 = vmatpush1.bf16.msra.mxu0 %v4225_v55  ;;  %1208 = vmatpush1.bf16.msra.mxu1 %v4228_v62 }
 0x28f   :  { %1168 = vmatprep.subr.bf16.mxu0 %v4231_v52  ;;  %1209 = vmatprep.subr.bf16.mxu1 %v4234_v20 }
 0x292   :  { %1169 = vmatpush1.bf16.msra.mxu0 %v4237_v47  ;;  %1210 = vmatpush1.bf16.msra.mxu1 %v4240_v2 }
 0x293   :  { %1170 = vmatprep.subr.bf16.mxu0 %v3835_v21  ;;  %1211 = vmatprep.subr.bf16.mxu1 %v3839_v22  ;;  %v5609_v21 = vld [vmem:[#allocation32_spill] sm:$0xff]  ;;  %v5610_v22 = vld [vmem:[#allocation33_spill] sm:$0xff] }
 0x296   :  { %1171 = vmatpush1.bf16.msra.mxu0 %v3841_v23  ;;  %1212 = vmatpush1.bf16.msra.mxu1 %v3845_v24  ;;  %v5611_v23 = vld [vmem:[#allocation34_spill] sm:$0xff]  ;;  %v5612_v24 = vld [vmem:[#allocation35_spill] sm:$0xff] }
 0x297   :  { %1172 = vmatprep.subr.bf16.mxu0 %v3847_v25  ;;  %1213 = vmatprep.subr.bf16.mxu1 %v3851_v26  ;;  %v5613_v25 = vld [vmem:[#allocation36_spill] sm:$0xff]  ;;  %v5614_v26 = vld [vmem:[#allocation37_spill] sm:$0xff] }
 0x29a   :  { %1173 = vmatpush1.bf16.msra.mxu0 %v3853_v27  ;;  %1214 = vmatpush1.bf16.msra.mxu1 %v3855_v28  ;;  %v5615_v27 = vld [vmem:[#allocation38_spill] sm:$0xff]  ;;  %v5616_v28 = vld [vmem:[#allocation39_spill] sm:$0xff] }
 0x29b   :  { %1174 = vmatprep.subr.bf16.mxu0 %v3857_v29  ;;  %1215 = vmatprep.subr.bf16.mxu1 %v3859_v30  ;;  %v5617_v29 = vld [vmem:[#allocation40_spill] sm:$0xff]  ;;  %v5618_v30 = vld [vmem:[#allocation41_spill] sm:$0xff] }
 0x29e   :  { %1175 = vmatpush1.bf16.msra.mxu0 %v3865_v31  ;;  %1216 = vmatpush1.bf16.msra.mxu1 %v3867_v32  ;;  %v5619_v31 = vld [vmem:[#allocation42_spill] sm:$0xff]  ;;  %v5620_v32 = vld [vmem:[#allocation43_spill] sm:$0xff] }
 0x29f   :  { %1305 = vmatprep.subr.bf16.mxu0 %v3877_v33  ;;  %1346 = vmatprep.subr.bf16.mxu1 %v3879_v34  ;;  %v5621_v33 = vld [vmem:[#allocation44_spill] sm:$0xff]  ;;  %v5622_v34 = vld [vmem:[#allocation45_spill] sm:$0xff] }
 0x2a1   :  { %1193 = vmatmul.mubr.bf16.vlgmr.msra.gmra.mxu0 %v1049_v58  ;;  %1234 = vmatmul.mubr.bf16.vlgmr.msra.gmra.mxu1 %v1049_v58 }
 0x2a2   :  { %1306 = vmatpush1.bf16.msra.mxu0 %v3881_v35  ;;  %1347 = vmatpush1.bf16.msra.mxu1 %v3883_v36  ;;  %v5623_v35 = vld [vmem:[#allocation46_spill] sm:$0xff]  ;;  %v5624_v36 = vld [vmem:[#allocation47_spill] sm:$0xff] }
 0x2a3   :  { %1307 = vmatprep.subr.bf16.mxu0 %v3889_v37  ;;  %1348 = vmatprep.subr.bf16.mxu1 %v3891_v38  ;;  %v5625_v37 = vld [vmem:[#allocation48_spill] sm:$0xff]  ;;  %v5626_v38 = vld [vmem:[#allocation49_spill] sm:$0xff] }
 0x2a6   :  { %1308 = vmatpush1.bf16.msra.mxu0 %v3893_v39  ;;  %1349 = vmatpush1.bf16.msra.mxu1 %v3895_v40  ;;  %v5627_v39 = vld [vmem:[#allocation50_spill] sm:$0xff]  ;;  %v5628_v40 = vld [vmem:[#allocation51_spill] sm:$0xff] }
 0x2a7   :  { %1309 = vmatprep.subr.bf16.mxu0 %v3901_v41  ;;  %1350 = vmatprep.subr.bf16.mxu1 %v3903_v42  ;;  %v5629_v41 = vld [vmem:[#allocation52_spill] sm:$0xff]  ;;  %v5630_v42 = vld [vmem:[#allocation53_spill] sm:$0xff] }
 0x2aa   :  { %1310 = vmatpush1.bf16.msra.mxu0 %v3905_v43  ;;  %1351 = vmatpush1.bf16.msra.mxu1 %v3907_v44  ;;  %v5631_v43 = vld [vmem:[#allocation54_spill] sm:$0xff]  ;;  %v5632_v44 = vld [vmem:[#allocation55_spill] sm:$0xff] }
 0x2ab   :  { %1311 = vmatprep.subr.bf16.mxu0 %v3913_v45  ;;  %1352 = vmatprep.subr.bf16.mxu1 %v3915_v46  ;;  %v5633_v45 = vld [vmem:[#allocation56_spill] sm:$0xff]  ;;  %v5634_v46 = vld [vmem:[#allocation57_spill] sm:$0xff] }
 0x2ae   :  { %1312 = vmatpush1.bf16.msra.mxu0 %v5557_v3  ;;  %1353 = vmatpush1.bf16.msra.mxu1 %v5558_v4  ;;  %v5635_v3 = vld [vmem:[#allocation58_spill] sm:$0xff]  ;;  %v5636_v4 = vld [vmem:[#allocation59_spill] sm:$0xff] }
 0x2af   :  { %1313 = vmatprep.subr.bf16.mxu0 %v5559_v5  ;;  %1354 = vmatprep.subr.bf16.mxu1 %v5560_v6  ;;  %v5637_v5 = vld [vmem:[#allocation60_spill] sm:$0xff]  ;;  %v5638_v6 = vld [vmem:[#allocation61_spill] sm:$0xff] }
 0x2b2   :  { %1314 = vmatpush1.bf16.msra.mxu0 %v5561_v7  ;;  %1355 = vmatpush1.bf16.msra.mxu1 %v5562_v8  ;;  %v5639_v7 = vld [vmem:[#allocation62_spill] sm:$0xff]  ;;  %v5640_v8 = vld [vmem:[#allocation63_spill] sm:$0xff] }
 0x2b3   :  { %1315 = vmatprep.subr.bf16.mxu0 %v5563_v9  ;;  %1356 = vmatprep.subr.bf16.mxu1 %v5564_v10  ;;  %v5641_v9 = vld [vmem:[#allocation64_spill] sm:$0xff]  ;;  %v5642_v10 = vld [vmem:[#allocation65_spill] sm:$0xff] }
 0x2b6   :  { %1316 = vmatpush1.bf16.msra.mxu0 %v5565_v11  ;;  %1357 = vmatpush1.bf16.msra.mxu1 %v5566_v12  ;;  %v5643_v11 = vld [vmem:[#allocation66_spill] sm:$0xff]  ;;  %v5644_v12 = vld [vmem:[#allocation67_spill] sm:$0xff] }
 0x2b7   :  { %1317 = vmatprep.subr.bf16.mxu0 %v5567_v13  ;;  %1358 = vmatprep.subr.bf16.mxu1 %v5568_v14  ;;  %v4319_v13 = vld [vmem:[#allocation6 + $0xe4] ss:$16 sps:$4 sm:$0xff]   ;;  %v4322_v14 = vld [vmem:[#allocation6 + $0xec] ss:$16 sps:$4 sm:$0xff]  }
 0x2b8   :  { %5645 = vst [vmem:[#allocation18_spill] sm:$0xff] %v4319_v13  ;;  %5646 = vst [vmem:[#allocation19_spill] sm:$0xff] %v4322_v14 }
 0x2ba   :  { %1318 = vmatpush1.bf16.msra.mxu0 %v5569_v15  ;;  %1359 = vmatpush1.bf16.msra.mxu1 %v5570_v16 }
 0x2bb   :  { %1319 = vmatprep.subr.bf16.mxu0 %v5609_v21  ;;  %1360 = vmatprep.subr.bf16.mxu1 %v5610_v22 }
 0x2be   :  { %1320 = vmatpush1.bf16.msra.mxu0 %v5611_v23  ;;  %1361 = vmatpush1.bf16.msra.mxu1 %v5612_v24 }
 0x2bf   :  { %1321 = vmatprep.subr.bf16.mxu0 %v5613_v25  ;;  %1362 = vmatprep.subr.bf16.mxu1 %v5614_v26 }
 0x2c2   :  { %1322 = vmatpush2.bf16.msra.mxu0 %v5615_v27  ;;  %1363 = vmatpush2.bf16.msra.mxu1 %v5616_v28 }
 0x2c3   :  { %1323 = vmatprep.subr.bf16.mxu0 %v5617_v29  ;;  %1364 = vmatprep.subr.bf16.mxu1 %v5618_v30 }
 0x2c6   :  { %1324 = vmatpush2.bf16.msra.mxu0 %v5619_v31  ;;  %1365 = vmatpush2.bf16.msra.mxu1 %v5620_v32 }
 0x2c7   :  { %1325 = vmatprep.subr.bf16.mxu0 %v5621_v33  ;;  %1366 = vmatprep.subr.bf16.mxu1 %v5622_v34 }
 0x2ca   :  { %1326 = vmatpush2.bf16.msra.mxu0 %v5623_v35  ;;  %1367 = vmatpush2.bf16.msra.mxu1 %v5624_v36 }
 0x2cb   :  { %1327 = vmatprep.subr.bf16.mxu0 %v5625_v37  ;;  %1368 = vmatprep.subr.bf16.mxu1 %v5626_v38 }
 0x2ce   :  { %1328 = vmatpush2.bf16.msra.mxu0 %v5627_v39  ;;  %1369 = vmatpush2.bf16.msra.mxu1 %v5628_v40 }
 0x2cf   :  { %1329 = vmatprep.subr.bf16.mxu0 %v5629_v41  ;;  %1370 = vmatprep.subr.bf16.mxu1 %v5630_v42 }
 0x2d2   :  { %1330 = vmatpush2.bf16.msra.mxu0 %v5631_v43  ;;  %1371 = vmatpush2.bf16.msra.mxu1 %v5632_v44 }
 0x2d3   :  { %1331 = vmatprep.subr.bf16.mxu0 %v5633_v45  ;;  %1372 = vmatprep.subr.bf16.mxu1 %v5634_v46 }
 0x2d6   :  { %1332 = vmatpush2.bf16.msra.mxu0 %v5635_v3  ;;  %1373 = vmatpush2.bf16.msra.mxu1 %v5636_v4 }
 0x2d7   :  { %1333 = vmatprep.subr.bf16.mxu0 %v5637_v5  ;;  %1374 = vmatprep.subr.bf16.mxu1 %v5638_v6 }
 0x2da   :  { %1334 = vmatpush2.bf16.msra.mxu0 %v5639_v7  ;;  %1375 = vmatpush2.bf16.msra.mxu1 %v5640_v8 }
 0x2db   :  { %1335 = vmatprep.subr.bf16.mxu0 %v5641_v9  ;;  %1376 = vmatprep.subr.bf16.mxu1 %v5642_v10  ;;  %v1159_v9 = vld [vmem:[#allocation3 + $0x2] ss:$8 sm:$0xf] }
 0x2de   :  { %1336 = vmatpush2.bf16.msra.mxu0 %v5643_v11  ;;  %1377 = vmatpush2.bf16.msra.mxu1 %v5644_v12 }
 0x2df   :  { %1414 = vmatprep.subr.bf16.mxu0 %v4319_v13  ;;  %1455 = vmatprep.subr.bf16.mxu1 %v4322_v14 }
 0x341   :  { %v1085_v15 = vpop.f32.mrf.mxu0  ;;  %v1126_v16 = vpop.f32.mrf.mxu1 }
 0x342   :  { %v2920_v63 = vmul.f32 -1.442695, %v1085_v15 }
 0x343   :  { %v1087_v58 = vpop.f32.mrf.mxu0  ;;  %v1128_v21 = vpop.f32.mrf.mxu1 }
 0x344   :  { %3211 = vpow2.f32 %v2920_v63  ;;  %v2921_v22 = vmul.f32 -1.442695, %v1087_v58  ;;  %v2922_v27 = vmul.f32 -1.442695, %v1128_v21 }
 0x345   :  { %v1089_v23 = vpop.f32.mrf.mxu0  ;;  %v1130_v24 = vpop.f32.mrf.mxu1 }
 0x346   :  { %3213 = vpow2.f32 %v2921_v22 }
 0x347   :  { %v1090_v25 = vpop.f32.mrf.mxu0  ;;  %v1131_v26 = vpop.f32.mrf.mxu1  ;;  %3215 = vpow2.f32 %v2922_v27 }
 0x351   :  { %v3212_v28 = vpop.eup %3211 }
 0x352   :  { %v1136_v29 = vadd.f32 1.0, %v3212_v28 }
 0x353   :  { %v3214_v30 = vpop.eup %3213 }
 0x354   :  { %3217 = vrcp.f32 %v1136_v29  ;;  %v1142_v31 = vadd.f32 1.0, %v3214_v30  ;;  %v3216_v32 = vpop.eup %3215 }
 0x355   :  { %3219 = vtanh.f32 %v1126_v16  ;;  %v1149_v38 = vadd.f32 1.0, %v3216_v32 }
 0x356   :  { %3221 = vrcp.f32 %v1142_v31 }
 0x357   :  { %3223 = vrcp.f32 %v1149_v38 }
 0x361   :  { %v3218_v33 = vpop.eup %3217  ;;  %v1194_v34 = vpop.f32.mrf.mxu0 }
 0x362   :  { %v1235_v35 = vpop.f32.mrf.mxu1  ;;  %v3220_v36 = vpop.eup %3219 }
 0x363   :  { %v3222_v37 = vpop.eup %3221  ;;  %v1196_v39 = vpop.f32.mrf.mxu0  ;;  %v1153_v41 = vmul.f32 %v3220_v36, %v3218_v33 }
 0x364   :  { %v1237_v40 = vpop.f32.mrf.mxu1  ;;  %v1152_v42 = vmul.f32 %v3222_v37, %v4177_v50  ;;  %v1246_v43 = vcombine.low %v1194_v34, %v1196_v39  ;;  %v3224_v16 = vpop.eup %3223 }
 0x365   :  { %v1247_v44 = vcombine.low %v1235_v35, %v1237_v40  ;;  %v1198_v45 = vpop.f32.mrf.mxu0 }
 0x366   :  { %v1239_v46 = vpop.f32.mrf.mxu1  ;;  %v4326_v3 = vadd.f32 %v1153_v41, %v1152_v42  ;;  %v1254_v4 = vrot.slane %v1246_v43, %v4071_v53  ;;  %v4359_v41 = vld [vmem:[#allocation6 + $0x4c] ss:$16 sps:$4 sm:$0xff]   ;;  %v4362_v42 = vld [vmem:[#allocation6 + $0x40] ss:$16 sps:$4 sm:$0xff]   ;;  %v4365_v43 = vld [vmem:[#allocation6 + $0x48] ss:$16 sps:$4 sm:$0xff]  }
 0x367   :  { %v1261_v5 = vrot.slane %v1247_v44, %v4071_v53  ;;  %v1199_v6 = vpop.f32.mrf.mxu0  ;;  %v4368_v44 = vld [vmem:[#allocation6 + $0x24] ss:$16 sps:$4 sm:$0xff]   ;;  %v4371_v45 = vld [vmem:[#allocation6 + $0x2c] ss:$16 sps:$4 sm:$0xff]   ;;  %v4374_v46 = vld [vmem:[#allocation6 + $0x20] ss:$16 sps:$4 sm:$0xff]  }
 0x368   :  { %v1240_v7 = vpop.f32.mrf.mxu1  ;;  %3225 = vtanh.f32 %v4326_v3  ;;  %v4383_v6 = vld [vmem:[#allocation6 + $0xc] ss:$16 sps:$4 sm:$0xff]  }
 0x369   :  { %v1262_v8 = vcombine.low %v1254_v4, %v1261_v5  ;;  %v4377_v4 = vld [vmem:[#allocation6 + $0x28] ss:$16 sps:$4 sm:$0xff]   ;;  %v4380_v5 = vld [vmem:[#allocation6 + $0x4] ss:$16 sps:$4 sm:$0xff]   ;;  %v4386_v7 = vld [vmem:[#allocation6] ss:$16 sps:$4 sm:$0xff]  }
 0x36b   :  { %v1269_v10 = vrot.slane %v1262_v8, %v4071_v53  ;;  %v4389_v8 = vld [vmem:[#allocation6 + $0x8] ss:$16 sps:$4 sm:$0xff]  }
 0x36d   :  { %v1271_v50 = vadd.f32 %v1269_v10, %v1159_v9  ;;  %v4392_v9 = vld [vmem:[#allocation8 + $0xe4] ss:$16 sps:$4 sm:$0xff]   ;;  %v4395_v10 = vld [vmem:[#allocation8 + $0xec] ss:$16 sps:$4 sm:$0xff]  }
 0x36f   :  { %v2923_v11 = vmul.f32 -1.442695, %v1271_v50  ;;  %v1279_v12 = vrot.slane %v1271_v50, 1  ;;  %v1290_v21 = vrot.slane %v1271_v50, 3  ;;  %v1287_v25 = vrot.slane %v1271_v50, 2 }
 0x370   :  { %v4398_v50 = vld [vmem:[#allocation8 + $0xe0] ss:$16 sps:$4 sm:$0xff]  }
 0x371   :  { %3227 = vpow2.f32 %v2923_v11  ;;  %v2924_v15 = vmul.f32 -1.442695, %v1279_v12  ;;  %v2925_v23 = vmul.f32 -1.442695, %v1290_v21  ;;  %v4401_v11 = vld [vmem:[#allocation8 + $0xe8] ss:$16 sps:$4 sm:$0xff]  }
 0x372   :  { %v4404_v12 = vld [vmem:[#allocation8 + $0xc4] ss:$16 sps:$4 sm:$0xff]   ;;  %v4419_v21 = vld [vmem:[#allocation8 + $0xac] ss:$16 sps:$4 sm:$0xff]  }
 0x373   :  { %3229 = vpow2.f32 %v2924_v15  ;;  %v4407_v15 = vld [vmem:[#allocation8 + $0xcc] ss:$16 sps:$4 sm:$0xff]   ;;  %5647 = vst [vmem:[#allocation20_spill] sm:$0xff] %v4419_v21 }
 0x374   :  { %3231 = vpow2.f32 %v2925_v23  ;;  %v4425_v23 = vld [vmem:[#allocation8 + $0xa8] ss:$16 sps:$4 sm:$0xff]  }
 0x375   :  { %v3226_v63 = vpop.eup %3225  ;;  %5649 = vst [vmem:[#allocation22_spill] sm:$0xff] %v4425_v23 }
 0x376   :  { %v1156_v58 = vmul.f32 %v3226_v63, %v3224_v16  ;;  %v4410_v16 = vld [vmem:[#allocation8 + $0xc0] ss:$16 sps:$4 sm:$0xff]   ;;  %v4413_v63 = vld [vmem:[#allocation8 + $0xc8] ss:$16 sps:$4 sm:$0xff]  }
 0x378   :  { %1157 = vst [vmem:[#allocation2 + $0x1] sm:$0x1] %v1156_v58  ;;  %v1304_v22 = vpack.c.bf16 %v1156_v58, %v1156_v58  ;;  %v4416_v58 = vld [vmem:[#allocation8 + $0xa4] ss:$16 sps:$4 sm:$0xff]  }
 0x37a   :  { %1337 = vmatprep.mubr.bf16.mxu0 %v1304_v22  ;;  %1378 = vmatprep.mubr.bf16.mxu1 %v1304_v22  ;;  %v4422_v22 = vld [vmem:[#allocation8 + $0xa0] ss:$16 sps:$4 sm:$0xff]  }
 0x37b   :  { %5648 = vst [vmem:[#allocation21_spill] sm:$0xff] %v4422_v22 }
 0x37e   :  { %v3228_v24 = vpop.eup %3227 }
 0x37f   :  { %v1275_v26 = vadd.f32 1.0, %v3228_v24  ;;  %v4428_v24 = vld [vmem:[#allocation8 + $0x84] ss:$16 sps:$4 sm:$0xff]  }
 0x380   :  { %v3230_v27 = vpop.eup %3229  ;;  %5650 = vst [vmem:[#allocation23_spill] sm:$0xff] %v4428_v24 }
 0x381   :  { %3233 = vrcp.f32 %v1275_v26  ;;  %v1284_v28 = vadd.f32 1.0, %v3230_v27  ;;  %v3232_v29 = vpop.eup %3231  ;;  %v4434_v26 = vld [vmem:[#allocation8 + $0x80] ss:$16 sps:$4 sm:$0xff]   ;;  %v4437_v27 = vld [vmem:[#allocation8 + $0x88] ss:$16 sps:$4 sm:$0xff]  }
 0x382   :  { %3235 = vtanh.f32 %v1287_v25  ;;  %v1295_v33 = vadd.f32 1.0, %v3232_v29  ;;  %v4431_v25 = vld [vmem:[#allocation8 + $0x8c] ss:$16 sps:$4 sm:$0xff]   ;;  %5652 = vst [vmem:[#allocation25_spill] sm:$0xff] %v4434_v26  ;;  %5653 = vst [vmem:[#allocation26_spill] sm:$0xff] %v4437_v27 }
 0x383   :  { %3237 = vrcp.f32 %v1284_v28  ;;  %5651 = vst [vmem:[#allocation24_spill] sm:$0xff] %v4431_v25  ;;  %v4440_v28 = vld [vmem:[#allocation8 + $0x64] ss:$16 sps:$4 sm:$0xff]   ;;  %v4443_v29 = vld [vmem:[#allocation8 + $0x6c] ss:$16 sps:$4 sm:$0xff]  }
 0x384   :  { %3239 = vrcp.f32 %v1295_v33  ;;  %5654 = vst [vmem:[#allocation27_spill] sm:$0xff] %v4440_v28  ;;  %5655 = vst [vmem:[#allocation28_spill] sm:$0xff] %v4443_v29  ;;  %v4455_v33 = vld [vmem:[#allocation8 + $0x4c] ss:$16 sps:$4 sm:$0xff]  }
 0x385   :  { %5659 = vst [vmem:[#allocation16_spill] sm:$0xff] %v4455_v33 }
 0x38e   :  { %v3234_v30 = vpop.eup %3233 }
 0x38f   :  { %v3236_v31 = vpop.eup %3235 }
 0x390   :  { %v3238_v32 = vpop.eup %3237  ;;  %v1299_v35 = vmul.f32 %v3236_v31, %v3234_v30  ;;  %v4446_v30 = vld [vmem:[#allocation8 + $0x60] ss:$16 sps:$4 sm:$0xff]   ;;  %v4449_v31 = vld [vmem:[#allocation8 + $0x68] ss:$16 sps:$4 sm:$0xff]  }
 0x391   :  { %v1298_v34 = vmul.f32 %v3238_v32, %v4184_v18  ;;  %v3240_v37 = vpop.eup %3239  ;;  %v4356_v18 = vld [vmem:[#allocation6 + $0x44] ss:$16 sps:$4 sm:$0xff]   ;;  %5656 = vst [vmem:[#allocation29_spill] sm:$0xff] %v4446_v30  ;;  %5657 = vst [vmem:[#allocation30_spill] sm:$0xff] %v4449_v31 }
 0x392   :  { %v4452_v32 = vld [vmem:[#allocation8 + $0x44] ss:$16 sps:$4 sm:$0xff]  }
 0x393   :  { %v4333_v36 = vadd.f32 %v1299_v35, %v1298_v34  ;;  %5658 = vst [vmem:[#allocation31_spill] sm:$0xff] %v4452_v32  ;;  %v4458_v34 = vld [vmem:[#allocation8 + $0x40] ss:$16 sps:$4 sm:$0xff]   ;;  %v4461_v35 = vld [vmem:[#allocation8 + $0x48] ss:$16 sps:$4 sm:$0xff]  }
 0x394   :  { %5660 = vst [vmem:[#allocation17_spill] sm:$0xff] %v4458_v34  ;;  %5661 = vst [vmem:[#allocation32_spill] sm:$0xff] %v4461_v35 }
 0x395   :  { %3241 = vtanh.f32 %v4333_v36 }
 0x3a2   :  { %v3242_v38 = vpop.eup %3241 }
 0x3a3   :  { %v1302_v39 = vmul.f32 %v3242_v38, %v3240_v37  ;;  %v4464_v37 = vld [vmem:[#allocation8 + $0x24] ss:$16 sps:$4 sm:$0xff]   ;;  %v4467_v38 = vld [vmem:[#allocation8 + $0x2c] ss:$16 sps:$4 sm:$0xff]  }
 0x3a4   :  { %5662 = vst [vmem:[#allocation33_spill] sm:$0xff] %v4464_v37  ;;  %5663 = vst [vmem:[#allocation34_spill] sm:$0xff] %v4467_v38 }
 0x3a5   :  { %v1303_v40 = vpack.c.bf16 %v1302_v39, %v1302_v39  ;;  %v4470_v39 = vld [vmem:[#allocation8 + $0x20] ss:$16 sps:$4 sm:$0xff]  }
 0x3a6   :  { %5664 = vst [vmem:[#allocation35_spill] sm:$0xff] %v4470_v39 }
 0x3a7   :  { %1338 = vmatmul.mubr.bf16.vlgmr.msra.gmra.mxu0 %v1303_v40  ;;  %1379 = vmatmul.mubr.bf16.vlgmr.msra.gmra.mxu1 %v1303_v40 }
 0x3a8   :  { %1415 = vmatpush1.bf16.msra.mxu0 %v4187_v0  ;;  %1456 = vmatpush1.bf16.msra.mxu1 %v4190_v19 }
 0x3a9   :  { %1416 = vmatprep.subr.bf16.mxu0 %v4193_v56  ;;  %1457 = vmatprep.subr.bf16.mxu1 %v4196_v61 }
 0x3aa   :  { %1446 = vmatprep.mubr.bf16.mxu0 %v5556_v59  ;;  %1487 = vmatprep.mubr.bf16.mxu1 %v5556_v59 }
 0x3ac   :  { %1417 = vmatpush1.bf16.msra.mxu0 %v4201_v1  ;;  %1458 = vmatpush1.bf16.msra.mxu1 %v4204_v60 }
 0x3ad   :  { %1418 = vmatprep.subr.bf16.mxu0 %v4207_v49  ;;  %1459 = vmatprep.subr.bf16.mxu1 %v4210_v54 }
 0x3b0   :  { %1419 = vmatpush1.bf16.msra.mxu0 %v4213_v17  ;;  %1460 = vmatpush1.bf16.msra.mxu1 %v4216_v48 }
 0x3b1   :  { %1420 = vmatprep.subr.bf16.mxu0 %v4219_v57  ;;  %1461 = vmatprep.subr.bf16.mxu1 %v4222_v51 }
 0x3b4   :  { %1421 = vmatpush1.bf16.msra.mxu0 %v4225_v55  ;;  %1462 = vmatpush1.bf16.msra.mxu1 %v4228_v62 }
 0x3b5   :  { %1422 = vmatprep.subr.bf16.mxu0 %v4231_v52  ;;  %1463 = vmatprep.subr.bf16.mxu1 %v4234_v20 }
 0x3b8   :  { %1423 = vmatpush1.bf16.msra.mxu0 %v4237_v47  ;;  %1464 = vmatpush1.bf16.msra.mxu1 %v4240_v2 }
 0x3b9   :  { %1424 = vmatprep.subr.bf16.mxu0 %v4356_v18  ;;  %1465 = vmatprep.subr.bf16.mxu1 %v4359_v41 }
 0x3bc   :  { %1425 = vmatpush1.bf16.msra.mxu0 %v4362_v42  ;;  %1466 = vmatpush1.bf16.msra.mxu1 %v4365_v43 }
 0x3bd   :  { %1426 = vmatprep.subr.bf16.mxu0 %v4368_v44  ;;  %1467 = vmatprep.subr.bf16.mxu1 %v4371_v45 }
 0x3c0   :  { %1427 = vmatpush1.bf16.msra.mxu0 %v4374_v46  ;;  %1468 = vmatpush1.bf16.msra.mxu1 %v4377_v4 }
 0x3c1   :  { %1428 = vmatprep.subr.bf16.mxu0 %v4380_v5  ;;  %1469 = vmatprep.subr.bf16.mxu1 %v4383_v6 }
 0x3c4   :  { %1429 = vmatpush1.bf16.msra.mxu0 %v4386_v7  ;;  %1470 = vmatpush1.bf16.msra.mxu1 %v4389_v8 }
 0x3c5   :  { %1559 = vmatprep.subr.bf16.mxu0 %v4392_v9  ;;  %1600 = vmatprep.subr.bf16.mxu1 %v4395_v10 }
 0x3c7   :  { %1447 = vmatmul.mubr.bf16.vlgmr.msra.gmra.mxu0 %v1303_v40  ;;  %1488 = vmatmul.mubr.bf16.vlgmr.msra.gmra.mxu1 %v1303_v40  ;;  %v4473_v40 = vld [vmem:[#allocation8 + $0x28] ss:$16 sps:$4 sm:$0xff]  }
 0x3c8   :  { %1560 = vmatpush1.bf16.msra.mxu0 %v4398_v50  ;;  %1601 = vmatpush1.bf16.msra.mxu1 %v4401_v11  ;;  %5665 = vst [vmem:[#allocation36_spill] sm:$0xff] %v4473_v40 }
 0x3c9   :  { %1561 = vmatprep.subr.bf16.mxu0 %v4404_v12  ;;  %1602 = vmatprep.subr.bf16.mxu1 %v4407_v15 }
 0x3cc   :  { %1562 = vmatpush1.bf16.msra.mxu0 %v4410_v16  ;;  %1603 = vmatpush1.bf16.msra.mxu1 %v4413_v63 }
 0x3cd   :  { %1563 = vmatprep.subr.bf16.mxu0 %v4416_v58  ;;  %1604 = vmatprep.subr.bf16.mxu1 %v4419_v21 }
 0x3d0   :  { %1564 = vmatpush1.bf16.msra.mxu0 %v4422_v22  ;;  %1605 = vmatpush1.bf16.msra.mxu1 %v4425_v23 }
 0x3d1   :  { %1565 = vmatprep.subr.bf16.mxu0 %v4428_v24  ;;  %1606 = vmatprep.subr.bf16.mxu1 %v4431_v25 }
 0x3d4   :  { %1566 = vmatpush1.bf16.msra.mxu0 %v4434_v26  ;;  %1607 = vmatpush1.bf16.msra.mxu1 %v4437_v27 }
 0x3d5   :  { %1567 = vmatprep.subr.bf16.mxu0 %v4440_v28  ;;  %1608 = vmatprep.subr.bf16.mxu1 %v4443_v29 }
 0x3d8   :  { %1568 = vmatpush1.bf16.msra.mxu0 %v4446_v30  ;;  %1609 = vmatpush1.bf16.msra.mxu1 %v4449_v31 }
 0x3d9   :  { %1569 = vmatprep.subr.bf16.mxu0 %v4452_v32  ;;  %1610 = vmatprep.subr.bf16.mxu1 %v4455_v33 }
 0x3dc   :  { %1570 = vmatpush1.bf16.msra.mxu0 %v4458_v34  ;;  %1611 = vmatpush1.bf16.msra.mxu1 %v4461_v35  ;;  %v4476_v34 = vld [vmem:[#allocation8 + $0x4] ss:$16 sps:$4 sm:$0xff]   ;;  %v4479_v35 = vld [vmem:[#allocation8 + $0xc] ss:$16 sps:$4 sm:$0xff]  }
 0x3dd   :  { %1571 = vmatprep.subr.bf16.mxu0 %v4464_v37  ;;  %1612 = vmatprep.subr.bf16.mxu1 %v4467_v38  ;;  %5666 = vst [vmem:[#allocation37_spill] sm:$0xff] %v4476_v34  ;;  %5667 = vst [vmem:[#allocation38_spill] sm:$0xff] %v4479_v35  ;;  %v4482_v37 = vld [vmem:[#allocation8] ss:$16 sps:$4 sm:$0xff]   ;;  %v4485_v38 = vld [vmem:[#allocation8 + $0x8] ss:$16 sps:$4 sm:$0xff]  }
 0x3de   :  { %5668 = vst [vmem:[#allocation39_spill] sm:$0xff] %v4482_v37  ;;  %5669 = vst [vmem:[#allocation40_spill] sm:$0xff] %v4485_v38 }
 0x3e0   :  { %1572 = vmatpush1.bf16.msra.mxu0 %v4470_v39  ;;  %1613 = vmatpush1.bf16.msra.mxu1 %v4473_v40  ;;  %v4488_v39 = vld [vmem:[#allocation8 + $0x1e4] ss:$16 sps:$4 sm:$0xff]   ;;  %v4491_v40 = vld [vmem:[#allocation8 + $0x1ec] ss:$16 sps:$4 sm:$0xff]  }
 0x3e1   :  { %1573 = vmatprep.subr.bf16.mxu0 %v4476_v34  ;;  %1614 = vmatprep.subr.bf16.mxu1 %v4479_v35  ;;  %5670 = vst [vmem:[#allocation41_spill] sm:$0xff] %v4488_v39  ;;  %5671 = vst [vmem:[#allocation42_spill] sm:$0xff] %v4491_v40  ;;  %v4494_v34 = vld [vmem:[#allocation8 + $0x1e0] ss:$16 sps:$4 sm:$0xff]   ;;  %v4497_v35 = vld [vmem:[#allocation8 + $0x1e8] ss:$16 sps:$4 sm:$0xff]  }
 0x3e2   :  { %5672 = vst [vmem:[#allocation43_spill] sm:$0xff] %v4494_v34  ;;  %5673 = vst [vmem:[#allocation44_spill] sm:$0xff] %v4497_v35 }
 0x3e4   :  { %1574 = vmatpush1.bf16.msra.mxu0 %v4482_v37  ;;  %1615 = vmatpush1.bf16.msra.mxu1 %v4485_v38  ;;  %v4500_v37 = vld [vmem:[#allocation8 + $0x1c4] ss:$16 sps:$4 sm:$0xff]   ;;  %v4503_v38 = vld [vmem:[#allocation8 + $0x1cc] ss:$16 sps:$4 sm:$0xff]  }
 0x3e5   :  { %1575 = vmatprep.subr.bf16.mxu0 %v4488_v39  ;;  %1616 = vmatprep.subr.bf16.mxu1 %v4491_v40  ;;  %5674 = vst [vmem:[#allocation45_spill] sm:$0xff] %v4500_v37  ;;  %5675 = vst [vmem:[#allocation46_spill] sm:$0xff] %v4503_v38  ;;  %v4506_v39 = vld [vmem:[#allocation8 + $0x1c0] ss:$16 sps:$4 sm:$0xff]   ;;  %v4509_v40 = vld [vmem:[#allocation8 + $0x1c8] ss:$16 sps:$4 sm:$0xff]  }
 0x3e6   :  { %5676 = vst [vmem:[#allocation47_spill] sm:$0xff] %v4506_v39  ;;  %5677 = vst [vmem:[#allocation48_spill] sm:$0xff] %v4509_v40 }
 0x3e8   :  { %1576 = vmatpush2.bf16.msra.mxu0 %v4494_v34  ;;  %1617 = vmatpush2.bf16.msra.mxu1 %v4497_v35  ;;  %v4512_v34 = vld [vmem:[#allocation8 + $0x1a4] ss:$16 sps:$4 sm:$0xff]   ;;  %v4515_v35 = vld [vmem:[#allocation8 + $0x1ac] ss:$16 sps:$4 sm:$0xff]  }
 0x3e9   :  { %1577 = vmatprep.subr.bf16.mxu0 %v4500_v37  ;;  %1618 = vmatprep.subr.bf16.mxu1 %v4503_v38  ;;  %5678 = vst [vmem:[#allocation49_spill] sm:$0xff] %v4512_v34  ;;  %5679 = vst [vmem:[#allocation50_spill] sm:$0xff] %v4515_v35  ;;  %v4518_v37 = vld [vmem:[#allocation8 + $0x1a0] ss:$16 sps:$4 sm:$0xff]   ;;  %v4521_v38 = vld [vmem:[#allocation8 + $0x1a8] ss:$16 sps:$4 sm:$0xff]  }
 0x3ea   :  { %5680 = vst [vmem:[#allocation51_spill] sm:$0xff] %v4518_v37  ;;  %5681 = vst [vmem:[#allocation52_spill] sm:$0xff] %v4521_v38 }
 0x3ec   :  { %1578 = vmatpush2.bf16.msra.mxu0 %v4506_v39  ;;  %1619 = vmatpush2.bf16.msra.mxu1 %v4509_v40  ;;  %v4524_v39 = vld [vmem:[#allocation8 + $0x184] ss:$16 sps:$4 sm:$0xff]   ;;  %v4527_v40 = vld [vmem:[#allocation8 + $0x18c] ss:$16 sps:$4 sm:$0xff]  }
 0x3ed   :  { %1579 = vmatprep.subr.bf16.mxu0 %v4512_v34  ;;  %1620 = vmatprep.subr.bf16.mxu1 %v4515_v35  ;;  %5682 = vst [vmem:[#allocation53_spill] sm:$0xff] %v4524_v39  ;;  %5683 = vst [vmem:[#allocation54_spill] sm:$0xff] %v4527_v40  ;;  %v4530_v34 = vld [vmem:[#allocation8 + $0x180] ss:$16 sps:$4 sm:$0xff]   ;;  %v4533_v35 = vld [vmem:[#allocation8 + $0x188] ss:$16 sps:$4 sm:$0xff]  }
 0x3ee   :  { %5684 = vst [vmem:[#allocation55_spill] sm:$0xff] %v4530_v34  ;;  %5685 = vst [vmem:[#allocation56_spill] sm:$0xff] %v4533_v35 }
 0x3f0   :  { %1580 = vmatpush2.bf16.msra.mxu0 %v4518_v37  ;;  %1621 = vmatpush2.bf16.msra.mxu1 %v4521_v38  ;;  %v4536_v37 = vld [vmem:[#allocation8 + $0x164] ss:$16 sps:$4 sm:$0xff]   ;;  %v4539_v38 = vld [vmem:[#allocation8 + $0x16c] ss:$16 sps:$4 sm:$0xff]  }
 0x3f1   :  { %1581 = vmatprep.subr.bf16.mxu0 %v4524_v39  ;;  %1622 = vmatprep.subr.bf16.mxu1 %v4527_v40  ;;  %5686 = vst [vmem:[#allocation57_spill] sm:$0xff] %v4536_v37  ;;  %5687 = vst [vmem:[#allocation58_spill] sm:$0xff] %v4539_v38  ;;  %v4542_v39 = vld [vmem:[#allocation8 + $0x160] ss:$16 sps:$4 sm:$0xff]   ;;  %v4545_v40 = vld [vmem:[#allocation8 + $0x168] ss:$16 sps:$4 sm:$0xff]  }
 0x3f2   :  { %5688 = vst [vmem:[#allocation59_spill] sm:$0xff] %v4542_v39  ;;  %5689 = vst [vmem:[#allocation60_spill] sm:$0xff] %v4545_v40 }
 0x3f4   :  { %1582 = vmatpush2.bf16.msra.mxu0 %v4530_v34  ;;  %1623 = vmatpush2.bf16.msra.mxu1 %v4533_v35  ;;  %v4548_v34 = vld [vmem:[#allocation8 + $0x144] ss:$16 sps:$4 sm:$0xff]   ;;  %v4551_v35 = vld [vmem:[#allocation8 + $0x14c] ss:$16 sps:$4 sm:$0xff]  }
 0x3f5   :  { %1583 = vmatprep.subr.bf16.mxu0 %v4536_v37  ;;  %1624 = vmatprep.subr.bf16.mxu1 %v4539_v38  ;;  %5690 = vst [vmem:[#allocation61_spill] sm:$0xff] %v4548_v34  ;;  %5691 = vst [vmem:[#allocation62_spill] sm:$0xff] %v4551_v35  ;;  %v4554_v37 = vld [vmem:[#allocation8 + $0x140] ss:$16 sps:$4 sm:$0xff]   ;;  %v4557_v38 = vld [vmem:[#allocation8 + $0x148] ss:$16 sps:$4 sm:$0xff]  }
 0x3f6   :  { %5692 = vst [vmem:[#allocation63_spill] sm:$0xff] %v4554_v37  ;;  %5693 = vst [vmem:[#allocation64_spill] sm:$0xff] %v4557_v38 }
 0x3f8   :  { %1584 = vmatpush2.bf16.msra.mxu0 %v4542_v39  ;;  %1625 = vmatpush2.bf16.msra.mxu1 %v4545_v40  ;;  %v4560_v39 = vld [vmem:[#allocation8 + $0x124] ss:$16 sps:$4 sm:$0xff]   ;;  %v4563_v40 = vld [vmem:[#allocation8 + $0x12c] ss:$16 sps:$4 sm:$0xff]  }
 0x3f9   :  { %1585 = vmatprep.subr.bf16.mxu0 %v4548_v34  ;;  %1626 = vmatprep.subr.bf16.mxu1 %v4551_v35  ;;  %5694 = vst [vmem:[#allocation65_spill] sm:$0xff] %v4560_v39  ;;  %5695 = vst [vmem:[#allocation66_spill] sm:$0xff] %v4563_v40  ;;  %v4566_v34 = vld [vmem:[#allocation8 + $0x120] ss:$16 sps:$4 sm:$0xff]   ;;  %v4569_v35 = vld [vmem:[#allocation8 + $0x128] ss:$16 sps:$4 sm:$0xff]  }
 0x3fa   :  { %5696 = vst [vmem:[#allocation67_spill] sm:$0xff] %v4566_v34  ;;  %5697 = vst [vmem:[#allocation68_spill] sm:$0xff] %v4569_v35 }
 0x3fc   :  { %1586 = vmatpush2.bf16.msra.mxu0 %v4554_v37  ;;  %1627 = vmatpush2.bf16.msra.mxu1 %v4557_v38  ;;  %v4572_v37 = vld [vmem:[#allocation8 + $0x104] ss:$16 sps:$4 sm:$0xff]   ;;  %v4575_v38 = vld [vmem:[#allocation8 + $0x10c] ss:$16 sps:$4 sm:$0xff]  }
 0x3fd   :  { %1587 = vmatprep.subr.bf16.mxu0 %v4560_v39  ;;  %1628 = vmatprep.subr.bf16.mxu1 %v4563_v40  ;;  %5698 = vst [vmem:[#allocation69_spill] sm:$0xff] %v4572_v37  ;;  %5699 = vst [vmem:[#allocation70_spill] sm:$0xff] %v4575_v38  ;;  %v4578_v39 = vld [vmem:[#allocation8 + $0x100] ss:$16 sps:$4 sm:$0xff]   ;;  %v4581_v40 = vld [vmem:[#allocation8 + $0x108] ss:$16 sps:$4 sm:$0xff]  }
 0x3fe   :  { %5700 = vst [vmem:[#allocation71_spill] sm:$0xff] %v4578_v39  ;;  %5701 = vst [vmem:[#allocation72_spill] sm:$0xff] %v4581_v40 }
 0x400   :  { %1588 = vmatpush2.bf16.msra.mxu0 %v4566_v34  ;;  %1629 = vmatpush2.bf16.msra.mxu1 %v4569_v35 }
 0x401   :  { %1589 = vmatprep.subr.bf16.mxu0 %v4572_v37  ;;  %1630 = vmatprep.subr.bf16.mxu1 %v4575_v38 }
 0x404   :  { %1590 = vmatpush2.bf16.msra.mxu0 %v4578_v39  ;;  %1631 = vmatpush2.bf16.msra.mxu1 %v4581_v40 }
 0x405   :  { %1668 = vmatprep.subr.bf16.mxu0 %v4319_v13  ;;  %1709 = vmatprep.subr.bf16.mxu1 %v4322_v14 }
 0x467   :  { %v1339_v35 = vpop.f32.mrf.mxu0  ;;  %v1380_v34 = vpop.f32.mrf.mxu1 }
 0x468   :  { %v2926_v33 = vmul.f32 -1.442695, %v1339_v35 }
 0x469   :  { %v1341_v37 = vpop.f32.mrf.mxu0  ;;  %v1382_v32 = vpop.f32.mrf.mxu1 }
 0x46a   :  { %3243 = vpow2.f32 %v2926_v33  ;;  %v2927_v31 = vmul.f32 -1.442695, %v1341_v37  ;;  %v2928_v28 = vmul.f32 -1.442695, %v1382_v32 }
 0x46b   :  { %v1343_v38 = vpop.f32.mrf.mxu0  ;;  %v1384_v30 = vpop.f32.mrf.mxu1 }
 0x46c   :  { %3245 = vpow2.f32 %v2927_v31 }
 0x46d   :  { %v1344_v29 = vpop.f32.mrf.mxu0  ;;  %v1385_v39 = vpop.f32.mrf.mxu1  ;;  %3247 = vpow2.f32 %v2928_v28 }
 0x477   :  { %v3244_v27 = vpop.eup %3243 }
 0x478   :  { %v1390_v26 = vadd.f32 1.0, %v3244_v27 }
 0x479   :  { %v3246_v40 = vpop.eup %3245 }
 0x47a   :  { %3249 = vrcp.f32 %v1390_v26  ;;  %v1396_v13 = vadd.f32 1.0, %v3246_v40  ;;  %v3248_v14 = vpop.eup %3247 }
 0x47b   :  { %3251 = vtanh.f32 %v1380_v34  ;;  %v1403_v38 = vadd.f32 1.0, %v3248_v14  ;;  %v1413_v14 = vld [vmem:[#allocation3 + $0x3] ss:$8 sm:$0xf] }
 0x47c   :  { %3253 = vrcp.f32 %v1396_v13 }
 0x47d   :  { %3255 = vrcp.f32 %v1403_v38 }
 0x487   :  { %v3250_v35 = vpop.eup %3249  ;;  %v1448_v25 = vpop.f32.mrf.mxu0 }
 0x488   :  { %v1489_v24 = vpop.f32.mrf.mxu1  ;;  %v3252_v33 = vpop.eup %3251 }
 0x489   :  { %v3254_v37 = vpop.eup %3253  ;;  %v1450_v30 = vpop.f32.mrf.mxu0  ;;  %v1407_v29 = vmul.f32 %v3252_v33, %v3250_v35 }
 0x48a   :  { %v1491_v31 = vpop.f32.mrf.mxu1  ;;  %v1406_v32 = vmul.f32 %v3254_v37, %v4326_v3  ;;  %v1500_v39 = vcombine.low %v1448_v25, %v1450_v30  ;;  %v3256_v33 = vpop.eup %3255 }
 0x48b   :  { %v1501_v27 = vcombine.low %v1489_v24, %v1491_v31  ;;  %v1452_v23 = vpop.f32.mrf.mxu0 }
 0x48c   :  { %v1493_v28 = vpop.f32.mrf.mxu1  ;;  %v4587_v26 = vadd.f32 %v1407_v29, %v1406_v32  ;;  %v1508_v13 = vrot.slane %v1500_v39, %v4071_v53 }
 0x48d   :  { %v1515_v34 = vrot.slane %v1501_v27, %v4071_v53  ;;  %v1453_v40 = vpop.f32.mrf.mxu0 }
 0x48e   :  { %v1494_v22 = vpop.f32.mrf.mxu1  ;;  %3257 = vtanh.f32 %v4587_v26 }
 0x48f   :  { %v1516_v21 = vcombine.low %v1508_v13, %v1515_v34 }
 0x491   :  { %v1523_v35 = vrot.slane %v1516_v21, %v4071_v53 }
 0x493   :  { %v1525_v3 = vadd.f32 %v1523_v35, %v1413_v14 }
 0x495   :  { %v2929_v25 = vmul.f32 -1.442695, %v1525_v3  ;;  %v1533_v24 = vrot.slane %v1525_v3, 1  ;;  %v1544_v31 = vrot.slane %v1525_v3, 3  ;;  %v1541_v32 = vrot.slane %v1525_v3, 2 }
 0x497   :  { %3259 = vpow2.f32 %v2929_v25  ;;  %v2930_v23 = vmul.f32 -1.442695, %v1533_v24  ;;  %v2931_v22 = vmul.f32 -1.442695, %v1544_v31  ;;  %v5722_v31 = vld [vmem:[#allocation38_spill] sm:$0xff] }
 0x499   :  { %3261 = vpow2.f32 %v2930_v23 }
 0x49a   :  { %3263 = vpow2.f32 %v2931_v22  ;;  %v5724_v22 = vld [vmem:[#allocation40_spill] sm:$0xff] }
 0x49b   :  { %v3258_v37 = vpop.eup %3257 }
 0x49c   :  { %v1410_v30 = vmul.f32 %v3258_v37, %v3256_v33 }
 0x49e   :  { %1411 = vst [vmem:[#allocation2 + $0x2] sm:$0x1] %v1410_v30  ;;  %v1558_v38 = vpack.c.bf16 %v1410_v30, %v1410_v30  ;;  %v5721_v30 = vld [vmem:[#allocation37_spill] sm:$0xff] }
 0x4a0   :  { %1591 = vmatprep.mubr.bf16.mxu0 %v1558_v38  ;;  %1632 = vmatprep.mubr.bf16.mxu1 %v1558_v38  ;;  %v5723_v38 = vld [vmem:[#allocation39_spill] sm:$0xff] }
 0x4a4   :  { %v3260_v29 = vpop.eup %3259 }
 0x4a5   :  { %v1529_v39 = vadd.f32 1.0, %v3260_v29  ;;  %v5725_v29 = vld [vmem:[#allocation41_spill] sm:$0xff] }
 0x4a6   :  { %v3262_v27 = vpop.eup %3261 }
 0x4a7   :  { %3265 = vrcp.f32 %v1529_v39  ;;  %v1538_v21 = vadd.f32 1.0, %v3262_v27  ;;  %v3264_v28 = vpop.eup %3263  ;;  %v5727_v39 = vld [vmem:[#allocation43_spill] sm:$0xff]  ;;  %v5728_v27 = vld [vmem:[#allocation44_spill] sm:$0xff] }
 0x4a8   :  { %3267 = vtanh.f32 %v1541_v32  ;;  %v1549_v14 = vadd.f32 1.0, %v3264_v28  ;;  %v5726_v32 = vld [vmem:[#allocation42_spill] sm:$0xff] }
 0x4a9   :  { %3269 = vrcp.f32 %v1538_v21  ;;  %v5729_v21 = vld [vmem:[#allocation45_spill] sm:$0xff]  ;;  %v5730_v28 = vld [vmem:[#allocation46_spill] sm:$0xff] }
 0x4aa   :  { %3271 = vrcp.f32 %v1549_v14  ;;  %v5734_v14 = vld [vmem:[#allocation50_spill] sm:$0xff] }
 0x4b4   :  { %v3266_v13 = vpop.eup %3265 }
 0x4b5   :  { %v3268_v34 = vpop.eup %3267 }
 0x4b6   :  { %v3270_v40 = vpop.eup %3269  ;;  %v1553_v25 = vmul.f32 %v3268_v34, %v3266_v13  ;;  %v5731_v13 = vld [vmem:[#allocation47_spill] sm:$0xff]  ;;  %v5732_v34 = vld [vmem:[#allocation48_spill] sm:$0xff] }
 0x4b7   :  { %v1552_v35 = vmul.f32 %v3270_v40, %v4333_v36  ;;  %v3272_v3 = vpop.eup %3271  ;;  %v5720_v36 = vld [vmem:[#allocation36_spill] sm:$0xff]  ;;  %v5733_v40 = vld [vmem:[#allocation49_spill] sm:$0xff] }
 0x4b9   :  { %v4594_v24 = vadd.f32 %v1553_v25, %v1552_v35  ;;  %v5735_v35 = vld [vmem:[#allocation51_spill] sm:$0xff]  ;;  %v5736_v25 = vld [vmem:[#allocation52_spill] sm:$0xff] }
 0x4bb   :  { %3273 = vtanh.f32 %v4594_v24 }
 0x4c8   :  { %v3274_v23 = vpop.eup %3273 }
 0x4c9   :  { %v1556_v33 = vmul.f32 %v3274_v23, %v3272_v3  ;;  %v5737_v3 = vld [vmem:[#allocation53_spill] sm:$0xff]  ;;  %v5738_v23 = vld [vmem:[#allocation54_spill] sm:$0xff] }
 0x4cb   :  { %v1557_v37 = vpack.c.bf16 %v1556_v33, %v1556_v33  ;;  %v5739_v33 = vld [vmem:[#allocation55_spill] sm:$0xff] }
 0x4cd   :  { %1592 = vmatmul.mubr.bf16.vlgmr.msra.gmra.mxu0 %v1557_v37  ;;  %1633 = vmatmul.mubr.bf16.vlgmr.msra.gmra.mxu1 %v1557_v37 }
 0x4ce   :  { %1669 = vmatpush1.bf16.msra.mxu0 %v4187_v0  ;;  %1710 = vmatpush1.bf16.msra.mxu1 %v4190_v19  ;;  %v5702_v0 = vld [vmem:[#allocation20_spill] sm:$0xff]  ;;  %v5703_v19 = vld [vmem:[#allocation21_spill] sm:$0xff] }
 0x4cf   :  { %1670 = vmatprep.subr.bf16.mxu0 %v4193_v56  ;;  %1711 = vmatprep.subr.bf16.mxu1 %v4196_v61  ;;  %v5704_v56 = vld [vmem:[#allocation22_spill] sm:$0xff]  ;;  %v5705_v61 = vld [vmem:[#allocation23_spill] sm:$0xff] }
 0x4d0   :  { %1700 = vmatprep.mubr.bf16.mxu0 %v5556_v59  ;;  %1741 = vmatprep.mubr.bf16.mxu1 %v5556_v59 }
 0x4d2   :  { %1671 = vmatpush1.bf16.msra.mxu0 %v4201_v1  ;;  %1712 = vmatpush1.bf16.msra.mxu1 %v4204_v60  ;;  %v5706_v1 = vld [vmem:[#allocation24_spill] sm:$0xff]  ;;  %v5707_v60 = vld [vmem:[#allocation25_spill] sm:$0xff] }
 0x4d3   :  { %1672 = vmatprep.subr.bf16.mxu0 %v4207_v49  ;;  %1713 = vmatprep.subr.bf16.mxu1 %v4210_v54  ;;  %v5708_v49 = vld [vmem:[#allocation26_spill] sm:$0xff]  ;;  %v5709_v54 = vld [vmem:[#allocation27_spill] sm:$0xff] }
 0x4d6   :  { %1673 = vmatpush1.bf16.msra.mxu0 %v4213_v17  ;;  %1714 = vmatpush1.bf16.msra.mxu1 %v4216_v48  ;;  %v5710_v17 = vld [vmem:[#allocation28_spill] sm:$0xff]  ;;  %v5711_v48 = vld [vmem:[#allocation29_spill] sm:$0xff] }
 0x4d7   :  { %1674 = vmatprep.subr.bf16.mxu0 %v4219_v57  ;;  %1715 = vmatprep.subr.bf16.mxu1 %v4222_v51  ;;  %v5712_v57 = vld [vmem:[#allocation30_spill] sm:$0xff]  ;;  %v5713_v51 = vld [vmem:[#allocation31_spill] sm:$0xff] }
 0x4da   :  { %1675 = vmatpush1.bf16.msra.mxu0 %v4225_v55  ;;  %1716 = vmatpush1.bf16.msra.mxu1 %v4228_v62  ;;  %v5714_v55 = vld [vmem:[#allocation16_spill] sm:$0xff]  ;;  %v5715_v62 = vld [vmem:[#allocation17_spill] sm:$0xff] }
 0x4db   :  { %1676 = vmatprep.subr.bf16.mxu0 %v4231_v52  ;;  %1717 = vmatprep.subr.bf16.mxu1 %v4234_v20  ;;  %v5716_v52 = vld [vmem:[#allocation32_spill] sm:$0xff]  ;;  %v5717_v20 = vld [vmem:[#allocation33_spill] sm:$0xff] }
 0x4de   :  { %1677 = vmatpush1.bf16.msra.mxu0 %v4237_v47  ;;  %1718 = vmatpush1.bf16.msra.mxu1 %v4240_v2  ;;  %v5718_v47 = vld [vmem:[#allocation34_spill] sm:$0xff]  ;;  %v5719_v2 = vld [vmem:[#allocation35_spill] sm:$0xff] }
 0x4df   :  { %1678 = vmatprep.subr.bf16.mxu0 %v4356_v18  ;;  %1719 = vmatprep.subr.bf16.mxu1 %v4359_v41 }
 0x4e2   :  { %1679 = vmatpush1.bf16.msra.mxu0 %v4362_v42  ;;  %1720 = vmatpush1.bf16.msra.mxu1 %v4365_v43 }
 0x4e3   :  { %1680 = vmatprep.subr.bf16.mxu0 %v4368_v44  ;;  %1721 = vmatprep.subr.bf16.mxu1 %v4371_v45 }
 0x4e6   :  { %1681 = vmatpush1.bf16.msra.mxu0 %v4374_v46  ;;  %1722 = vmatpush1.bf16.msra.mxu1 %v4377_v4 }
 0x4e7   :  { %1682 = vmatprep.subr.bf16.mxu0 %v4380_v5  ;;  %1723 = vmatprep.subr.bf16.mxu1 %v4383_v6 }
 0x4ea   :  { %1683 = vmatpush1.bf16.msra.mxu0 %v4386_v7  ;;  %1724 = vmatpush1.bf16.msra.mxu1 %v4389_v8 }
 0x4eb   :  { %1813 = vmatprep.subr.bf16.mxu0 %v4392_v9  ;;  %1854 = vmatprep.subr.bf16.mxu1 %v4395_v10 }
 0x4ed   :  { %1701 = vmatmul.mubr.bf16.vlgmr.msra.gmra.mxu0 %v1557_v37  ;;  %1742 = vmatmul.mubr.bf16.vlgmr.msra.gmra.mxu1 %v1557_v37  ;;  %v5740_v37 = vld [vmem:[#allocation56_spill] sm:$0xff] }
 0x4ee   :  { %1814 = vmatpush1.bf16.msra.mxu0 %v4398_v50  ;;  %1855 = vmatpush1.bf16.msra.mxu1 %v4401_v11 }
 0x4ef   :  { %1815 = vmatprep.subr.bf16.mxu0 %v4404_v12  ;;  %1856 = vmatprep.subr.bf16.mxu1 %v4407_v15 }
 0x4f2   :  { %1816 = vmatpush1.bf16.msra.mxu0 %v4410_v16  ;;  %1857 = vmatpush1.bf16.msra.mxu1 %v4413_v63 }
 0x4f3   :  { %1817 = vmatprep.subr.bf16.mxu0 %v4416_v58  ;;  %1858 = vmatprep.subr.bf16.mxu1 %v5702_v0 }
 0x4f6   :  { %1818 = vmatpush1.bf16.msra.mxu0 %v5703_v19  ;;  %1859 = vmatpush1.bf16.msra.mxu1 %v5704_v56 }
 0x4f7   :  { %1819 = vmatprep.subr.bf16.mxu0 %v5705_v61  ;;  %1860 = vmatprep.subr.bf16.mxu1 %v5706_v1 }
 0x4fa   :  { %1820 = vmatpush1.bf16.msra.mxu0 %v5707_v60  ;;  %1861 = vmatpush1.bf16.msra.mxu1 %v5708_v49 }
 0x4fb   :  { %1821 = vmatprep.subr.bf16.mxu0 %v5709_v54  ;;  %1862 = vmatprep.subr.bf16.mxu1 %v5710_v17 }
 0x4fe   :  { %1822 = vmatpush1.bf16.msra.mxu0 %v5711_v48  ;;  %1863 = vmatpush1.bf16.msra.mxu1 %v5712_v57 }
 0x4ff   :  { %1823 = vmatprep.subr.bf16.mxu0 %v5713_v51  ;;  %1864 = vmatprep.subr.bf16.mxu1 %v5714_v55 }
 0x502   :  { %1824 = vmatpush1.bf16.msra.mxu0 %v5715_v62  ;;  %1865 = vmatpush1.bf16.msra.mxu1 %v5716_v52 }
 0x503   :  { %1825 = vmatprep.subr.bf16.mxu0 %v5717_v20  ;;  %1866 = vmatprep.subr.bf16.mxu1 %v5718_v47 }
 0x506   :  { %1826 = vmatpush1.bf16.msra.mxu0 %v5719_v2  ;;  %1867 = vmatpush1.bf16.msra.mxu1 %v5720_v36 }
 0x507   :  { %1827 = vmatprep.subr.bf16.mxu0 %v5721_v30  ;;  %1868 = vmatprep.subr.bf16.mxu1 %v5722_v31 }
 0x50a   :  { %1828 = vmatpush1.bf16.msra.mxu0 %v5723_v38  ;;  %1869 = vmatpush1.bf16.msra.mxu1 %v5724_v22 }
 0x50b   :  { %1829 = vmatprep.subr.bf16.mxu0 %v5725_v29  ;;  %1870 = vmatprep.subr.bf16.mxu1 %v5726_v32 }
 0x50e   :  { %1830 = vmatpush2.bf16.msra.mxu0 %v5727_v39  ;;  %1871 = vmatpush2.bf16.msra.mxu1 %v5728_v27 }
 0x50f   :  { %1831 = vmatprep.subr.bf16.mxu0 %v5729_v21  ;;  %1872 = vmatprep.subr.bf16.mxu1 %v5730_v28  ;;  %v5741_v28 = vld [vmem:[#allocation57_spill] sm:$0xff] }
 0x512   :  { %1832 = vmatpush2.bf16.msra.mxu0 %v5731_v13  ;;  %1873 = vmatpush2.bf16.msra.mxu1 %v5732_v34  ;;  %v5742_v13 = vld [vmem:[#allocation58_spill] sm:$0xff]  ;;  %v5743_v34 = vld [vmem:[#allocation59_spill] sm:$0xff] }
 0x513   :  { %1833 = vmatprep.subr.bf16.mxu0 %v5733_v40  ;;  %1874 = vmatprep.subr.bf16.mxu1 %v5734_v14  ;;  %v5744_v40 = vld [vmem:[#allocation60_spill] sm:$0xff]  ;;  %v5745_v14 = vld [vmem:[#allocation61_spill] sm:$0xff] }
 0x516   :  { %1834 = vmatpush2.bf16.msra.mxu0 %v5735_v35  ;;  %1875 = vmatpush2.bf16.msra.mxu1 %v5736_v25  ;;  %v5746_v35 = vld [vmem:[#allocation62_spill] sm:$0xff]  ;;  %v5747_v25 = vld [vmem:[#allocation63_spill] sm:$0xff] }
 0x517   :  { %1835 = vmatprep.subr.bf16.mxu0 %v5737_v3  ;;  %1876 = vmatprep.subr.bf16.mxu1 %v5738_v23  ;;  %v5748_v3 = vld [vmem:[#allocation64_spill] sm:$0xff]  ;;  %v5749_v23 = vld [vmem:[#allocation65_spill] sm:$0xff] }
 0x51a   :  { %1836 = vmatpush2.bf16.msra.mxu0 %v5739_v33  ;;  %1877 = vmatpush2.bf16.msra.mxu1 %v5740_v37  ;;  %v5750_v33 = vld [vmem:[#allocation66_spill] sm:$0xff]  ;;  %v5751_v37 = vld [vmem:[#allocation67_spill] sm:$0xff] }
 0x51b   :  { %1837 = vmatprep.subr.bf16.mxu0 %v5741_v28  ;;  %1878 = vmatprep.subr.bf16.mxu1 %v5742_v13  ;;  %v5752_v28 = vld [vmem:[#allocation68_spill] sm:$0xff]  ;;  %v5753_v13 = vld [vmem:[#allocation69_spill] sm:$0xff] }
 0x51e   :  { %1838 = vmatpush2.bf16.msra.mxu0 %v5743_v34  ;;  %1879 = vmatpush2.bf16.msra.mxu1 %v5744_v40  ;;  %v5754_v34 = vld [vmem:[#allocation70_spill] sm:$0xff]  ;;  %v5755_v40 = vld [vmem:[#allocation71_spill] sm:$0xff] }
 0x51f   :  { %1839 = vmatprep.subr.bf16.mxu0 %v5745_v14  ;;  %1880 = vmatprep.subr.bf16.mxu1 %v5746_v35  ;;  %v5756_v14 = vld [vmem:[#allocation72_spill] sm:$0xff]  ;;  %v5757_v35 = vld [vmem:[#allocation18_spill] sm:$0xff] }
 0x522   :  { %1840 = vmatpush2.bf16.msra.mxu0 %v5747_v25  ;;  %1881 = vmatpush2.bf16.msra.mxu1 %v5748_v3  ;;  %v5758_v25 = vld [vmem:[#allocation19_spill] sm:$0xff] }
 0x523   :  { %1841 = vmatprep.subr.bf16.mxu0 %v5749_v23  ;;  %1882 = vmatprep.subr.bf16.mxu1 %v5750_v33 }
 0x526   :  { %1842 = vmatpush2.bf16.msra.mxu0 %v5751_v37  ;;  %1883 = vmatpush2.bf16.msra.mxu1 %v5752_v28 }
 0x527   :  { %1843 = vmatprep.subr.bf16.mxu0 %v5753_v13  ;;  %1884 = vmatprep.subr.bf16.mxu1 %v5754_v34 }
 0x52a   :  { %1844 = vmatpush2.bf16.msra.mxu0 %v5755_v40  ;;  %1885 = vmatpush2.bf16.msra.mxu1 %v5756_v14 }
 0x52b   :  { %1922 = vmatprep.subr.bf16.mxu0 %v5757_v35  ;;  %1963 = vmatprep.subr.bf16.mxu1 %v5758_v25 }
 0x58d   :  { %v1593_v3 = vpop.f32.mrf.mxu0  ;;  %v1634_v23 = vpop.f32.mrf.mxu1 }
 0x58e   :  { %v2932_v21 = vmul.f32 -1.442695, %v1593_v3 }
 0x58f   :  { %v1595_v33 = vpop.f32.mrf.mxu0  ;;  %v1636_v27 = vpop.f32.mrf.mxu1 }
 0x590   :  { %3275 = vpow2.f32 %v2932_v21  ;;  %v2933_v37 = vmul.f32 -1.442695, %v1595_v33  ;;  %v2934_v32 = vmul.f32 -1.442695, %v1636_v27 }
 0x591   :  { %v1597_v28 = vpop.f32.mrf.mxu0  ;;  %v1638_v39 = vpop.f32.mrf.mxu1 }
 0x592   :  { %3277 = vpow2.f32 %v2933_v37 }
 0x593   :  { %v1598_v13 = vpop.f32.mrf.mxu0  ;;  %v1639_v34 = vpop.f32.mrf.mxu1  ;;  %3279 = vpow2.f32 %v2934_v32 }
 0x59d   :  { %v3276_v40 = vpop.eup %3275 }
 0x59e   :  { %v1644_v29 = vadd.f32 1.0, %v3276_v40 }
 0x59f   :  { %v3278_v14 = vpop.eup %3277 }
 0x5a0   :  { %3281 = vrcp.f32 %v1644_v29  ;;  %v1650_v35 = vadd.f32 1.0, %v3278_v14  ;;  %v3280_v25 = vpop.eup %3279 }
 0x5a1   :  { %3283 = vtanh.f32 %v1634_v23  ;;  %v1657_v28 = vadd.f32 1.0, %v3280_v25  ;;  %v1667_v25 = vld [vmem:[#allocation3 + $0x4] ss:$8 sm:$0xf] }
 0x5a2   :  { %3285 = vrcp.f32 %v1650_v35 }
 0x5a3   :  { %3287 = vrcp.f32 %v1657_v28 }
 0x5ad   :  { %v3282_v3 = vpop.eup %3281  ;;  %v1702_v22 = vpop.f32.mrf.mxu0 }
 0x5ae   :  { %v1743_v38 = vpop.f32.mrf.mxu1  ;;  %v3284_v21 = vpop.eup %3283 }
 0x5af   :  { %v3286_v33 = vpop.eup %3285  ;;  %v1704_v39 = vpop.f32.mrf.mxu0  ;;  %v1661_v13 = vmul.f32 %v3284_v21, %v3282_v3 }
 0x5b0   :  { %v1745_v37 = vpop.f32.mrf.mxu1  ;;  %v1660_v27 = vmul.f32 %v3286_v33, %v4587_v26  ;;  %v1754_v34 = vcombine.low %v1702_v22, %v1704_v39  ;;  %v3288_v21 = vpop.eup %3287 }
 0x5b1   :  { %v1755_v40 = vcombine.low %v1743_v38, %v1745_v37  ;;  %v1706_v31 = vpop.f32.mrf.mxu0 }
 0x5b2   :  { %v1747_v32 = vpop.f32.mrf.mxu1  ;;  %v4696_v29 = vadd.f32 %v1661_v13, %v1660_v27  ;;  %v1762_v14 = vrot.slane %v1754_v34, %v4071_v53 }
 0x5b3   :  { %v1769_v23 = vrot.slane %v1755_v40, %v4071_v53  ;;  %v1707_v35 = vpop.f32.mrf.mxu0 }
 0x5b4   :  { %v1748_v30 = vpop.f32.mrf.mxu1  ;;  %3289 = vtanh.f32 %v4696_v29 }
 0x5b5   :  { %v1770_v36 = vcombine.low %v1762_v14, %v1769_v23 }
 0x5b7   :  { %v1777_v3 = vrot.slane %v1770_v36, %v4071_v53 }
 0x5b9   :  { %v1779_v26 = vadd.f32 %v1777_v3, %v1667_v25 }
 0x5bb   :  { %v2935_v22 = vmul.f32 -1.442695, %v1779_v26  ;;  %v1787_v38 = vrot.slane %v1779_v26, 1  ;;  %v1798_v37 = vrot.slane %v1779_v26, 3  ;;  %v1795_v27 = vrot.slane %v1779_v26, 2 }
 0x5bd   :  { %3291 = vpow2.f32 %v2935_v22  ;;  %v2936_v31 = vmul.f32 -1.442695, %v1787_v38  ;;  %v2937_v30 = vmul.f32 -1.442695, %v1798_v37  ;;  %v4709_v37 = vld [vmem:[#allocation6 + $0xe8] ss:$16 sps:$4 sm:$0xff]  }
 0x5bf   :  { %3293 = vpow2.f32 %v2936_v31 }
 0x5c0   :  { %3295 = vpow2.f32 %v2937_v30  ;;  %v4720_v30 = vld [vmem:[#allocation6 + $0xc0] ss:$16 sps:$4 sm:$0xff]  }
 0x5c1   :  { %v3290_v33 = vpop.eup %3289 }
 0x5c2   :  { %v1664_v39 = vmul.f32 %v3290_v33, %v3288_v21 }
 0x5c4   :  { %1665 = vst [vmem:[#allocation2 + $0x3] sm:$0x1] %v1664_v39  ;;  %v1812_v28 = vpack.c.bf16 %v1664_v39, %v1664_v39  ;;  %v4706_v39 = vld [vmem:[#allocation6 + $0xe0] ss:$16 sps:$4 sm:$0xff]  }
 0x5c6   :  { %1845 = vmatprep.mubr.bf16.mxu0 %v1812_v28  ;;  %1886 = vmatprep.mubr.bf16.mxu1 %v1812_v28  ;;  %v4715_v28 = vld [vmem:[#allocation6 + $0xcc] ss:$16 sps:$4 sm:$0xff]  }
 0x5ca   :  { %v3292_v13 = vpop.eup %3291 }
 0x5cb   :  { %v1783_v34 = vadd.f32 1.0, %v3292_v13  ;;  %v4723_v13 = vld [vmem:[#allocation6 + $0xc8] ss:$16 sps:$4 sm:$0xff]  }
 0x5cc   :  { %v3294_v40 = vpop.eup %3293 }
 0x5cd   :  { %3297 = vrcp.f32 %v1783_v34  ;;  %v1792_v36 = vadd.f32 1.0, %v3294_v40  ;;  %v3296_v32 = vpop.eup %3295  ;;  %v4729_v34 = vld [vmem:[#allocation6 + $0xac] ss:$16 sps:$4 sm:$0xff]   ;;  %v4732_v40 = vld [vmem:[#allocation6 + $0xa0] ss:$16 sps:$4 sm:$0xff]  }
 0x5ce   :  { %3299 = vtanh.f32 %v1795_v27  ;;  %v1803_v25 = vadd.f32 1.0, %v3296_v32  ;;  %v4726_v27 = vld [vmem:[#allocation6 + $0xa4] ss:$16 sps:$4 sm:$0xff]  }
 0x5cf   :  { %3301 = vrcp.f32 %v1792_v36  ;;  %v4735_v36 = vld [vmem:[#allocation6 + $0xa8] ss:$16 sps:$4 sm:$0xff]   ;;  %v4738_v32 = vld [vmem:[#allocation6 + $0x84] ss:$16 sps:$4 sm:$0xff]  }
 0x5d0   :  { %3303 = vrcp.f32 %v1803_v25  ;;  %v4750_v25 = vld [vmem:[#allocation6 + $0x64] ss:$16 sps:$4 sm:$0xff]  }
 0x5da   :  { %v3298_v14 = vpop.eup %3297 }
 0x5db   :  { %v3300_v23 = vpop.eup %3299 }
 0x5dc   :  { %v3302_v35 = vpop.eup %3301  ;;  %v1807_v22 = vmul.f32 %v3300_v23, %v3298_v14  ;;  %v4741_v14 = vld [vmem:[#allocation6 + $0x8c] ss:$16 sps:$4 sm:$0xff]   ;;  %v4744_v23 = vld [vmem:[#allocation6 + $0x80] ss:$16 sps:$4 sm:$0xff]  }
 0x5dd   :  { %v1806_v3 = vmul.f32 %v3302_v35, %v4594_v24  ;;  %v3304_v26 = vpop.eup %3303  ;;  %v4712_v24 = vld [vmem:[#allocation6 + $0xc4] ss:$16 sps:$4 sm:$0xff]   ;;  %v4747_v35 = vld [vmem:[#allocation6 + $0x88] ss:$16 sps:$4 sm:$0xff]  }
 0x5df   :  { %v4703_v38 = vadd.f32 %v1807_v22, %v1806_v3  ;;  %v4753_v3 = vld [vmem:[#allocation6 + $0x6c] ss:$16 sps:$4 sm:$0xff]   ;;  %v4756_v22 = vld [vmem:[#allocation6 + $0x60] ss:$16 sps:$4 sm:$0xff]  }
 0x5e1   :  { %3305 = vtanh.f32 %v4703_v38 }
 0x5ee   :  { %v3306_v31 = vpop.eup %3305 }
 0x5ef   :  { %v1810_v21 = vmul.f32 %v3306_v31, %v3304_v26  ;;  %v4759_v26 = vld [vmem:[#allocation6 + $0x68] ss:$16 sps:$4 sm:$0xff]  }
 0x5f1   :  { %v1811_v33 = vpack.c.bf16 %v1810_v21, %v1810_v21 }
 0x5f3   :  { %1846 = vmatmul.mubr.bf16.vlgmr.msra.gmra.mxu0 %v1811_v33  ;;  %1887 = vmatmul.mubr.bf16.vlgmr.msra.gmra.mxu1 %v1811_v33 }
 0x5f4   :  { %1923 = vmatpush1.bf16.msra.mxu0 %v4706_v39  ;;  %1964 = vmatpush1.bf16.msra.mxu1 %v4709_v37 }
 0x5f5   :  { %1924 = vmatprep.subr.bf16.mxu0 %v4712_v24  ;;  %1965 = vmatprep.subr.bf16.mxu1 %v4715_v28 }
 0x5f6   :  { %1954 = vmatprep.mubr.bf16.mxu0 %v5556_v59  ;;  %1995 = vmatprep.mubr.bf16.mxu1 %v5556_v59 }
 0x5f8   :  { %1925 = vmatpush1.bf16.msra.mxu0 %v4720_v30  ;;  %1966 = vmatpush1.bf16.msra.mxu1 %v4723_v13 }
 0x5f9   :  { %1926 = vmatprep.subr.bf16.mxu0 %v4726_v27  ;;  %1967 = vmatprep.subr.bf16.mxu1 %v4729_v34 }
 0x5fc   :  { %1927 = vmatpush1.bf16.msra.mxu0 %v4732_v40  ;;  %1968 = vmatpush1.bf16.msra.mxu1 %v4735_v36 }
 0x5fd   :  { %1928 = vmatprep.subr.bf16.mxu0 %v4738_v32  ;;  %1969 = vmatprep.subr.bf16.mxu1 %v4741_v14 }
 0x600   :  { %1929 = vmatpush1.bf16.msra.mxu0 %v4744_v23  ;;  %1970 = vmatpush1.bf16.msra.mxu1 %v4747_v35 }
 0x601   :  { %1930 = vmatprep.subr.bf16.mxu0 %v4750_v25  ;;  %1971 = vmatprep.subr.bf16.mxu1 %v4753_v3 }
 0x604   :  { %1931 = vmatpush1.bf16.msra.mxu0 %v4756_v22  ;;  %1972 = vmatpush1.bf16.msra.mxu1 %v4759_v26 }
 0x605   :  { %1932 = vmatprep.subr.bf16.mxu0 %v4356_v18  ;;  %1973 = vmatprep.subr.bf16.mxu1 %v4359_v41  ;;  %v5759_v18 = vld [vmem:[#allocation36_spill] sm:$0xff]  ;;  %v5760_v41 = vld [vmem:[#allocation37_spill] sm:$0xff] }
 0x608   :  { %1933 = vmatpush1.bf16.msra.mxu0 %v4362_v42  ;;  %1974 = vmatpush1.bf16.msra.mxu1 %v4365_v43  ;;  %v5761_v42 = vld [vmem:[#allocation38_spill] sm:$0xff]  ;;  %v5762_v43 = vld [vmem:[#allocation39_spill] sm:$0xff] }
 0x609   :  { %1934 = vmatprep.subr.bf16.mxu0 %v4368_v44  ;;  %1975 = vmatprep.subr.bf16.mxu1 %v4371_v45  ;;  %v5763_v44 = vld [vmem:[#allocation40_spill] sm:$0xff]  ;;  %v5764_v45 = vld [vmem:[#allocation41_spill] sm:$0xff] }
 0x60c   :  { %1935 = vmatpush1.bf16.msra.mxu0 %v4374_v46  ;;  %1976 = vmatpush1.bf16.msra.mxu1 %v4377_v4  ;;  %v5765_v46 = vld [vmem:[#allocation42_spill] sm:$0xff]  ;;  %v5766_v4 = vld [vmem:[#allocation43_spill] sm:$0xff] }
 0x60d   :  { %1936 = vmatprep.subr.bf16.mxu0 %v4380_v5  ;;  %1977 = vmatprep.subr.bf16.mxu1 %v4383_v6  ;;  %v5767_v5 = vld [vmem:[#allocation44_spill] sm:$0xff]  ;;  %v5768_v6 = vld [vmem:[#allocation45_spill] sm:$0xff] }
 0x610   :  { %1937 = vmatpush1.bf16.msra.mxu0 %v4386_v7  ;;  %1978 = vmatpush1.bf16.msra.mxu1 %v4389_v8  ;;  %v5769_v7 = vld [vmem:[#allocation46_spill] sm:$0xff]  ;;  %v5770_v8 = vld [vmem:[#allocation47_spill] sm:$0xff] }
 0x611   :  { %2067 = vmatprep.subr.bf16.mxu0 %v4392_v9  ;;  %2108 = vmatprep.subr.bf16.mxu1 %v4395_v10  ;;  %v5771_v9 = vld [vmem:[#allocation48_spill] sm:$0xff]  ;;  %v5772_v10 = vld [vmem:[#allocation49_spill] sm:$0xff] }
 0x613   :  { %1955 = vmatmul.mubr.bf16.vlgmr.msra.gmra.mxu0 %v1811_v33  ;;  %1996 = vmatmul.mubr.bf16.vlgmr.msra.gmra.mxu1 %v1811_v33 }
 0x614   :  { %2068 = vmatpush1.bf16.msra.mxu0 %v4398_v50  ;;  %2109 = vmatpush1.bf16.msra.mxu1 %v4401_v11  ;;  %v5773_v50 = vld [vmem:[#allocation50_spill] sm:$0xff]  ;;  %v5774_v11 = vld [vmem:[#allocation51_spill] sm:$0xff] }
 0x615   :  { %2069 = vmatprep.subr.bf16.mxu0 %v4404_v12  ;;  %2110 = vmatprep.subr.bf16.mxu1 %v4407_v15  ;;  %v5775_v12 = vld [vmem:[#allocation52_spill] sm:$0xff]  ;;  %v5776_v15 = vld [vmem:[#allocation53_spill] sm:$0xff] }
 0x618   :  { %2070 = vmatpush1.bf16.msra.mxu0 %v4410_v16  ;;  %2111 = vmatpush1.bf16.msra.mxu1 %v4413_v63  ;;  %v5777_v16 = vld [vmem:[#allocation54_spill] sm:$0xff]  ;;  %v5778_v63 = vld [vmem:[#allocation55_spill] sm:$0xff] }
 0x619   :  { %2071 = vmatprep.subr.bf16.mxu0 %v4416_v58  ;;  %2112 = vmatprep.subr.bf16.mxu1 %v5702_v0  ;;  %v5779_v58 = vld [vmem:[#allocation56_spill] sm:$0xff]  ;;  %v5780_v0 = vld [vmem:[#allocation57_spill] sm:$0xff] }
 0x61c   :  { %2072 = vmatpush1.bf16.msra.mxu0 %v5703_v19  ;;  %2113 = vmatpush1.bf16.msra.mxu1 %v5704_v56  ;;  %v5781_v19 = vld [vmem:[#allocation58_spill] sm:$0xff]  ;;  %v5782_v56 = vld [vmem:[#allocation59_spill] sm:$0xff] }
 0x61d   :  { %2073 = vmatprep.subr.bf16.mxu0 %v5705_v61  ;;  %2114 = vmatprep.subr.bf16.mxu1 %v5706_v1  ;;  %v5783_v61 = vld [vmem:[#allocation60_spill] sm:$0xff]  ;;  %v5784_v1 = vld [vmem:[#allocation61_spill] sm:$0xff] }
 0x620   :  { %2074 = vmatpush1.bf16.msra.mxu0 %v5707_v60  ;;  %2115 = vmatpush1.bf16.msra.mxu1 %v5708_v49  ;;  %v5785_v60 = vld [vmem:[#allocation62_spill] sm:$0xff]  ;;  %v5786_v49 = vld [vmem:[#allocation63_spill] sm:$0xff] }
 0x621   :  { %2075 = vmatprep.subr.bf16.mxu0 %v5709_v54  ;;  %2116 = vmatprep.subr.bf16.mxu1 %v5710_v17  ;;  %v5787_v54 = vld [vmem:[#allocation64_spill] sm:$0xff]  ;;  %v5788_v17 = vld [vmem:[#allocation65_spill] sm:$0xff] }
 0x624   :  { %2076 = vmatpush1.bf16.msra.mxu0 %v5711_v48  ;;  %2117 = vmatpush1.bf16.msra.mxu1 %v5712_v57  ;;  %v5789_v48 = vld [vmem:[#allocation66_spill] sm:$0xff]  ;;  %v5790_v57 = vld [vmem:[#allocation67_spill] sm:$0xff] }
 0x625   :  { %2077 = vmatprep.subr.bf16.mxu0 %v5713_v51  ;;  %2118 = vmatprep.subr.bf16.mxu1 %v5714_v55  ;;  %v5791_v51 = vld [vmem:[#allocation68_spill] sm:$0xff]  ;;  %v5792_v55 = vld [vmem:[#allocation69_spill] sm:$0xff] }
 0x628   :  { %2078 = vmatpush1.bf16.msra.mxu0 %v5715_v62  ;;  %2119 = vmatpush1.bf16.msra.mxu1 %v5716_v52  ;;  %v5793_v62 = vld [vmem:[#allocation70_spill] sm:$0xff]  ;;  %v5794_v52 = vld [vmem:[#allocation71_spill] sm:$0xff] }
 0x629   :  { %2079 = vmatprep.subr.bf16.mxu0 %v5717_v20  ;;  %2120 = vmatprep.subr.bf16.mxu1 %v5718_v47  ;;  %v5795_v20 = vld [vmem:[#allocation72_spill] sm:$0xff]  ;;  %v4838_v47 = vld [vmem:[#allocation6 + $0xe4] ss:$16 sps:$4 sm:$0xff]  }
 0x62c   :  { %2080 = vmatpush1.bf16.msra.mxu0 %v5719_v2  ;;  %2121 = vmatpush1.bf16.msra.mxu1 %v5759_v18  ;;  %v4841_v2 = vld [vmem:[#allocation6 + $0xec] ss:$16 sps:$4 sm:$0xff]  }
 0x62d   :  { %2081 = vmatprep.subr.bf16.mxu0 %v5760_v41  ;;  %2122 = vmatprep.subr.bf16.mxu1 %v5761_v42 }
 0x630   :  { %2082 = vmatpush1.bf16.msra.mxu0 %v5762_v43  ;;  %2123 = vmatpush1.bf16.msra.mxu1 %v5763_v44 }
 0x631   :  { %2083 = vmatprep.subr.bf16.mxu0 %v5764_v45  ;;  %2124 = vmatprep.subr.bf16.mxu1 %v5765_v46 }
 0x634   :  { %2084 = vmatpush2.bf16.msra.mxu0 %v5766_v4  ;;  %2125 = vmatpush2.bf16.msra.mxu1 %v5767_v5 }
 0x635   :  { %2085 = vmatprep.subr.bf16.mxu0 %v5768_v6  ;;  %2126 = vmatprep.subr.bf16.mxu1 %v5769_v7 }
 0x638   :  { %2086 = vmatpush2.bf16.msra.mxu0 %v5770_v8  ;;  %2127 = vmatpush2.bf16.msra.mxu1 %v5771_v9 }
 0x639   :  { %2087 = vmatprep.subr.bf16.mxu0 %v5772_v10  ;;  %2128 = vmatprep.subr.bf16.mxu1 %v5773_v50 }
 0x63c   :  { %2088 = vmatpush2.bf16.msra.mxu0 %v5774_v11  ;;  %2129 = vmatpush2.bf16.msra.mxu1 %v5775_v12 }
 0x63d   :  { %2089 = vmatprep.subr.bf16.mxu0 %v5776_v15  ;;  %2130 = vmatprep.subr.bf16.mxu1 %v5777_v16 }
 0x640   :  { %2090 = vmatpush2.bf16.msra.mxu0 %v5778_v63  ;;  %2131 = vmatpush2.bf16.msra.mxu1 %v5779_v58 }
 0x641   :  { %2091 = vmatprep.subr.bf16.mxu0 %v5780_v0  ;;  %2132 = vmatprep.subr.bf16.mxu1 %v5781_v19 }
 0x644   :  { %2092 = vmatpush2.bf16.msra.mxu0 %v5782_v56  ;;  %2133 = vmatpush2.bf16.msra.mxu1 %v5783_v61 }
 0x645   :  { %2093 = vmatprep.subr.bf16.mxu0 %v5784_v1  ;;  %2134 = vmatprep.subr.bf16.mxu1 %v5785_v60 }
 0x648   :  { %2094 = vmatpush2.bf16.msra.mxu0 %v5786_v49  ;;  %2135 = vmatpush2.bf16.msra.mxu1 %v5787_v54 }
 0x649   :  { %2095 = vmatprep.subr.bf16.mxu0 %v5788_v17  ;;  %2136 = vmatprep.subr.bf16.mxu1 %v5789_v48 }
 0x64c   :  { %2096 = vmatpush2.bf16.msra.mxu0 %v5790_v57  ;;  %2137 = vmatpush2.bf16.msra.mxu1 %v5791_v51 }
 0x64d   :  { %2097 = vmatprep.subr.bf16.mxu0 %v5792_v55  ;;  %2138 = vmatprep.subr.bf16.mxu1 %v5793_v62  ;;  %v1921_v55 = vld [vmem:[#allocation3 + $0x5] ss:$8 sm:$0xf] }
 0x650   :  { %2098 = vmatpush2.bf16.msra.mxu0 %v5794_v52  ;;  %2139 = vmatpush2.bf16.msra.mxu1 %v5795_v20 }
 0x651   :  { %2176 = vmatprep.subr.bf16.mxu0 %v4838_v47  ;;  %2217 = vmatprep.subr.bf16.mxu1 %v4841_v2 }
 0x6b3   :  { %v1847_v31 = vpop.f32.mrf.mxu0  ;;  %v1888_v21 = vpop.f32.mrf.mxu1 }
 0x6b4   :  { %v2938_v33 = vmul.f32 -1.442695, %v1847_v31 }
 0x6b5   :  { %v1849_v18 = vpop.f32.mrf.mxu0  ;;  %v1890_v41 = vpop.f32.mrf.mxu1 }
 0x6b6   :  { %3307 = vpow2.f32 %v2938_v33  ;;  %v2939_v42 = vmul.f32 -1.442695, %v1849_v18  ;;  %v2940_v4 = vmul.f32 -1.442695, %v1890_v41 }
 0x6b7   :  { %v1851_v43 = vpop.f32.mrf.mxu0  ;;  %v1892_v44 = vpop.f32.mrf.mxu1 }
 0x6b8   :  { %3309 = vpow2.f32 %v2939_v42 }
 0x6b9   :  { %v1852_v45 = vpop.f32.mrf.mxu0  ;;  %v1893_v46 = vpop.f32.mrf.mxu1  ;;  %3311 = vpow2.f32 %v2940_v4 }
 0x6c3   :  { %v3308_v5 = vpop.eup %3307 }
 0x6c4   :  { %v1898_v6 = vadd.f32 1.0, %v3308_v5 }
 0x6c5   :  { %v3310_v7 = vpop.eup %3309 }
 0x6c6   :  { %3313 = vrcp.f32 %v1898_v6  ;;  %v1904_v8 = vadd.f32 1.0, %v3310_v7  ;;  %v3312_v9 = vpop.eup %3311 }
 0x6c7   :  { %3315 = vtanh.f32 %v1888_v21  ;;  %v1911_v16 = vadd.f32 1.0, %v3312_v9 }
 0x6c8   :  { %3317 = vrcp.f32 %v1904_v8 }
 0x6c9   :  { %3319 = vrcp.f32 %v1911_v16 }
 0x6d3   :  { %v3314_v10 = vpop.eup %3313  ;;  %v1956_v50 = vpop.f32.mrf.mxu0 }
 0x6d4   :  { %v1997_v11 = vpop.f32.mrf.mxu1  ;;  %v3316_v12 = vpop.eup %3315 }
 0x6d5   :  { %v3318_v15 = vpop.eup %3317  ;;  %v1958_v63 = vpop.f32.mrf.mxu0  ;;  %v1915_v0 = vmul.f32 %v3316_v12, %v3314_v10 }
 0x6d6   :  { %v1999_v58 = vpop.f32.mrf.mxu1  ;;  %v1914_v19 = vmul.f32 %v3318_v15, %v4696_v29  ;;  %v2008_v56 = vcombine.low %v1956_v50, %v1958_v63  ;;  %v3320_v21 = vpop.eup %3319 }
 0x6d7   :  { %v2009_v61 = vcombine.low %v1997_v11, %v1999_v58  ;;  %v1960_v1 = vpop.f32.mrf.mxu0 }
 0x6d8   :  { %v2001_v60 = vpop.f32.mrf.mxu1  ;;  %v4845_v49 = vadd.f32 %v1915_v0, %v1914_v19  ;;  %v2016_v54 = vrot.slane %v2008_v56, %v4071_v53  ;;  %v4878_v0 = vld [vmem:[#allocation6 + $0x4c] ss:$16 sps:$4 sm:$0xff]   ;;  %v4881_v19 = vld [vmem:[#allocation6 + $0x40] ss:$16 sps:$4 sm:$0xff]   ;;  %v4884_v56 = vld [vmem:[#allocation6 + $0x48] ss:$16 sps:$4 sm:$0xff]  }
 0x6d9   :  { %v2023_v17 = vrot.slane %v2009_v61, %v4071_v53  ;;  %v1961_v48 = vpop.f32.mrf.mxu0  ;;  %v4887_v61 = vld [vmem:[#allocation6 + $0x24] ss:$16 sps:$4 sm:$0xff]   ;;  %v4890_v1 = vld [vmem:[#allocation6 + $0x2c] ss:$16 sps:$4 sm:$0xff]   ;;  %v4893_v60 = vld [vmem:[#allocation6 + $0x20] ss:$16 sps:$4 sm:$0xff]  }
 0x6da   :  { %v2002_v57 = vpop.f32.mrf.mxu1  ;;  %3321 = vtanh.f32 %v4845_v49  ;;  %v4902_v48 = vld [vmem:[#allocation6 + $0xc] ss:$16 sps:$4 sm:$0xff]  }
 0x6db   :  { %v2024_v51 = vcombine.low %v2016_v54, %v2023_v17  ;;  %v4896_v54 = vld [vmem:[#allocation6 + $0x28] ss:$16 sps:$4 sm:$0xff]   ;;  %v4899_v17 = vld [vmem:[#allocation6 + $0x4] ss:$16 sps:$4 sm:$0xff]   ;;  %v4905_v57 = vld [vmem:[#allocation6] ss:$16 sps:$4 sm:$0xff]  }
 0x6dd   :  { %v2031_v62 = vrot.slane %v2024_v51, %v4071_v53  ;;  %v4908_v51 = vld [vmem:[#allocation6 + $0x8] ss:$16 sps:$4 sm:$0xff]  }
 0x6df   :  { %v2033_v29 = vadd.f32 %v2031_v62, %v1921_v55  ;;  %v4911_v55 = vld [vmem:[#allocation8 + $0xe4] ss:$16 sps:$4 sm:$0xff]   ;;  %v4914_v62 = vld [vmem:[#allocation8 + $0xec] ss:$16 sps:$4 sm:$0xff]  }
 0x6e1   :  { %v2941_v52 = vmul.f32 -1.442695, %v2033_v29  ;;  %v2041_v20 = vrot.slane %v2033_v29, 1  ;;  %v2052_v41 = vrot.slane %v2033_v29, 3  ;;  %v2049_v45 = vrot.slane %v2033_v29, 2 }
 0x6e2   :  { %v4917_v29 = vld [vmem:[#allocation8 + $0xe0] ss:$16 sps:$4 sm:$0xff]  }
 0x6e3   :  { %3323 = vpow2.f32 %v2941_v52  ;;  %v2942_v31 = vmul.f32 -1.442695, %v2041_v20  ;;  %v2943_v43 = vmul.f32 -1.442695, %v2052_v41  ;;  %v4920_v52 = vld [vmem:[#allocation8 + $0xe8] ss:$16 sps:$4 sm:$0xff]  }
 0x6e4   :  { %v4923_v20 = vld [vmem:[#allocation8 + $0xc4] ss:$16 sps:$4 sm:$0xff]   ;;  %v4938_v41 = vld [vmem:[#allocation8 + $0xac] ss:$16 sps:$4 sm:$0xff]  }
 0x6e5   :  { %3325 = vpow2.f32 %v2942_v31  ;;  %v4926_v31 = vld [vmem:[#allocation8 + $0xcc] ss:$16 sps:$4 sm:$0xff]   ;;  %5796 = vst [vmem:[#allocation20_spill] sm:$0xff] %v4938_v41 }
 0x6e6   :  { %3327 = vpow2.f32 %v2943_v43  ;;  %v4944_v43 = vld [vmem:[#allocation8 + $0xa8] ss:$16 sps:$4 sm:$0xff]  }
 0x6e7   :  { %v3322_v33 = vpop.eup %3321  ;;  %5798 = vst [vmem:[#allocation22_spill] sm:$0xff] %v4944_v43 }
 0x6e8   :  { %v1918_v18 = vmul.f32 %v3322_v33, %v3320_v21  ;;  %v4929_v21 = vld [vmem:[#allocation8 + $0xc0] ss:$16 sps:$4 sm:$0xff]   ;;  %v4932_v33 = vld [vmem:[#allocation8 + $0xc8] ss:$16 sps:$4 sm:$0xff]  }
 0x6ea   :  { %1919 = vst [vmem:[#allocation2 + $0x4] sm:$0x1] %v1918_v18  ;;  %v2066_v42 = vpack.c.bf16 %v1918_v18, %v1918_v18  ;;  %v4935_v18 = vld [vmem:[#allocation8 + $0xa4] ss:$16 sps:$4 sm:$0xff]  }
 0x6ec   :  { %2099 = vmatprep.mubr.bf16.mxu0 %v2066_v42  ;;  %2140 = vmatprep.mubr.bf16.mxu1 %v2066_v42  ;;  %v4941_v42 = vld [vmem:[#allocation8 + $0xa0] ss:$16 sps:$4 sm:$0xff]  }
 0x6ed   :  { %5797 = vst [vmem:[#allocation21_spill] sm:$0xff] %v4941_v42 }
 0x6f0   :  { %v3324_v44 = vpop.eup %3323 }
 0x6f1   :  { %v2037_v46 = vadd.f32 1.0, %v3324_v44  ;;  %v4947_v44 = vld [vmem:[#allocation8 + $0x84] ss:$16 sps:$4 sm:$0xff]  }
 0x6f2   :  { %v3326_v4 = vpop.eup %3325  ;;  %5799 = vst [vmem:[#allocation23_spill] sm:$0xff] %v4947_v44 }
 0x6f3   :  { %3329 = vrcp.f32 %v2037_v46  ;;  %v2046_v5 = vadd.f32 1.0, %v3326_v4  ;;  %v3328_v6 = vpop.eup %3327  ;;  %v4953_v46 = vld [vmem:[#allocation8 + $0x80] ss:$16 sps:$4 sm:$0xff]   ;;  %v4956_v4 = vld [vmem:[#allocation8 + $0x88] ss:$16 sps:$4 sm:$0xff]  }
 0x6f4   :  { %3331 = vtanh.f32 %v2049_v45  ;;  %v2057_v10 = vadd.f32 1.0, %v3328_v6  ;;  %v4950_v45 = vld [vmem:[#allocation8 + $0x8c] ss:$16 sps:$4 sm:$0xff]   ;;  %5801 = vst [vmem:[#allocation25_spill] sm:$0xff] %v4953_v46  ;;  %5802 = vst [vmem:[#allocation26_spill] sm:$0xff] %v4956_v4 }
 0x6f5   :  { %3333 = vrcp.f32 %v2046_v5  ;;  %5800 = vst [vmem:[#allocation24_spill] sm:$0xff] %v4950_v45  ;;  %v4959_v5 = vld [vmem:[#allocation8 + $0x64] ss:$16 sps:$4 sm:$0xff]   ;;  %v4962_v6 = vld [vmem:[#allocation8 + $0x6c] ss:$16 sps:$4 sm:$0xff]  }
 0x6f6   :  { %3335 = vrcp.f32 %v2057_v10  ;;  %5803 = vst [vmem:[#allocation27_spill] sm:$0xff] %v4959_v5  ;;  %5804 = vst [vmem:[#allocation28_spill] sm:$0xff] %v4962_v6  ;;  %v4974_v10 = vld [vmem:[#allocation8 + $0x4c] ss:$16 sps:$4 sm:$0xff]  }
 0x6f7   :  { %5808 = vst [vmem:[#allocation16_spill] sm:$0xff] %v4974_v10 }
 0x700   :  { %v3330_v7 = vpop.eup %3329 }
 0x701   :  { %v3332_v8 = vpop.eup %3331 }
 0x702   :  { %v3334_v9 = vpop.eup %3333  ;;  %v2061_v11 = vmul.f32 %v3332_v8, %v3330_v7  ;;  %v4965_v7 = vld [vmem:[#allocation8 + $0x60] ss:$16 sps:$4 sm:$0xff]   ;;  %v4968_v8 = vld [vmem:[#allocation8 + $0x68] ss:$16 sps:$4 sm:$0xff]  }
 0x703   :  { %v2060_v50 = vmul.f32 %v3334_v9, %v4703_v38  ;;  %v3336_v15 = vpop.eup %3335  ;;  %v4875_v38 = vld [vmem:[#allocation6 + $0x44] ss:$16 sps:$4 sm:$0xff]   ;;  %5805 = vst [vmem:[#allocation29_spill] sm:$0xff] %v4965_v7  ;;  %5806 = vst [vmem:[#allocation30_spill] sm:$0xff] %v4968_v8 }
 0x704   :  { %v4971_v9 = vld [vmem:[#allocation8 + $0x44] ss:$16 sps:$4 sm:$0xff]  }
 0x705   :  { %v4852_v12 = vadd.f32 %v2061_v11, %v2060_v50  ;;  %5807 = vst [vmem:[#allocation31_spill] sm:$0xff] %v4971_v9  ;;  %v4977_v50 = vld [vmem:[#allocation8 + $0x40] ss:$16 sps:$4 sm:$0xff]   ;;  %v4980_v11 = vld [vmem:[#allocation8 + $0x48] ss:$16 sps:$4 sm:$0xff]  }
 0x706   :  { %5809 = vst [vmem:[#allocation17_spill] sm:$0xff] %v4977_v50  ;;  %5810 = vst [vmem:[#allocation32_spill] sm:$0xff] %v4980_v11 }
 0x707   :  { %3337 = vtanh.f32 %v4852_v12 }
 0x714   :  { %v3338_v16 = vpop.eup %3337 }
 0x715   :  { %v2064_v63 = vmul.f32 %v3338_v16, %v3336_v15  ;;  %v4983_v15 = vld [vmem:[#allocation8 + $0x24] ss:$16 sps:$4 sm:$0xff]   ;;  %v4986_v16 = vld [vmem:[#allocation8 + $0x2c] ss:$16 sps:$4 sm:$0xff]  }
 0x716   :  { %5811 = vst [vmem:[#allocation33_spill] sm:$0xff] %v4983_v15  ;;  %5812 = vst [vmem:[#allocation34_spill] sm:$0xff] %v4986_v16 }
 0x717   :  { %v2065_v58 = vpack.c.bf16 %v2064_v63, %v2064_v63  ;;  %v4989_v63 = vld [vmem:[#allocation8 + $0x20] ss:$16 sps:$4 sm:$0xff]  }
 0x718   :  { %5813 = vst [vmem:[#allocation35_spill] sm:$0xff] %v4989_v63 }
 0x719   :  { %2100 = vmatmul.mubr.bf16.vlgmr.msra.gmra.mxu0 %v2065_v58  ;;  %2141 = vmatmul.mubr.bf16.vlgmr.msra.gmra.mxu1 %v2065_v58 }
 0x71a   :  { %2177 = vmatpush1.bf16.msra.mxu0 %v4706_v39  ;;  %2218 = vmatpush1.bf16.msra.mxu1 %v4709_v37 }
 0x71b   :  { %2178 = vmatprep.subr.bf16.mxu0 %v4712_v24  ;;  %2219 = vmatprep.subr.bf16.mxu1 %v4715_v28 }
 0x71c   :  { %2208 = vmatprep.mubr.bf16.mxu0 %v5556_v59  ;;  %2249 = vmatprep.mubr.bf16.mxu1 %v5556_v59 }
 0x71e   :  { %2179 = vmatpush1.bf16.msra.mxu0 %v4720_v30  ;;  %2220 = vmatpush1.bf16.msra.mxu1 %v4723_v13 }
 0x71f   :  { %2180 = vmatprep.subr.bf16.mxu0 %v4726_v27  ;;  %2221 = vmatprep.subr.bf16.mxu1 %v4729_v34 }
 0x722   :  { %2181 = vmatpush1.bf16.msra.mxu0 %v4732_v40  ;;  %2222 = vmatpush1.bf16.msra.mxu1 %v4735_v36 }
 0x723   :  { %2182 = vmatprep.subr.bf16.mxu0 %v4738_v32  ;;  %2223 = vmatprep.subr.bf16.mxu1 %v4741_v14 }
 0x726   :  { %2183 = vmatpush1.bf16.msra.mxu0 %v4744_v23  ;;  %2224 = vmatpush1.bf16.msra.mxu1 %v4747_v35 }
 0x727   :  { %2184 = vmatprep.subr.bf16.mxu0 %v4750_v25  ;;  %2225 = vmatprep.subr.bf16.mxu1 %v4753_v3 }
 0x72a   :  { %2185 = vmatpush1.bf16.msra.mxu0 %v4756_v22  ;;  %2226 = vmatpush1.bf16.msra.mxu1 %v4759_v26 }
 0x72b   :  { %2186 = vmatprep.subr.bf16.mxu0 %v4875_v38  ;;  %2227 = vmatprep.subr.bf16.mxu1 %v4878_v0 }
 0x72e   :  { %2187 = vmatpush1.bf16.msra.mxu0 %v4881_v19  ;;  %2228 = vmatpush1.bf16.msra.mxu1 %v4884_v56 }
 0x72f   :  { %2188 = vmatprep.subr.bf16.mxu0 %v4887_v61  ;;  %2229 = vmatprep.subr.bf16.mxu1 %v4890_v1 }
 0x732   :  { %2189 = vmatpush1.bf16.msra.mxu0 %v4893_v60  ;;  %2230 = vmatpush1.bf16.msra.mxu1 %v4896_v54 }
 0x733   :  { %2190 = vmatprep.subr.bf16.mxu0 %v4899_v17  ;;  %2231 = vmatprep.subr.bf16.mxu1 %v4902_v48 }
 0x736   :  { %2191 = vmatpush1.bf16.msra.mxu0 %v4905_v57  ;;  %2232 = vmatpush1.bf16.msra.mxu1 %v4908_v51 }
 0x737   :  { %2321 = vmatprep.subr.bf16.mxu0 %v4911_v55  ;;  %2362 = vmatprep.subr.bf16.mxu1 %v4914_v62 }
 0x739   :  { %2209 = vmatmul.mubr.bf16.vlgmr.msra.gmra.mxu0 %v2065_v58  ;;  %2250 = vmatmul.mubr.bf16.vlgmr.msra.gmra.mxu1 %v2065_v58  ;;  %v4992_v58 = vld [vmem:[#allocation8 + $0x28] ss:$16 sps:$4 sm:$0xff]  }
 0x73a   :  { %2322 = vmatpush1.bf16.msra.mxu0 %v4917_v29  ;;  %2363 = vmatpush1.bf16.msra.mxu1 %v4920_v52  ;;  %5814 = vst [vmem:[#allocation18_spill] sm:$0xff] %v4992_v58 }
 0x73b   :  { %2323 = vmatprep.subr.bf16.mxu0 %v4923_v20  ;;  %2364 = vmatprep.subr.bf16.mxu1 %v4926_v31 }
 0x73e   :  { %2324 = vmatpush1.bf16.msra.mxu0 %v4929_v21  ;;  %2365 = vmatpush1.bf16.msra.mxu1 %v4932_v33 }
 0x73f   :  { %2325 = vmatprep.subr.bf16.mxu0 %v4935_v18  ;;  %2366 = vmatprep.subr.bf16.mxu1 %v4938_v41 }
 0x742   :  { %2326 = vmatpush1.bf16.msra.mxu0 %v4941_v42  ;;  %2367 = vmatpush1.bf16.msra.mxu1 %v4944_v43 }
 0x743   :  { %2327 = vmatprep.subr.bf16.mxu0 %v4947_v44  ;;  %2368 = vmatprep.subr.bf16.mxu1 %v4950_v45 }
 0x746   :  { %2328 = vmatpush1.bf16.msra.mxu0 %v4953_v46  ;;  %2369 = vmatpush1.bf16.msra.mxu1 %v4956_v4 }
 0x747   :  { %2329 = vmatprep.subr.bf16.mxu0 %v4959_v5  ;;  %2370 = vmatprep.subr.bf16.mxu1 %v4962_v6 }
 0x74a   :  { %2330 = vmatpush1.bf16.msra.mxu0 %v4965_v7  ;;  %2371 = vmatpush1.bf16.msra.mxu1 %v4968_v8 }
 0x74b   :  { %2331 = vmatprep.subr.bf16.mxu0 %v4971_v9  ;;  %2372 = vmatprep.subr.bf16.mxu1 %v4974_v10 }
 0x74e   :  { %2332 = vmatpush1.bf16.msra.mxu0 %v4977_v50  ;;  %2373 = vmatpush1.bf16.msra.mxu1 %v4980_v11  ;;  %v4995_v50 = vld [vmem:[#allocation8 + $0x4] ss:$16 sps:$4 sm:$0xff]   ;;  %v4998_v11 = vld [vmem:[#allocation8 + $0xc] ss:$16 sps:$4 sm:$0xff]  }
 0x74f   :  { %2333 = vmatprep.subr.bf16.mxu0 %v4983_v15  ;;  %2374 = vmatprep.subr.bf16.mxu1 %v4986_v16  ;;  %5815 = vst [vmem:[#allocation19_spill] sm:$0xff] %v4995_v50  ;;  %5816 = vst [vmem:[#allocation36_spill] sm:$0xff] %v4998_v11  ;;  %v5001_v15 = vld [vmem:[#allocation8] ss:$16 sps:$4 sm:$0xff]   ;;  %v5004_v16 = vld [vmem:[#allocation8 + $0x8] ss:$16 sps:$4 sm:$0xff]  }
 0x750   :  { %5817 = vst [vmem:[#allocation37_spill] sm:$0xff] %v5001_v15  ;;  %5818 = vst [vmem:[#allocation38_spill] sm:$0xff] %v5004_v16 }
 0x752   :  { %2334 = vmatpush1.bf16.msra.mxu0 %v4989_v63  ;;  %2375 = vmatpush1.bf16.msra.mxu1 %v4992_v58  ;;  %v5007_v63 = vld [vmem:[#allocation8 + $0x1e4] ss:$16 sps:$4 sm:$0xff]   ;;  %v5010_v58 = vld [vmem:[#allocation8 + $0x1ec] ss:$16 sps:$4 sm:$0xff]  }
 0x753   :  { %2335 = vmatprep.subr.bf16.mxu0 %v4995_v50  ;;  %2376 = vmatprep.subr.bf16.mxu1 %v4998_v11  ;;  %5819 = vst [vmem:[#allocation39_spill] sm:$0xff] %v5007_v63  ;;  %5820 = vst [vmem:[#allocation40_spill] sm:$0xff] %v5010_v58  ;;  %v5013_v50 = vld [vmem:[#allocation8 + $0x1e0] ss:$16 sps:$4 sm:$0xff]   ;;  %v5016_v11 = vld [vmem:[#allocation8 + $0x1e8] ss:$16 sps:$4 sm:$0xff]  }
 0x754   :  { %5821 = vst [vmem:[#allocation41_spill] sm:$0xff] %v5013_v50  ;;  %5822 = vst [vmem:[#allocation42_spill] sm:$0xff] %v5016_v11 }
 0x756   :  { %2336 = vmatpush1.bf16.msra.mxu0 %v5001_v15  ;;  %2377 = vmatpush1.bf16.msra.mxu1 %v5004_v16  ;;  %v5019_v15 = vld [vmem:[#allocation8 + $0x1c4] ss:$16 sps:$4 sm:$0xff]   ;;  %v5022_v16 = vld [vmem:[#allocation8 + $0x1cc] ss:$16 sps:$4 sm:$0xff]  }
 0x757   :  { %2337 = vmatprep.subr.bf16.mxu0 %v5007_v63  ;;  %2378 = vmatprep.subr.bf16.mxu1 %v5010_v58  ;;  %5823 = vst [vmem:[#allocation43_spill] sm:$0xff] %v5019_v15  ;;  %5824 = vst [vmem:[#allocation44_spill] sm:$0xff] %v5022_v16  ;;  %v5025_v63 = vld [vmem:[#allocation8 + $0x1c0] ss:$16 sps:$4 sm:$0xff]   ;;  %v5028_v58 = vld [vmem:[#allocation8 + $0x1c8] ss:$16 sps:$4 sm:$0xff]  }
 0x758   :  { %5825 = vst [vmem:[#allocation45_spill] sm:$0xff] %v5025_v63  ;;  %5826 = vst [vmem:[#allocation46_spill] sm:$0xff] %v5028_v58 }
 0x75a   :  { %2338 = vmatpush2.bf16.msra.mxu0 %v5013_v50  ;;  %2379 = vmatpush2.bf16.msra.mxu1 %v5016_v11  ;;  %v5031_v50 = vld [vmem:[#allocation8 + $0x1a4] ss:$16 sps:$4 sm:$0xff]   ;;  %v5034_v11 = vld [vmem:[#allocation8 + $0x1ac] ss:$16 sps:$4 sm:$0xff]  }
 0x75b   :  { %2339 = vmatprep.subr.bf16.mxu0 %v5019_v15  ;;  %2380 = vmatprep.subr.bf16.mxu1 %v5022_v16  ;;  %5827 = vst [vmem:[#allocation47_spill] sm:$0xff] %v5031_v50  ;;  %5828 = vst [vmem:[#allocation48_spill] sm:$0xff] %v5034_v11  ;;  %v5037_v15 = vld [vmem:[#allocation8 + $0x1a0] ss:$16 sps:$4 sm:$0xff]   ;;  %v5040_v16 = vld [vmem:[#allocation8 + $0x1a8] ss:$16 sps:$4 sm:$0xff]  }
 0x75c   :  { %5829 = vst [vmem:[#allocation49_spill] sm:$0xff] %v5037_v15  ;;  %5830 = vst [vmem:[#allocation50_spill] sm:$0xff] %v5040_v16 }
 0x75e   :  { %2340 = vmatpush2.bf16.msra.mxu0 %v5025_v63  ;;  %2381 = vmatpush2.bf16.msra.mxu1 %v5028_v58  ;;  %v5043_v63 = vld [vmem:[#allocation8 + $0x184] ss:$16 sps:$4 sm:$0xff]   ;;  %v5046_v58 = vld [vmem:[#allocation8 + $0x18c] ss:$16 sps:$4 sm:$0xff]  }
 0x75f   :  { %2341 = vmatprep.subr.bf16.mxu0 %v5031_v50  ;;  %2382 = vmatprep.subr.bf16.mxu1 %v5034_v11  ;;  %5831 = vst [vmem:[#allocation51_spill] sm:$0xff] %v5043_v63  ;;  %5832 = vst [vmem:[#allocation52_spill] sm:$0xff] %v5046_v58  ;;  %v5049_v50 = vld [vmem:[#allocation8 + $0x180] ss:$16 sps:$4 sm:$0xff]   ;;  %v5052_v11 = vld [vmem:[#allocation8 + $0x188] ss:$16 sps:$4 sm:$0xff]  }
 0x760   :  { %5833 = vst [vmem:[#allocation53_spill] sm:$0xff] %v5049_v50  ;;  %5834 = vst [vmem:[#allocation54_spill] sm:$0xff] %v5052_v11 }
 0x762   :  { %2342 = vmatpush2.bf16.msra.mxu0 %v5037_v15  ;;  %2383 = vmatpush2.bf16.msra.mxu1 %v5040_v16  ;;  %v5055_v15 = vld [vmem:[#allocation8 + $0x164] ss:$16 sps:$4 sm:$0xff]   ;;  %v5058_v16 = vld [vmem:[#allocation8 + $0x16c] ss:$16 sps:$4 sm:$0xff]  }
 0x763   :  { %2343 = vmatprep.subr.bf16.mxu0 %v5043_v63  ;;  %2384 = vmatprep.subr.bf16.mxu1 %v5046_v58  ;;  %5835 = vst [vmem:[#allocation55_spill] sm:$0xff] %v5055_v15  ;;  %5836 = vst [vmem:[#allocation56_spill] sm:$0xff] %v5058_v16  ;;  %v5061_v63 = vld [vmem:[#allocation8 + $0x160] ss:$16 sps:$4 sm:$0xff]   ;;  %v5064_v58 = vld [vmem:[#allocation8 + $0x168] ss:$16 sps:$4 sm:$0xff]  }
 0x764   :  { %5837 = vst [vmem:[#allocation57_spill] sm:$0xff] %v5061_v63  ;;  %5838 = vst [vmem:[#allocation58_spill] sm:$0xff] %v5064_v58 }
 0x766   :  { %2344 = vmatpush2.bf16.msra.mxu0 %v5049_v50  ;;  %2385 = vmatpush2.bf16.msra.mxu1 %v5052_v11  ;;  %v5067_v50 = vld [vmem:[#allocation8 + $0x144] ss:$16 sps:$4 sm:$0xff]   ;;  %v5070_v11 = vld [vmem:[#allocation8 + $0x14c] ss:$16 sps:$4 sm:$0xff]  }
 0x767   :  { %2345 = vmatprep.subr.bf16.mxu0 %v5055_v15  ;;  %2386 = vmatprep.subr.bf16.mxu1 %v5058_v16  ;;  %5839 = vst [vmem:[#allocation59_spill] sm:$0xff] %v5067_v50  ;;  %5840 = vst [vmem:[#allocation60_spill] sm:$0xff] %v5070_v11  ;;  %v5073_v15 = vld [vmem:[#allocation8 + $0x140] ss:$16 sps:$4 sm:$0xff]   ;;  %v5076_v16 = vld [vmem:[#allocation8 + $0x148] ss:$16 sps:$4 sm:$0xff]  }
 0x768   :  { %5841 = vst [vmem:[#allocation61_spill] sm:$0xff] %v5073_v15  ;;  %5842 = vst [vmem:[#allocation62_spill] sm:$0xff] %v5076_v16 }
 0x76a   :  { %2346 = vmatpush2.bf16.msra.mxu0 %v5061_v63  ;;  %2387 = vmatpush2.bf16.msra.mxu1 %v5064_v58  ;;  %v5079_v63 = vld [vmem:[#allocation8 + $0x124] ss:$16 sps:$4 sm:$0xff]   ;;  %v5082_v58 = vld [vmem:[#allocation8 + $0x12c] ss:$16 sps:$4 sm:$0xff]  }
 0x76b   :  { %2347 = vmatprep.subr.bf16.mxu0 %v5067_v50  ;;  %2388 = vmatprep.subr.bf16.mxu1 %v5070_v11  ;;  %5843 = vst [vmem:[#allocation63_spill] sm:$0xff] %v5079_v63  ;;  %5844 = vst [vmem:[#allocation64_spill] sm:$0xff] %v5082_v58  ;;  %v5085_v50 = vld [vmem:[#allocation8 + $0x120] ss:$16 sps:$4 sm:$0xff]   ;;  %v5088_v11 = vld [vmem:[#allocation8 + $0x128] ss:$16 sps:$4 sm:$0xff]  }
 0x76c   :  { %5845 = vst [vmem:[#allocation65_spill] sm:$0xff] %v5085_v50  ;;  %5846 = vst [vmem:[#allocation66_spill] sm:$0xff] %v5088_v11 }
 0x76e   :  { %2348 = vmatpush2.bf16.msra.mxu0 %v5073_v15  ;;  %2389 = vmatpush2.bf16.msra.mxu1 %v5076_v16  ;;  %v5091_v15 = vld [vmem:[#allocation8 + $0x104] ss:$16 sps:$4 sm:$0xff]   ;;  %v5094_v16 = vld [vmem:[#allocation8 + $0x10c] ss:$16 sps:$4 sm:$0xff]  }
 0x76f   :  { %2349 = vmatprep.subr.bf16.mxu0 %v5079_v63  ;;  %2390 = vmatprep.subr.bf16.mxu1 %v5082_v58  ;;  %5847 = vst [vmem:[#allocation67_spill] sm:$0xff] %v5091_v15  ;;  %5848 = vst [vmem:[#allocation68_spill] sm:$0xff] %v5094_v16  ;;  %v5097_v63 = vld [vmem:[#allocation8 + $0x100] ss:$16 sps:$4 sm:$0xff]   ;;  %v5100_v58 = vld [vmem:[#allocation8 + $0x108] ss:$16 sps:$4 sm:$0xff]  }
 0x770   :  { %5849 = vst [vmem:[#allocation69_spill] sm:$0xff] %v5097_v63  ;;  %5850 = vst [vmem:[#allocation70_spill] sm:$0xff] %v5100_v58 }
 0x772   :  { %2350 = vmatpush2.bf16.msra.mxu0 %v5085_v50  ;;  %2391 = vmatpush2.bf16.msra.mxu1 %v5088_v11 }
 0x773   :  { %2351 = vmatprep.subr.bf16.mxu0 %v5091_v15  ;;  %2392 = vmatprep.subr.bf16.mxu1 %v5094_v16 }
 0x776   :  { %2352 = vmatpush2.bf16.msra.mxu0 %v5097_v63  ;;  %2393 = vmatpush2.bf16.msra.mxu1 %v5100_v58 }
 0x777   :  { %2430 = vmatprep.subr.bf16.mxu0 %v4838_v47  ;;  %2471 = vmatprep.subr.bf16.mxu1 %v4841_v2 }
 0x7d9   :  { %v2101_v11 = vpop.f32.mrf.mxu0  ;;  %v2142_v50 = vpop.f32.mrf.mxu1 }
 0x7da   :  { %v2944_v10 = vmul.f32 -1.442695, %v2101_v11 }
 0x7db   :  { %v2103_v15 = vpop.f32.mrf.mxu0  ;;  %v2144_v9 = vpop.f32.mrf.mxu1 }
 0x7dc   :  { %3339 = vpow2.f32 %v2944_v10  ;;  %v2945_v8 = vmul.f32 -1.442695, %v2103_v15  ;;  %v2946_v5 = vmul.f32 -1.442695, %v2144_v9 }
 0x7dd   :  { %v2105_v16 = vpop.f32.mrf.mxu0  ;;  %v2146_v7 = vpop.f32.mrf.mxu1 }
 0x7de   :  { %3341 = vpow2.f32 %v2945_v8 }
 0x7df   :  { %v2106_v6 = vpop.f32.mrf.mxu0  ;;  %v2147_v63 = vpop.f32.mrf.mxu1  ;;  %3343 = vpow2.f32 %v2946_v5 }
 0x7e9   :  { %v3340_v4 = vpop.eup %3339 }
 0x7ea   :  { %v2152_v46 = vadd.f32 1.0, %v3340_v4 }
 0x7eb   :  { %v3342_v58 = vpop.eup %3341 }
 0x7ec   :  { %3345 = vrcp.f32 %v2152_v46  ;;  %v2158_v47 = vadd.f32 1.0, %v3342_v58  ;;  %v3344_v2 = vpop.eup %3343 }
 0x7ed   :  { %3347 = vtanh.f32 %v2142_v50  ;;  %v2165_v16 = vadd.f32 1.0, %v3344_v2  ;;  %v2175_v2 = vld [vmem:[#allocation3 + $0x6] ss:$8 sm:$0xf] }
 0x7ee   :  { %3349 = vrcp.f32 %v2158_v47 }
 0x7ef   :  { %3351 = vrcp.f32 %v2165_v16 }
 0x7f9   :  { %v3346_v11 = vpop.eup %3345  ;;  %v2210_v45 = vpop.f32.mrf.mxu0 }
 0x7fa   :  { %v2251_v44 = vpop.f32.mrf.mxu1  ;;  %v3348_v10 = vpop.eup %3347 }
 0x7fb   :  { %v3350_v15 = vpop.eup %3349  ;;  %v2212_v7 = vpop.f32.mrf.mxu0  ;;  %v2169_v6 = vmul.f32 %v3348_v10, %v3346_v11 }
 0x7fc   :  { %v2253_v8 = vpop.f32.mrf.mxu1  ;;  %v2168_v9 = vmul.f32 %v3350_v15, %v4845_v49  ;;  %v2262_v63 = vcombine.low %v2210_v45, %v2212_v7  ;;  %v3352_v10 = vpop.eup %3351 }
 0x7fd   :  { %v2263_v4 = vcombine.low %v2251_v44, %v2253_v8  ;;  %v2214_v43 = vpop.f32.mrf.mxu0 }
 0x7fe   :  { %v2255_v5 = vpop.f32.mrf.mxu1  ;;  %v5106_v46 = vadd.f32 %v2169_v6, %v2168_v9  ;;  %v2270_v50 = vrot.slane %v2262_v63, %v4071_v53 }
 0x7ff   :  { %v2277_v58 = vrot.slane %v2263_v4, %v4071_v53  ;;  %v2215_v47 = vpop.f32.mrf.mxu0 }
 0x800   :  { %v2256_v42 = vpop.f32.mrf.mxu1  ;;  %3353 = vtanh.f32 %v5106_v46 }
 0x801   :  { %v2278_v41 = vcombine.low %v2270_v50, %v2277_v58 }
 0x803   :  { %v2285_v11 = vrot.slane %v2278_v41, %v4071_v53 }
 0x805   :  { %v2287_v49 = vadd.f32 %v2285_v11, %v2175_v2 }
 0x807   :  { %v2947_v45 = vmul.f32 -1.442695, %v2287_v49  ;;  %v2295_v44 = vrot.slane %v2287_v49, 1  ;;  %v2306_v8 = vrot.slane %v2287_v49, 3  ;;  %v2303_v9 = vrot.slane %v2287_v49, 2 }
 0x809   :  { %3355 = vpow2.f32 %v2947_v45  ;;  %v2948_v43 = vmul.f32 -1.442695, %v2295_v44  ;;  %v2949_v42 = vmul.f32 -1.442695, %v2306_v8  ;;  %v5893_v8 = vld [vmem:[#allocation58_spill] sm:$0xff] }
 0x80b   :  { %3357 = vpow2.f32 %v2948_v43 }
 0x80c   :  { %3359 = vpow2.f32 %v2949_v42  ;;  %v5895_v42 = vld [vmem:[#allocation60_spill] sm:$0xff] }
 0x80d   :  { %v3354_v15 = vpop.eup %3353 }
 0x80e   :  { %v2172_v7 = vmul.f32 %v3354_v15, %v3352_v10 }
 0x810   :  { %2173 = vst [vmem:[#allocation2 + $0x5] sm:$0x1] %v2172_v7  ;;  %v2320_v16 = vpack.c.bf16 %v2172_v7, %v2172_v7  ;;  %v5892_v7 = vld [vmem:[#allocation57_spill] sm:$0xff] }
 0x812   :  { %2353 = vmatprep.mubr.bf16.mxu0 %v2320_v16  ;;  %2394 = vmatprep.mubr.bf16.mxu1 %v2320_v16  ;;  %v5894_v16 = vld [vmem:[#allocation59_spill] sm:$0xff] }
 0x816   :  { %v3356_v6 = vpop.eup %3355 }
 0x817   :  { %v2291_v63 = vadd.f32 1.0, %v3356_v6  ;;  %v5896_v6 = vld [vmem:[#allocation61_spill] sm:$0xff] }
 0x818   :  { %v3358_v4 = vpop.eup %3357 }
 0x819   :  { %3361 = vrcp.f32 %v2291_v63  ;;  %v2300_v41 = vadd.f32 1.0, %v3358_v4  ;;  %v3360_v5 = vpop.eup %3359  ;;  %v5898_v63 = vld [vmem:[#allocation63_spill] sm:$0xff]  ;;  %v5899_v4 = vld [vmem:[#allocation64_spill] sm:$0xff] }
 0x81a   :  { %3363 = vtanh.f32 %v2303_v9  ;;  %v2311_v2 = vadd.f32 1.0, %v3360_v5  ;;  %v5897_v9 = vld [vmem:[#allocation62_spill] sm:$0xff] }
 0x81b   :  { %3365 = vrcp.f32 %v2300_v41  ;;  %v5900_v41 = vld [vmem:[#allocation65_spill] sm:$0xff]  ;;  %v5901_v5 = vld [vmem:[#allocation66_spill] sm:$0xff] }
 0x81c   :  { %3367 = vrcp.f32 %v2311_v2  ;;  %v5905_v2 = vld [vmem:[#allocation70_spill] sm:$0xff] }
 0x826   :  { %v3362_v50 = vpop.eup %3361 }
 0x827   :  { %v3364_v58 = vpop.eup %3363 }
 0x828   :  { %v3366_v47 = vpop.eup %3365  ;;  %v2315_v45 = vmul.f32 %v3364_v58, %v3362_v50  ;;  %v5902_v50 = vld [vmem:[#allocation67_spill] sm:$0xff]  ;;  %v5903_v58 = vld [vmem:[#allocation68_spill] sm:$0xff] }
 0x829   :  { %v2314_v11 = vmul.f32 %v3366_v47, %v4852_v12  ;;  %v3368_v49 = vpop.eup %3367  ;;  %v5870_v12 = vld [vmem:[#allocation19_spill] sm:$0xff]  ;;  %v5904_v47 = vld [vmem:[#allocation69_spill] sm:$0xff] }
 0x82b   :  { %v5113_v44 = vadd.f32 %v2315_v45, %v2314_v11 }
 0x82d   :  { %3369 = vtanh.f32 %v5113_v44 }
 0x83a   :  { %v3370_v43 = vpop.eup %3369 }
 0x83b   :  { %v2318_v10 = vmul.f32 %v3370_v43, %v3368_v49 }
 0x83d   :  { %v2319_v15 = vpack.c.bf16 %v2318_v10, %v2318_v10 }
 0x83f   :  { %2354 = vmatmul.mubr.bf16.vlgmr.msra.gmra.mxu0 %v2319_v15  ;;  %2395 = vmatmul.mubr.bf16.vlgmr.msra.gmra.mxu1 %v2319_v15 }
 0x840   :  { %2431 = vmatpush1.bf16.msra.mxu0 %v4706_v39  ;;  %2472 = vmatpush1.bf16.msra.mxu1 %v4709_v37  ;;  %v5852_v39 = vld [vmem:[#allocation21_spill] sm:$0xff]  ;;  %v5853_v37 = vld [vmem:[#allocation22_spill] sm:$0xff] }
 0x841   :  { %2432 = vmatprep.subr.bf16.mxu0 %v4712_v24  ;;  %2473 = vmatprep.subr.bf16.mxu1 %v4715_v28  ;;  %v5854_v24 = vld [vmem:[#allocation23_spill] sm:$0xff]  ;;  %v5855_v28 = vld [vmem:[#allocation24_spill] sm:$0xff] }
 0x842   :  { %2462 = vmatprep.mubr.bf16.mxu0 %v5556_v59  ;;  %2503 = vmatprep.mubr.bf16.mxu1 %v5556_v59  ;;  %v5851_v59 = vld [vmem:[#allocation20_spill] sm:$0xff] }
 0x844   :  { %2433 = vmatpush1.bf16.msra.mxu0 %v4720_v30  ;;  %2474 = vmatpush1.bf16.msra.mxu1 %v4723_v13  ;;  %v5856_v30 = vld [vmem:[#allocation25_spill] sm:$0xff]  ;;  %v5857_v13 = vld [vmem:[#allocation26_spill] sm:$0xff] }
 0x845   :  { %2434 = vmatprep.subr.bf16.mxu0 %v4726_v27  ;;  %2475 = vmatprep.subr.bf16.mxu1 %v4729_v34  ;;  %v5858_v27 = vld [vmem:[#allocation27_spill] sm:$0xff]  ;;  %v5859_v34 = vld [vmem:[#allocation28_spill] sm:$0xff] }
 0x848   :  { %2435 = vmatpush1.bf16.msra.mxu0 %v4732_v40  ;;  %2476 = vmatpush1.bf16.msra.mxu1 %v4735_v36  ;;  %v5860_v40 = vld [vmem:[#allocation29_spill] sm:$0xff]  ;;  %v5861_v36 = vld [vmem:[#allocation30_spill] sm:$0xff] }
 0x849   :  { %2436 = vmatprep.subr.bf16.mxu0 %v4738_v32  ;;  %2477 = vmatprep.subr.bf16.mxu1 %v4741_v14  ;;  %v5862_v32 = vld [vmem:[#allocation31_spill] sm:$0xff]  ;;  %v5863_v14 = vld [vmem:[#allocation16_spill] sm:$0xff] }
 0x84c   :  { %2437 = vmatpush1.bf16.msra.mxu0 %v4744_v23  ;;  %2478 = vmatpush1.bf16.msra.mxu1 %v4747_v35  ;;  %v5864_v23 = vld [vmem:[#allocation17_spill] sm:$0xff]  ;;  %v5865_v35 = vld [vmem:[#allocation32_spill] sm:$0xff] }
 0x84d   :  { %2438 = vmatprep.subr.bf16.mxu0 %v4750_v25  ;;  %2479 = vmatprep.subr.bf16.mxu1 %v4753_v3  ;;  %v5866_v25 = vld [vmem:[#allocation33_spill] sm:$0xff]  ;;  %v5867_v3 = vld [vmem:[#allocation34_spill] sm:$0xff] }
 0x850   :  { %2439 = vmatpush1.bf16.msra.mxu0 %v4756_v22  ;;  %2480 = vmatpush1.bf16.msra.mxu1 %v4759_v26  ;;  %v5868_v22 = vld [vmem:[#allocation35_spill] sm:$0xff]  ;;  %v5869_v26 = vld [vmem:[#allocation18_spill] sm:$0xff] }
 0x851   :  { %2440 = vmatprep.subr.bf16.mxu0 %v4875_v38  ;;  %2481 = vmatprep.subr.bf16.mxu1 %v4878_v0  ;;  %v5871_v38 = vld [vmem:[#allocation36_spill] sm:$0xff]  ;;  %v5872_v0 = vld [vmem:[#allocation37_spill] sm:$0xff] }
 0x854   :  { %2441 = vmatpush1.bf16.msra.mxu0 %v4881_v19  ;;  %2482 = vmatpush1.bf16.msra.mxu1 %v4884_v56  ;;  %v5873_v19 = vld [vmem:[#allocation38_spill] sm:$0xff]  ;;  %v5874_v56 = vld [vmem:[#allocation39_spill] sm:$0xff] }
 0x855   :  { %2442 = vmatprep.subr.bf16.mxu0 %v4887_v61  ;;  %2483 = vmatprep.subr.bf16.mxu1 %v4890_v1  ;;  %v5875_v61 = vld [vmem:[#allocation40_spill] sm:$0xff]  ;;  %v5876_v1 = vld [vmem:[#allocation41_spill] sm:$0xff] }
 0x858   :  { %2443 = vmatpush1.bf16.msra.mxu0 %v4893_v60  ;;  %2484 = vmatpush1.bf16.msra.mxu1 %v4896_v54  ;;  %v5877_v60 = vld [vmem:[#allocation42_spill] sm:$0xff]  ;;  %v5878_v54 = vld [vmem:[#allocation43_spill] sm:$0xff] }
 0x859   :  { %2444 = vmatprep.subr.bf16.mxu0 %v4899_v17  ;;  %2485 = vmatprep.subr.bf16.mxu1 %v4902_v48  ;;  %v5879_v17 = vld [vmem:[#allocation44_spill] sm:$0xff]  ;;  %v5880_v48 = vld [vmem:[#allocation45_spill] sm:$0xff] }
 0x85c   :  { %2445 = vmatpush1.bf16.msra.mxu0 %v4905_v57  ;;  %2486 = vmatpush1.bf16.msra.mxu1 %v4908_v51  ;;  %v5881_v57 = vld [vmem:[#allocation46_spill] sm:$0xff]  ;;  %v5882_v51 = vld [vmem:[#allocation47_spill] sm:$0xff] }
 0x85d   :  { %2575 = vmatprep.subr.bf16.mxu0 %v4911_v55  ;;  %2616 = vmatprep.subr.bf16.mxu1 %v4914_v62  ;;  %v5883_v55 = vld [vmem:[#allocation48_spill] sm:$0xff]  ;;  %v5884_v62 = vld [vmem:[#allocation49_spill] sm:$0xff] }
 0x85f   :  { %2463 = vmatmul.mubr.bf16.vlgmr.msra.gmra.mxu0 %v2319_v15  ;;  %2504 = vmatmul.mubr.bf16.vlgmr.msra.gmra.mxu1 %v2319_v15 }
 0x860   :  { %2576 = vmatpush1.bf16.msra.mxu0 %v4917_v29  ;;  %2617 = vmatpush1.bf16.msra.mxu1 %v4920_v52  ;;  %v5885_v29 = vld [vmem:[#allocation50_spill] sm:$0xff]  ;;  %v5886_v52 = vld [vmem:[#allocation51_spill] sm:$0xff] }
 0x861   :  { %2577 = vmatprep.subr.bf16.mxu0 %v4923_v20  ;;  %2618 = vmatprep.subr.bf16.mxu1 %v4926_v31  ;;  %v5887_v20 = vld [vmem:[#allocation52_spill] sm:$0xff]  ;;  %v5888_v31 = vld [vmem:[#allocation53_spill] sm:$0xff] }
 0x864   :  { %2578 = vmatpush1.bf16.msra.mxu0 %v4929_v21  ;;  %2619 = vmatpush1.bf16.msra.mxu1 %v4932_v33  ;;  %v5889_v21 = vld [vmem:[#allocation54_spill] sm:$0xff]  ;;  %v5890_v33 = vld [vmem:[#allocation55_spill] sm:$0xff] }
 0x865   :  { %2579 = vmatprep.subr.bf16.mxu0 %v4935_v18  ;;  %2620 = vmatprep.subr.bf16.mxu1 %v5851_v59  ;;  %v5891_v18 = vld [vmem:[#allocation56_spill] sm:$0xff] }
 0x868   :  { %2580 = vmatpush1.bf16.msra.mxu0 %v5852_v39  ;;  %2621 = vmatpush1.bf16.msra.mxu1 %v5853_v37 }
 0x869   :  { %2581 = vmatprep.subr.bf16.mxu0 %v5854_v24  ;;  %2622 = vmatprep.subr.bf16.mxu1 %v5855_v28 }
 0x86c   :  { %2582 = vmatpush1.bf16.msra.mxu0 %v5856_v30  ;;  %2623 = vmatpush1.bf16.msra.mxu1 %v5857_v13 }
 0x86d   :  { %2583 = vmatprep.subr.bf16.mxu0 %v5858_v27  ;;  %2624 = vmatprep.subr.bf16.mxu1 %v5859_v34 }
 0x870   :  { %2584 = vmatpush1.bf16.msra.mxu0 %v5860_v40  ;;  %2625 = vmatpush1.bf16.msra.mxu1 %v5861_v36 }
 0x871   :  { %2585 = vmatprep.subr.bf16.mxu0 %v5862_v32  ;;  %2626 = vmatprep.subr.bf16.mxu1 %v5863_v14 }
 0x874   :  { %2586 = vmatpush1.bf16.msra.mxu0 %v5864_v23  ;;  %2627 = vmatpush1.bf16.msra.mxu1 %v5865_v35 }
 0x875   :  { %2587 = vmatprep.subr.bf16.mxu0 %v5866_v25  ;;  %2628 = vmatprep.subr.bf16.mxu1 %v5867_v3 }
 0x878   :  { %2588 = vmatpush1.bf16.msra.mxu0 %v5868_v22  ;;  %2629 = vmatpush1.bf16.msra.mxu1 %v5869_v26 }
 0x879   :  { %2589 = vmatprep.subr.bf16.mxu0 %v5870_v12  ;;  %2630 = vmatprep.subr.bf16.mxu1 %v5871_v38 }
 0x87c   :  { %2590 = vmatpush1.bf16.msra.mxu0 %v5872_v0  ;;  %2631 = vmatpush1.bf16.msra.mxu1 %v5873_v19 }
 0x87d   :  { %2591 = vmatprep.subr.bf16.mxu0 %v5874_v56  ;;  %2632 = vmatprep.subr.bf16.mxu1 %v5875_v61 }
 0x880   :  { %2592 = vmatpush2.bf16.msra.mxu0 %v5876_v1  ;;  %2633 = vmatpush2.bf16.msra.mxu1 %v5877_v60 }
 0x881   :  { %2593 = vmatprep.subr.bf16.mxu0 %v5878_v54  ;;  %2634 = vmatprep.subr.bf16.mxu1 %v5879_v17 }
 0x884   :  { %2594 = vmatpush2.bf16.msra.mxu0 %v5880_v48  ;;  %2635 = vmatpush2.bf16.msra.mxu1 %v5881_v57  ;;  %v2429_v57 = vld [vmem:[#allocation3 + $0x7] ss:$8 sm:$0xf] }
 0x885   :  { %2595 = vmatprep.subr.bf16.mxu0 %v5882_v51  ;;  %2636 = vmatprep.subr.bf16.mxu1 %v5883_v55 }
 0x888   :  { %2596 = vmatpush2.bf16.msra.mxu0 %v5884_v62  ;;  %2637 = vmatpush2.bf16.msra.mxu1 %v5885_v29 }
 0x889   :  { %2597 = vmatprep.subr.bf16.mxu0 %v5886_v52  ;;  %2638 = vmatprep.subr.bf16.mxu1 %v5887_v20 }
 0x88c   :  { %2598 = vmatpush2.bf16.msra.mxu0 %v5888_v31  ;;  %2639 = vmatpush2.bf16.msra.mxu1 %v5889_v21 }
 0x88d   :  { %2599 = vmatprep.subr.bf16.mxu0 %v5890_v33  ;;  %2640 = vmatprep.subr.bf16.mxu1 %v5891_v18 }
 0x890   :  { %2600 = vmatpush2.bf16.msra.mxu0 %v5892_v7  ;;  %2641 = vmatpush2.bf16.msra.mxu1 %v5893_v8 }
 0x891   :  { %2601 = vmatprep.subr.bf16.mxu0 %v5894_v16  ;;  %2642 = vmatprep.subr.bf16.mxu1 %v5895_v42 }
 0x894   :  { %2602 = vmatpush2.bf16.msra.mxu0 %v5896_v6  ;;  %2643 = vmatpush2.bf16.msra.mxu1 %v5897_v9 }
 0x895   :  { %2603 = vmatprep.subr.bf16.mxu0 %v5898_v63  ;;  %2644 = vmatprep.subr.bf16.mxu1 %v5899_v4 }
 0x898   :  { %2604 = vmatpush2.bf16.msra.mxu0 %v5900_v41  ;;  %2645 = vmatpush2.bf16.msra.mxu1 %v5901_v5 }
 0x899   :  { %2605 = vmatprep.subr.bf16.mxu0 %v5902_v50  ;;  %2646 = vmatprep.subr.bf16.mxu1 %v5903_v58 }
 0x89c   :  { %2606 = vmatpush2.bf16.msra.mxu0 %v5904_v47  ;;  %2647 = vmatpush2.bf16.msra.mxu1 %v5905_v2 }
 0x8ff   :  { %v2355_v11 = vpop.f32.mrf.mxu0  ;;  %v2396_v45 = vpop.f32.mrf.mxu1 }
 0x900   :  { %v2950_v49 = vmul.f32 -1.442695, %v2355_v11 }
 0x901   :  { %v2357_v43 = vpop.f32.mrf.mxu0  ;;  %v2398_v10 = vpop.f32.mrf.mxu1 }
 0x902   :  { %3371 = vpow2.f32 %v2950_v49  ;;  %v2951_v15 = vmul.f32 -1.442695, %v2357_v43  ;;  %v2952_v28 = vmul.f32 -1.442695, %v2398_v10  ;;  %v3155_v49 = vld [vmem:[#allocation9 + $0x38] sm:$0xff]   ;;  %v3732_v43 = vmov 0.0  }
 0x903   :  { %v2359_v59 = vpop.f32.mrf.mxu0  ;;  %v2400_v39 = vpop.f32.mrf.mxu1  ;;  %2977 = vmatprep.subr.bf16.mxu0 %v3732_v43  ;;  %v3156_v10 = vld [vmem:[#allocation9 + $0x30] sm:$0xff]  }
 0x904   :  { %3373 = vpow2.f32 %v2951_v15  ;;  %v3157_v15 = vld [vmem:[#allocation9 + $0x28] sm:$0xff]   ;;  %v3159_v59 = vld [vmem:[#allocation9 + $0x18] sm:$0xff]   ;;  %v3160_v39 = vld [vmem:[#allocation9 + $0x10] sm:$0xff]  }
 0x905   :  { %v2360_v37 = vpop.f32.mrf.mxu0  ;;  %v2401_v24 = vpop.f32.mrf.mxu1  ;;  %3375 = vpow2.f32 %v2952_v28 }
 0x906   :  { %v3161_v37 = vld [vmem:[#allocation9 + $0x8] sm:$0xff]   ;;  %v3162_v24 = vld [vmem:[#allocation9] sm:$0xff]  }
 0x90f   :  { %v3372_v30 = vpop.eup %3371 }
 0x910   :  { %v2406_v13 = vadd.f32 1.0, %v3372_v30 }
 0x911   :  { %v3374_v27 = vpop.eup %3373 }
 0x912   :  { %3377 = vrcp.f32 %v2406_v13  ;;  %v2412_v34 = vadd.f32 1.0, %v3374_v27  ;;  %v3376_v40 = vpop.eup %3375 }
 0x913   :  { %3379 = vtanh.f32 %v2396_v45  ;;  %v2419_v25 = vadd.f32 1.0, %v3376_v40 }
 0x914   :  { %3381 = vrcp.f32 %v2412_v34 }
 0x915   :  { %3383 = vrcp.f32 %v2419_v25 }
 0x91f   :  { %v3378_v36 = vpop.eup %3377  ;;  %v2464_v32 = vpop.f32.mrf.mxu0 }
 0x920   :  { %v2505_v14 = vpop.f32.mrf.mxu1  ;;  %v3380_v23 = vpop.eup %3379 }
 0x921   :  { %v3382_v35 = vpop.eup %3381  ;;  %v2466_v3 = vpop.f32.mrf.mxu0  ;;  %v2423_v26 = vmul.f32 %v3380_v23, %v3378_v36 }
 0x922   :  { %v2507_v22 = vpop.f32.mrf.mxu1  ;;  %v2422_v12 = vmul.f32 %v3382_v35, %v5106_v46  ;;  %v2516_v38 = vcombine.low %v2464_v32, %v2466_v3  ;;  %v3384_v52 = vpop.eup %3383 }
 0x923   :  { %v2517_v0 = vcombine.low %v2505_v14, %v2507_v22  ;;  %v2468_v19 = vpop.f32.mrf.mxu0 }
 0x924   :  { %v2509_v56 = vpop.f32.mrf.mxu1  ;;  %v5213_v61 = vadd.f32 %v2423_v26, %v2422_v12  ;;  %v2524_v1 = vrot.slane %v2516_v38, %v4071_v53 }
 0x925   :  { %v2531_v60 = vrot.slane %v2517_v0, %v4071_v53  ;;  %v2469_v54 = vpop.f32.mrf.mxu0 }
 0x926   :  { %v2510_v17 = vpop.f32.mrf.mxu1  ;;  %3385 = vtanh.f32 %v5213_v61 }
 0x927   :  { %v2532_v48 = vcombine.low %v2524_v1, %v2531_v60 }
 0x929   :  { %v2539_v51 = vrot.slane %v2532_v48, %v4071_v53 }
 0x92b   :  { %v2541_v46 = vadd.f32 %v2539_v51, %v2429_v57 }
 0x92d   :  { %v2953_v55 = vmul.f32 -1.442695, %v2541_v46  ;;  %v2549_v62 = vrot.slane %v2541_v46, 1  ;;  %v2560_v21 = vrot.slane %v2541_v46, 3  ;;  %v2557_v8 = vrot.slane %v2541_v46, 2 }
 0x92f   :  { %3387 = vpow2.f32 %v2953_v55  ;;  %v2954_v29 = vmul.f32 -1.442695, %v2549_v62  ;;  %v2955_v18 = vmul.f32 -1.442695, %v2560_v21  ;;  %v2959_v62 = vld [vmem:[%s5231_s4] ss:$0 sm:$0xff] }
 0x931   :  { %3389 = vpow2.f32 %v2954_v29 }
 0x932   :  { %3391 = vpow2.f32 %v2955_v18 }
 0x933   :  { %v3386_v20 = vpop.eup %3385 }
 0x934   :  { %v2426_v31 = vmul.f32 %v3386_v20, %v3384_v52 }
 0x936   :  { %2427 = vst [vmem:[#allocation2 + $0x6] sm:$0x1] %v2426_v31  ;;  %v2574_v33 = vpack.c.bf16 %v2426_v31, %v2426_v31 }
 0x938   :  { %2607 = vmatprep.mubr.bf16.mxu0 %v2574_v33  ;;  %2648 = vmatprep.mubr.bf16.mxu1 %v2574_v33 }
 0x93c   :  { %v3388_v7 = vpop.eup %3387 }
 0x93d   :  { %v2545_v16 = vadd.f32 1.0, %v3388_v7 }
 0x93e   :  { %v3390_v42 = vpop.eup %3389 }
 0x93f   :  { %3393 = vrcp.f32 %v2545_v16  ;;  %v2554_v53 = vadd.f32 1.0, %v3390_v42  ;;  %v3392_v6 = vpop.eup %3391 }
 0x940   :  { %3395 = vtanh.f32 %v2557_v8  ;;  %v2565_v41 = vadd.f32 1.0, %v3392_v6 }
 0x941   :  { %3397 = vrcp.f32 %v2554_v53 }
 0x942   :  { %3399 = vrcp.f32 %v2565_v41 }
 0x94c   :  { %v3394_v9 = vpop.eup %3393 }
 0x94d   :  { %v3396_v63 = vpop.eup %3395 }
 0x94e   :  { %v3398_v4 = vpop.eup %3397  ;;  %v2569_v50 = vmul.f32 %v3396_v63, %v3394_v9 }
 0x94f   :  { %v2568_v5 = vmul.f32 %v3398_v4, %v5113_v44  ;;  %v3400_v47 = vpop.eup %3399  ;;  %v3158_v44 = vld [vmem:[#allocation9 + $0x20] sm:$0xff]  }
 0x951   :  { %v2570_v58 = vadd.f32 %v2569_v50, %v2568_v5 }
 0x953   :  { %3401 = vtanh.f32 %v2570_v58 }
 0x960   :  { %v3402_v2 = vpop.eup %3401 }
 0x961   :  { %v2572_v11 = vmul.f32 %v3402_v2, %v3400_v47 }
 0x963   :  { %v2573_v45 = vpack.c.bf16 %v2572_v11, %v2572_v11 }
 0x965   :  { %2608 = vmatmul.mubr.bf16.vlgmr.msra.gmra.mxu0 %v2573_v45  ;;  %2649 = vmatmul.mubr.bf16.vlgmr.msra.gmra.mxu1 %v2573_v45 }
 0x966   :  { %2978 = vmatpush3.bf16.msra.mxu0 %v3155_v49  ;;  %2993 = vmatprep.mubr.msk.bf16.mxu0 %vm3733_vm0, %v3732_v43 }
 0x967   :  { %2979 = vmatprep.subr.bf16.mxu0 %v3732_v43 }
 0x96a   :  { %2980 = vmatpush3.bf16.msra.mxu0 %v3156_v10 }
 0x96b   :  { %2981 = vmatprep.subr.bf16.mxu0 %v3732_v43 }
 0x96e   :  { %2982 = vmatpush3.bf16.msra.mxu0 %v3157_v15 }
 0x96f   :  { %2983 = vmatprep.subr.bf16.mxu0 %v3732_v43 }
 0x972   :  { %2984 = vmatpush3.bf16.msra.mxu0 %v3158_v44 }
 0x973   :  { %2985 = vmatprep.subr.bf16.mxu0 %v3732_v43 }
 0x976   :  { %2986 = vmatpush3.bf16.msra.mxu0 %v3159_v59 }
 0x977   :  { %2987 = vmatprep.subr.bf16.mxu0 %v3732_v43 }
 0x97a   :  { %2988 = vmatpush3.bf16.msra.mxu0 %v3160_v39 }
 0x97b   :  { %2989 = vmatprep.subr.bf16.mxu0 %v3732_v43 }
 0x97e   :  { %2990 = vmatpush3.bf16.msra.mxu0 %v3161_v37 }
 0x97f   :  { %2991 = vmatprep.subr.bf16.mxu0 %v3732_v43 }
 0x982   :  { %2992 = vmatpush3.bf16.msra.mxu0 %v3162_v24 }
 0xa25   :  { %v2609_v28 = vpop.f32.mrf.mxu0  ;;  %v2650_v30 = vpop.f32.mrf.mxu1 }
 0xa26   :  { %v2956_v13 = vmul.f32 -1.442695, %v2609_v28 }
 0xa27   :  { %v2611_v27 = vpop.f32.mrf.mxu0  ;;  %v2652_v34 = vpop.f32.mrf.mxu1 }
 0xa28   :  { %3403 = vpow2.f32 %v2956_v13  ;;  %v2957_v40 = vmul.f32 -1.442695, %v2611_v27  ;;  %v2958_v35 = vmul.f32 -1.442695, %v2652_v34 }
 0xa29   :  { %v2613_v36 = vpop.f32.mrf.mxu0  ;;  %v2654_v32 = vpop.f32.mrf.mxu1 }
 0xa2a   :  { %3405 = vpow2.f32 %v2957_v40 }
 0xa2b   :  { %v2614_v14 = vpop.f32.mrf.mxu0  ;;  %v2655_v23 = vpop.f32.mrf.mxu1  ;;  %3407 = vpow2.f32 %v2958_v35 }
 0xa35   :  { %v3404_v25 = vpop.eup %3403 }
 0xa36   :  { %v2660_v3 = vadd.f32 1.0, %v3404_v25 }
 0xa37   :  { %v3406_v22 = vpop.eup %3405 }
 0xa38   :  { %3409 = vrcp.f32 %v2660_v3  ;;  %v2666_v26 = vadd.f32 1.0, %v3406_v22  ;;  %v3408_v12 = vpop.eup %3407 }
 0xa39   :  { %3411 = vtanh.f32 %v2650_v30  ;;  %v2673_v56 = vadd.f32 1.0, %v3408_v12 }
 0xa3a   :  { %3413 = vrcp.f32 %v2666_v26 }
 0xa3b   :  { %3415 = vrcp.f32 %v2673_v56 }
 0xa45   :  { %v3410_v38 = vpop.eup %3409 }
 0xa46   :  { %v3412_v0 = vpop.eup %3411 }
 0xa47   :  { %v3414_v19 = vpop.eup %3413  ;;  %v2677_v1 = vmul.f32 %v3412_v0, %v3410_v38 }
 0xa48   :  { %v2676_v60 = vmul.f32 %v3414_v19, %v5213_v61  ;;  %v3416_v17 = vpop.eup %3415 }
 0xa4a   :  { %v2678_v54 = vadd.f32 %v2677_v1, %v2676_v60 }
 0xa4c   :  { %3417 = vtanh.f32 %v2678_v54 }
 0xa59   :  { %v3418_v48 = vpop.eup %3417 }
 0xa5a   :  { %v2680_v57 = vmul.f32 %v3418_v48, %v3416_v17 }
 0xa5c   :  { %2681 = vst [vmem:[#allocation2 + $0x7] sm:$0x1] %v2680_v57 }
 0xa63   :  { %v2682_v51 = vld [vmem:[#allocation2] sm:$0xff] }
 0xa64   :  { %v2683_v46 = vmax.f32 %v2682_v51, 0.0 }
 0xa66   :  { %v2684_v55 = vpack.c.bf16 %v2683_v46, %v2683_v46 }
 0xa68   :  { %2994 = vmatmul.mubr.bf16.vlgmr.msra.gmra.mxu0 %v2684_v55 }
 0xb28   :  { %v2790_v29 = vpop.f32.mrf.mxu0 }
 0xb29   :  { %v2791_v52 = vadd.f32 %v2959_v62, %v2790_v29 }
 0xb2a   :  { %v2995_v20 = vpop.f32.mrf.mxu0 }
 0xb2b   :  { %3419 = vtanh.f32 %v2791_v52 }
 0xb2c   :  { %v2793_v61 = vpop.f32.mrf.mxu0 }
 0xb2e   :  { %v2996_v31 = vpop.f32.mrf.mxu0 }
 0xb38   :  { %v3420_v21 = vpop.eup %3419 }
 0xb39   :  { %2797 = vst [vmem:[#allocation11] sm:$0xff] %v3420_v21 }
 0xb3a   :  { %3704 = shalt.err (!%p3701_p10)
}
 0xb3b   :  { %2807 = dma.vmem_to_hbm [thread:$0]  %s2805_s16, 128, %s5232_s5, [#allocation5]  }
 0xb3c   :  { %3719 = dma.done.wait [#allocation5], 128  }
 0xb3d   :  { %3720 = vsyncadd [#allocation5], 4294967168 }
 0xb3e   :  { %2811 = vsyncpa [#allocation4], 1 }
 0xb3f   :  { %2812 = vsyncpa [#allocation7], 1 }
 0xb40   :  { %2813 = vsyncpa [#allocation10], 1 }
 0xb41   :  { %2814 = vsyncpa [#allocation5], 1 }

</bundles_post_ra>
